<compile_context>
chip_gen: v5e
topology: v5e:2x2
jax: 0.10.0
libtpu: 0.0.40
codegen_flags: <defaults>
</compile_context>

<pallas_src>
import functools

import jax
import jax.numpy as jnp
from jax import lax
from jax.experimental import pallas as pl
from jax.experimental.pallas import tpu as pltpu

EPS = 1e-5          # torch.nn.BatchNorm1d default eps
NEG_SLOPE = 0.2     # PyG GATConv default negative_slope
MASK_VAL = -1e30
OUT_PAD = 128       # lane-dense padded output width


def _vmem():
    return pl.BlockSpec(memory_space=pltpu.MemorySpace.VMEM)


# ----------------------------- fused Pallas kernel -----------------------------

def _fused_kernel(x_ref, mask_ref, wstack_ref, att_ref, vecs_ref, hmask_ref,
                  lw_ref, lb_ref, o_ref,
                  *, heads, hidden, in_channels, skip_coefficient):
    hdim = heads * hidden
    mask = mask_ref[...]         # (N, N) additive mask: 0 on edges, -1e30 elsewhere
    wstack = wstack_ref[...]     # (in_channels + 2*hdim, hdim): [lin0_wt; W1; W2]
    att = att_ref[...]           # (4*heads, hdim): per layer [src h0..H-1; dst h0..H-1]
    vecs = vecs_ref[...]         # (9, hdim) packed bias/gamma/beta rows
    hmask = hmask_ref[...]       # (heads, hdim) 0/1 lane masks, one row per head

    def row(r):                  # packed (1, hdim) vector rows
        return vecs[r:r + 1, :]

    def bn(v, gr, br):
        # training-mode BatchNorm1d (biased batch variance)
        mean = jnp.mean(v, axis=0, keepdims=True)
        var = jnp.mean(jnp.square(v - mean), axis=0, keepdims=True)
        return (v - mean) * lax.rsqrt(var + EPS) * row(gr) + row(br)

    def gat(v, w, att_l, bias_row):
        # xp = v @ W   (N, hdim)  -- issues independently of the attention dots
        xp = jnp.dot(v, w, preferred_element_type=jnp.float32)
        # attention coefficients from the *layer input* (att folded through W
        # in glue): a[:H] = a_src (H, N), a[H:] = a_dst (H, N)
        a = lax.dot_general(att_l, v, (((1,), (1,)), ((), ())),
                            preferred_element_type=jnp.float32)          # (2H, N)
        a_src = a[:heads]                                                 # (H, N)
        a_dst = a[heads:]                                                 # (H, N)

        # head-batched logits / softmax: (H, Ndst, Nsrc)
        logits = a_dst[:, :, None] + a_src[:, None, :]
        logits = jnp.maximum(logits, NEG_SLOPE * logits)                  # leaky relu
        logits = logits + mask[None, :, :]                                # edge mask
        m = jnp.max(logits, axis=-1, keepdims=True)
        e = jnp.exp(logits - m)                                           # off-edges -> 0
        attn = e / jnp.sum(e, axis=-1, keepdims=True)                     # exact softmax

        # per-head aggregation: out = sum_h attn_h @ (xp * head_mask_h)
        out = None
        for h in range(heads):
            xh = xp * hmask[h:h + 1, :]                                   # (N, hdim)
            oh = jnp.dot(attn[h], xh, preferred_element_type=jnp.float32)
            out = oh if out is None else out + oh
        return out + row(bias_row)

    l0w = wstack[:in_channels]
    w1 = wstack[in_channels:in_channels + hdim]
    w2 = wstack[in_channels + hdim:in_channels + 2 * hdim]

    # layer 0: Linear -> BN -> relu   (dropout = 0 -> identity)
    h0 = jnp.dot(x_ref[...], l0w, preferred_element_type=jnp.float32) + row(0)
    h0 = jnp.maximum(bn(h0, 1, 2), 0.0)
    x_start = h0

    # layer 1 (GAT) -> BN -> relu
    h1 = gat(h0, w1, att[:2 * heads], 3)
    out1 = jnp.maximum(bn(h1, 4, 5), 0.0)

    # layer 2 (GAT) -> BN -> + x_start + skip*out1 -> relu
    h2 = gat(out1, w2, att[2 * heads:], 6)
    h2 = bn(h2, 7, 8) + x_start + skip_coefficient * out1
    out2 = jnp.maximum(h2, 0.0)

    # x = sum(out) -> final Linear (padded to 128 lanes for a dense store)
    s = out1 + out2
    o_ref[...] = jnp.dot(s, lw_ref[...],
                         preferred_element_type=jnp.float32) + lb_ref[...]


# ----------------------------- model glue -----------------------------

def init_params(key, in_channels, hidden, out_channels, heads, num_layers):
    hdim = hidden * heads
    n_gat = num_layers - 2
    keys = iter(jax.random.split(key, 64))

    def nrm(shape, scale=0.1):
        return scale * jax.random.normal(next(keys), shape, jnp.float32)

    params = {
        "lin0_wt": nrm((in_channels, hdim)),
        "lin0_b": nrm((hdim,)),
        "linL_wt": nrm((hdim, out_channels)),
        "linL_b": nrm((out_channels,)),
        "bns": [],
        "gats": [],
    }
    for _ in range(n_gat + 1):
        params["bns"].append({"gamma": 1.0 + nrm((hdim,)), "beta": nrm((hdim,))})
    for _ in range(n_gat):
        params["gats"].append({
            "wt": nrm((hdim, hdim)),
            "att_src": nrm((heads, hidden)),
            "att_dst": nrm((heads, hidden)),
            "bias": nrm((hdim,)),
        })
    return params


def _folded_att(gp, heads, hidden):
    """Block att matrices folded through W: a_src/a_dst computed from layer input."""
    hdim = heads * hidden
    asT = jnp.zeros((heads, hdim), jnp.float32)
    adT = jnp.zeros((heads, hdim), jnp.float32)
    for h in range(heads):
        asT = asT.at[h, h * hidden:(h + 1) * hidden].set(gp["att_src"][h])
        adT = adT.at[h, h * hidden:(h + 1) * hidden].set(gp["att_dst"][h])
    return jnp.concatenate([asT, adT], axis=0) @ gp["wt"].T          # (2H, hdim)


def gat_skip_forward(params, x, adj, *, skip_coefficient, heads, hidden):
    """Single fused pallas_call for the full forward (num_layers=4 -> 2 GAT layers)."""
    assert len(params["gats"]) == 2, "fused kernel is specialized to 2 GAT layers"
    n, in_channels = x.shape
    hdim = heads * hidden
    out_channels = params["linL_wt"].shape[1]

    # additive edge mask (0 on edges, -1e30 elsewhere) and per-head lane masks
    mask = jnp.where(adj > 0.0, 0.0, MASK_VAL).astype(jnp.float32)               # (N, N)
    hmask = jnp.repeat(jnp.eye(heads, dtype=jnp.float32), hidden, axis=1)        # (H, hdim)

    # packed operands (8 total instead of 21)
    wstack = jnp.concatenate([params["lin0_wt"],
                              params["gats"][0]["wt"],
                              params["gats"][1]["wt"]], axis=0)                  # (8+2*hdim, hdim)
    att = jnp.concatenate([_folded_att(params["gats"][0], heads, hidden),
                           _folded_att(params["gats"][1], heads, hidden)], 0)    # (4H, hdim)
    vecs = jnp.stack([params["lin0_b"],
                      params["bns"][0]["gamma"], params["bns"][0]["beta"],
                      params["gats"][0]["bias"],
                      params["bns"][1]["gamma"], params["bns"][1]["beta"],
                      params["gats"][1]["bias"],
                      params["bns"][2]["gamma"], params["bns"][2]["beta"]], 0)   # (9, hdim)
    lw_pad = jnp.zeros((hdim, OUT_PAD), jnp.float32).at[:, :out_channels].set(
        params["linL_wt"])
    lb_pad = jnp.zeros((1, OUT_PAD), jnp.float32).at[0, :out_channels].set(
        params["linL_b"])

    args = (x, mask, wstack, att, vecs, hmask, lw_pad, lb_pad)
    kern = functools.partial(_fused_kernel, heads=heads, hidden=hidden,
                             in_channels=in_channels,
                             skip_coefficient=skip_coefficient)
    out = pl.pallas_call(
        kern,
        out_shape=jax.ShapeDtypeStruct((n, OUT_PAD), jnp.float32),
        in_specs=[_vmem()] * len(args),
        out_specs=_vmem(),
    )(*args)
    return out[:, :out_channels]


# ----------------------------- pure-JAX reference -----------------------------

def reference_forward(params, x, adj, *, skip_coefficient, heads, hidden):
    HP = lax.Precision.HIGHEST   # f32-accurate reference matmuls on any backend

    def lin(v, wt, b):
        return jnp.dot(v, wt, precision=HP) + b

    def bn(v, p):
        mean = v.mean(0, keepdims=True)
        var = jnp.square(v - mean).mean(0, keepdims=True)
        return (v - mean) / jnp.sqrt(var + EPS) * p["gamma"] + p["beta"]

    def gat(v, gp):
        xp = jnp.dot(v, gp["wt"], precision=HP)
        cols = []
        for hh in range(heads):
            xh = xp[:, hh * hidden:(hh + 1) * hidden]
            a_s = (xh * gp["att_src"][hh]).sum(1, keepdims=True)
            a_d = (xh * gp["att_dst"][hh]).sum(1, keepdims=True)
            lg = a_d + a_s.T
            lg = jnp.where(lg >= 0, lg, NEG_SLOPE * lg)
            lg = jnp.where(adj > 0, lg, -jnp.inf)
            at = jax.nn.softmax(lg, axis=1)
            cols.append(jnp.dot(at, xh, precision=HP))
        return jnp.concatenate(cols, 1) + gp["bias"]

    h = jax.nn.relu(bn(lin(x, params["lin0_wt"], params["lin0_b"]),
                       params["bns"][0]))
    x_start = h
    outs = []
    for k, gp in enumerate(params["gats"]):
        li = k + 1
        h = bn(gat(h, gp), params["bns"][li])
        if li % 2 == 0:
            h = h + x_start + skip_coefficient * outs[li - 2]
        h = jax.nn.relu(h)
        outs.append(h)
    return lin(sum(outs), params["linL_wt"], params["linL_b"])


if __name__ == "__main__":
    # module hyperparameters
    in_channels, hidden_channels, out_channels = 8, 8, 8
    num_layers, in_head, out_head = 4, 4, 4
    dropout, skip_coefficient = 0.0, 0.5   # dropout=0 -> identity
    N = 64                                 # number of graph nodes

    key = jax.random.PRNGKey(0)
    kp, kx, ke1, ke2 = jax.random.split(key, 4)
    params = init_params(kp, in_channels, hidden_channels, out_channels,
                         in_head, num_layers)

    x = jax.random.normal(kx, (N, in_channels), jnp.float32)

    # synthetic edge_index (2, E): bidirectional ring + random edges
    idx = jnp.arange(N)
    src = jnp.concatenate([idx, (idx + 1) % N,
                           jax.random.randint(ke1, (4 * N,), 0, N)])
    dst = jnp.concatenate([(idx + 1) % N, idx,
                           jax.random.randint(ke2, (4 * N,), 0, N)])
    edge_index = jnp.stack([src, dst])

    # glue: dense adjacency adj[dst, src]; remove self loops, then add them
    # back (mirrors PyG GATConv add_self_loops behavior)
    eye = jnp.eye(N, dtype=jnp.float32)
    adj = jnp.zeros((N, N), jnp.float32).at[edge_index[1], edge_index[0]].set(1.0)
    adj = adj * (1.0 - eye) + eye

    y = gat_skip_forward(params, x, adj, skip_coefficient=skip_coefficient,
                         heads=in_head, hidden=hidden_channels)
    y = jax.block_until_ready(y)

    y_ref = reference_forward(params, x, adj, skip_coefficient=skip_coefficient,
                              heads=in_head, hidden=hidden_channels)
    assert y.shape == (N, out_channels)
    # exact softmax normalization + f32 MXU operands; tolerance leaves margin
    # for MXU multi-pass f32 matmul vs XLA-reference accumulation differences.
    err = float(jnp.max(jnp.abs(y - y_ref)))
    assert jnp.allclose(y, y_ref, rtol=1e-2, atol=1e-2), err
    print("KERNEL_OK")
</pallas_src>

<mosaic_0001>
module attributes {stable_mosaic.version = 11 : i64} {
  func.func @_fused_kernel(%arg0: memref<64x8xf32, #tpu.memory_space<vmem>>, %arg1: memref<64x64xf32, #tpu.memory_space<vmem>>, %arg2: memref<72x32xf32, #tpu.memory_space<vmem>>, %arg3: memref<16x32xf32, #tpu.memory_space<vmem>>, %arg4: memref<9x32xf32, #tpu.memory_space<vmem>>, %arg5: memref<4x32xf32, #tpu.memory_space<vmem>>, %arg6: memref<32x128xf32, #tpu.memory_space<vmem>>, %arg7: memref<1x128xf32, #tpu.memory_space<vmem>>, %arg8: memref<64x128xf32, #tpu.memory_space<vmem>>) attributes {dimension_semantics = [], scalar_prefetch = 0 : i64, scratch_operands = 0 : i64, tpu.core_type = #tpu.core_type<tc>} {
    %c0 = arith.constant 0 : index
    %c0_0 = arith.constant 0 : index
    %0 = vector.load %arg1[%c0, %c0_0] : memref<64x64xf32, #tpu.memory_space<vmem>>, vector<64x64xf32>
    %c0_1 = arith.constant 0 : index
    %c0_2 = arith.constant 0 : index
    %1 = vector.load %arg2[%c0_1, %c0_2] : memref<72x32xf32, #tpu.memory_space<vmem>>, vector<72x32xf32>
    %c0_3 = arith.constant 0 : index
    %c0_4 = arith.constant 0 : index
    %2 = vector.load %arg3[%c0_3, %c0_4] : memref<16x32xf32, #tpu.memory_space<vmem>>, vector<16x32xf32>
    %c0_5 = arith.constant 0 : index
    %c0_6 = arith.constant 0 : index
    %3 = vector.load %arg4[%c0_5, %c0_6] : memref<9x32xf32, #tpu.memory_space<vmem>>, vector<9x32xf32>
    %c0_7 = arith.constant 0 : index
    %c0_8 = arith.constant 0 : index
    %4 = vector.load %arg5[%c0_7, %c0_8] : memref<4x32xf32, #tpu.memory_space<vmem>>, vector<4x32xf32>
    %5 = vector.extract_strided_slice %1 {offsets = [0, 0], sizes = [8, 32], strides = [1, 1]} : vector<72x32xf32> to vector<8x32xf32>
    %6 = vector.extract_strided_slice %1 {offsets = [8, 0], sizes = [32, 32], strides = [1, 1]} : vector<72x32xf32> to vector<32x32xf32>
    %7 = vector.extract_strided_slice %1 {offsets = [40, 0], sizes = [32, 32], strides = [1, 1]} : vector<72x32xf32> to vector<32x32xf32>
    %c0_9 = arith.constant 0 : index
    %c0_10 = arith.constant 0 : index
    %8 = vector.load %arg0[%c0_9, %c0_10] : memref<64x8xf32, #tpu.memory_space<vmem>>, vector<64x8xf32>
    %cst = arith.constant dense<0.000000e+00> : vector<64x32xf32>
    %9 = tpu.matmul %8, %5, %cst {dimension_numbers = #tpu.dot_dimension_numbers<[1], [0], [0], [1], [0, 0, 1, 1], [], []>} : vector<64x8xf32>, vector<8x32xf32>, vector<64x32xf32> -> vector<64x32xf32>
    %10 = vector.extract_strided_slice %3 {offsets = [0, 0], sizes = [1, 32], strides = [1, 1]} : vector<9x32xf32> to vector<1x32xf32>
    %11 = vector.broadcast %10 : vector<1x32xf32> to vector<64x32xf32>
    %12 = arith.addf %9, %11 : vector<64x32xf32>
    %cst_11 = arith.constant dense<0.000000e+00> : vector<32xf32>
    %13 = vector.multi_reduction <add>, %12, %cst_11 [0] : vector<64x32xf32> to vector<32xf32>
    %14 = vector.shape_cast %13 : vector<32xf32> to vector<1x32xf32>
    %cst_12 = arith.constant 6.400000e+01 : f32
    %15 = vector.broadcast %cst_12 : f32 to vector<1x32xf32>
    %16 = arith.divf %14, %15 : vector<1x32xf32>
    %17 = vector.broadcast %16 : vector<1x32xf32> to vector<64x32xf32>
    %18 = arith.subf %12, %17 : vector<64x32xf32>
    %19 = arith.mulf %18, %18 : vector<64x32xf32>
    %cst_13 = arith.constant dense<0.000000e+00> : vector<32xf32>
    %20 = vector.multi_reduction <add>, %19, %cst_13 [0] : vector<64x32xf32> to vector<32xf32>
    %21 = vector.shape_cast %20 : vector<32xf32> to vector<1x32xf32>
    %cst_14 = arith.constant 6.400000e+01 : f32
    %22 = vector.broadcast %cst_14 : f32 to vector<1x32xf32>
    %23 = arith.divf %21, %22 : vector<1x32xf32>
    %24 = vector.broadcast %16 : vector<1x32xf32> to vector<64x32xf32>
    %25 = arith.subf %12, %24 : vector<64x32xf32>
    %cst_15 = arith.constant 9.99999974E-6 : f32
    %26 = vector.broadcast %cst_15 : f32 to vector<1x32xf32>
    %27 = arith.addf %23, %26 : vector<1x32xf32>
    %28 = math.rsqrt %27 : vector<1x32xf32>
    %29 = vector.broadcast %28 : vector<1x32xf32> to vector<64x32xf32>
    %30 = arith.mulf %25, %29 : vector<64x32xf32>
    %31 = vector.extract_strided_slice %3 {offsets = [1, 0], sizes = [1, 32], strides = [1, 1]} : vector<9x32xf32> to vector<1x32xf32>
    %32 = vector.broadcast %31 : vector<1x32xf32> to vector<64x32xf32>
    %33 = arith.mulf %30, %32 : vector<64x32xf32>
    %34 = vector.extract_strided_slice %3 {offsets = [2, 0], sizes = [1, 32], strides = [1, 1]} : vector<9x32xf32> to vector<1x32xf32>
    %35 = vector.broadcast %34 : vector<1x32xf32> to vector<64x32xf32>
    %36 = arith.addf %33, %35 : vector<64x32xf32>
    %cst_16 = arith.constant 0.000000e+00 : f32
    %37 = vector.broadcast %cst_16 : f32 to vector<64x32xf32>
    %38 = arith.maximumf %36, %37 : vector<64x32xf32>
    %39 = vector.extract_strided_slice %2 {offsets = [0, 0], sizes = [8, 32], strides = [1, 1]} : vector<16x32xf32> to vector<8x32xf32>
    %cst_17 = arith.constant dense<0.000000e+00> : vector<64x32xf32>
    %40 = tpu.matmul %38, %6, %cst_17 {dimension_numbers = #tpu.dot_dimension_numbers<[1], [0], [0], [1], [0, 0, 1, 1], [], []>} : vector<64x32xf32>, vector<32x32xf32>, vector<64x32xf32> -> vector<64x32xf32>
    %cst_18 = arith.constant dense<0.000000e+00> : vector<8x64xf32>
    %41 = tpu.matmul %39, %38, %cst_18 {dimension_numbers = #tpu.dot_dimension_numbers<[1], [1], [0], [0], [0, 0, 1, 0], [], []>} : vector<8x32xf32>, vector<64x32xf32>, vector<8x64xf32> -> vector<8x64xf32>
    %42 = vector.extract_strided_slice %41 {offsets = [0, 0], sizes = [4, 64], strides = [1, 1]} : vector<8x64xf32> to vector<4x64xf32>
    %43 = vector.extract_strided_slice %41 {offsets = [4, 0], sizes = [4, 64], strides = [1, 1]} : vector<8x64xf32> to vector<4x64xf32>
    %44 = vector.shape_cast %43 : vector<4x64xf32> to vector<4x64x1xf32>
    %45 = vector.shape_cast %42 : vector<4x64xf32> to vector<4x1x64xf32>
    %46 = vector.broadcast %44 : vector<4x64x1xf32> to vector<4x64x64xf32>
    %47 = vector.broadcast %45 : vector<4x1x64xf32> to vector<4x64x64xf32>
    %48 = arith.addf %46, %47 : vector<4x64x64xf32>
    %cst_19 = arith.constant 2.000000e-01 : f32
    %49 = vector.broadcast %cst_19 : f32 to vector<4x64x64xf32>
    %50 = arith.mulf %49, %48 : vector<4x64x64xf32>
    %51 = arith.maximumf %48, %50 : vector<4x64x64xf32>
    %52 = vector.shape_cast %0 : vector<64x64xf32> to vector<1x64x64xf32>
    %53 = vector.broadcast %52 : vector<1x64x64xf32> to vector<4x64x64xf32>
    %54 = arith.addf %51, %53 : vector<4x64x64xf32>
    %cst_20 = arith.constant dense<0xFF800000> : vector<4x64xf32>
    %55 = vector.multi_reduction <maximumf>, %54, %cst_20 [2] : vector<4x64x64xf32> to vector<4x64xf32>
    %56 = vector.shape_cast %55 : vector<4x64xf32> to vector<4x64x1xf32>
    %57 = vector.broadcast %56 : vector<4x64x1xf32> to vector<4x64x64xf32>
    %58 = arith.subf %54, %57 : vector<4x64x64xf32>
    %59 = math.exp %58 : vector<4x64x64xf32>
    %cst_21 = arith.constant dense<0.000000e+00> : vector<4x64xf32>
    %60 = vector.multi_reduction <add>, %59, %cst_21 [2] : vector<4x64x64xf32> to vector<4x64xf32>
    %61 = vector.shape_cast %60 : vector<4x64xf32> to vector<4x64x1xf32>
    %62 = vector.broadcast %61 : vector<4x64x1xf32> to vector<4x64x64xf32>
    %63 = arith.divf %59, %62 : vector<4x64x64xf32>
    %64 = vector.extract_strided_slice %4 {offsets = [0, 0], sizes = [1, 32], strides = [1, 1]} : vector<4x32xf32> to vector<1x32xf32>
    %65 = vector.broadcast %64 : vector<1x32xf32> to vector<64x32xf32>
    %66 = arith.mulf %40, %65 : vector<64x32xf32>
    %67 = vector.extract_strided_slice %63 {offsets = [0, 0, 0], sizes = [1, 64, 64], strides = [1, 1, 1]} : vector<4x64x64xf32> to vector<1x64x64xf32>
    %68 = vector.shape_cast %67 : vector<1x64x64xf32> to vector<64x64xf32>
    %cst_22 = arith.constant dense<0.000000e+00> : vector<64x32xf32>
    %69 = tpu.matmul %68, %66, %cst_22 {dimension_numbers = #tpu.dot_dimension_numbers<[1], [0], [0], [1], [0, 0, 1, 1], [], []>} : vector<64x64xf32>, vector<64x32xf32>, vector<64x32xf32> -> vector<64x32xf32>
    %70 = vector.extract_strided_slice %4 {offsets = [1, 0], sizes = [1, 32], strides = [1, 1]} : vector<4x32xf32> to vector<1x32xf32>
    %71 = vector.broadcast %70 : vector<1x32xf32> to vector<64x32xf32>
    %72 = arith.mulf %40, %71 : vector<64x32xf32>
    %73 = vector.extract_strided_slice %63 {offsets = [1, 0, 0], sizes = [1, 64, 64], strides = [1, 1, 1]} : vector<4x64x64xf32> to vector<1x64x64xf32>
    %74 = vector.shape_cast %73 : vector<1x64x64xf32> to vector<64x64xf32>
    %cst_23 = arith.constant dense<0.000000e+00> : vector<64x32xf32>
    %75 = tpu.matmul %74, %72, %cst_23 {dimension_numbers = #tpu.dot_dimension_numbers<[1], [0], [0], [1], [0, 0, 1, 1], [], []>} : vector<64x64xf32>, vector<64x32xf32>, vector<64x32xf32> -> vector<64x32xf32>
    %76 = arith.addf %69, %75 : vector<64x32xf32>
    %77 = vector.extract_strided_slice %4 {offsets = [2, 0], sizes = [1, 32], strides = [1, 1]} : vector<4x32xf32> to vector<1x32xf32>
    %78 = vector.broadcast %77 : vector<1x32xf32> to vector<64x32xf32>
    %79 = arith.mulf %40, %78 : vector<64x32xf32>
    %80 = vector.extract_strided_slice %63 {offsets = [2, 0, 0], sizes = [1, 64, 64], strides = [1, 1, 1]} : vector<4x64x64xf32> to vector<1x64x64xf32>
    %81 = vector.shape_cast %80 : vector<1x64x64xf32> to vector<64x64xf32>
    %cst_24 = arith.constant dense<0.000000e+00> : vector<64x32xf32>
    %82 = tpu.matmul %81, %79, %cst_24 {dimension_numbers = #tpu.dot_dimension_numbers<[1], [0], [0], [1], [0, 0, 1, 1], [], []>} : vector<64x64xf32>, vector<64x32xf32>, vector<64x32xf32> -> vector<64x32xf32>
    %83 = arith.addf %76, %82 : vector<64x32xf32>
    %84 = vector.extract_strided_slice %4 {offsets = [3, 0], sizes = [1, 32], strides = [1, 1]} : vector<4x32xf32> to vector<1x32xf32>
    %85 = vector.broadcast %84 : vector<1x32xf32> to vector<64x32xf32>
    %86 = arith.mulf %40, %85 : vector<64x32xf32>
    %87 = vector.extract_strided_slice %63 {offsets = [3, 0, 0], sizes = [1, 64, 64], strides = [1, 1, 1]} : vector<4x64x64xf32> to vector<1x64x64xf32>
    %88 = vector.shape_cast %87 : vector<1x64x64xf32> to vector<64x64xf32>
    %cst_25 = arith.constant dense<0.000000e+00> : vector<64x32xf32>
    %89 = tpu.matmul %88, %86, %cst_25 {dimension_numbers = #tpu.dot_dimension_numbers<[1], [0], [0], [1], [0, 0, 1, 1], [], []>} : vector<64x64xf32>, vector<64x32xf32>, vector<64x32xf32> -> vector<64x32xf32>
    %90 = arith.addf %83, %89 : vector<64x32xf32>
    %91 = vector.extract_strided_slice %3 {offsets = [3, 0], sizes = [1, 32], strides = [1, 1]} : vector<9x32xf32> to vector<1x32xf32>
    %92 = vector.broadcast %91 : vector<1x32xf32> to vector<64x32xf32>
    %93 = arith.addf %90, %92 : vector<64x32xf32>
    %cst_26 = arith.constant dense<0.000000e+00> : vector<32xf32>
    %94 = vector.multi_reduction <add>, %93, %cst_26 [0] : vector<64x32xf32> to vector<32xf32>
    %95 = vector.shape_cast %94 : vector<32xf32> to vector<1x32xf32>
    %cst_27 = arith.constant 6.400000e+01 : f32
    %96 = vector.broadcast %cst_27 : f32 to vector<1x32xf32>
    %97 = arith.divf %95, %96 : vector<1x32xf32>
    %98 = vector.broadcast %97 : vector<1x32xf32> to vector<64x32xf32>
    %99 = arith.subf %93, %98 : vector<64x32xf32>
    %100 = arith.mulf %99, %99 : vector<64x32xf32>
    %cst_28 = arith.constant dense<0.000000e+00> : vector<32xf32>
    %101 = vector.multi_reduction <add>, %100, %cst_28 [0] : vector<64x32xf32> to vector<32xf32>
    %102 = vector.shape_cast %101 : vector<32xf32> to vector<1x32xf32>
    %cst_29 = arith.constant 6.400000e+01 : f32
    %103 = vector.broadcast %cst_29 : f32 to vector<1x32xf32>
    %104 = arith.divf %102, %103 : vector<1x32xf32>
    %105 = vector.broadcast %97 : vector<1x32xf32> to vector<64x32xf32>
    %106 = arith.subf %93, %105 : vector<64x32xf32>
    %cst_30 = arith.constant 9.99999974E-6 : f32
    %107 = vector.broadcast %cst_30 : f32 to vector<1x32xf32>
    %108 = arith.addf %104, %107 : vector<1x32xf32>
    %109 = math.rsqrt %108 : vector<1x32xf32>
    %110 = vector.broadcast %109 : vector<1x32xf32> to vector<64x32xf32>
    %111 = arith.mulf %106, %110 : vector<64x32xf32>
    %112 = vector.extract_strided_slice %3 {offsets = [4, 0], sizes = [1, 32], strides = [1, 1]} : vector<9x32xf32> to vector<1x32xf32>
    %113 = vector.broadcast %112 : vector<1x32xf32> to vector<64x32xf32>
    %114 = arith.mulf %111, %113 : vector<64x32xf32>
    %115 = vector.extract_strided_slice %3 {offsets = [5, 0], sizes = [1, 32], strides = [1, 1]} : vector<9x32xf32> to vector<1x32xf32>
    %116 = vector.broadcast %115 : vector<1x32xf32> to vector<64x32xf32>
    %117 = arith.addf %114, %116 : vector<64x32xf32>
    %cst_31 = arith.constant 0.000000e+00 : f32
    %118 = vector.broadcast %cst_31 : f32 to vector<64x32xf32>
    %119 = arith.maximumf %117, %118 : vector<64x32xf32>
    %120 = vector.extract_strided_slice %2 {offsets = [8, 0], sizes = [8, 32], strides = [1, 1]} : vector<16x32xf32> to vector<8x32xf32>
    %cst_32 = arith.constant dense<0.000000e+00> : vector<64x32xf32>
    %121 = tpu.matmul %119, %7, %cst_32 {dimension_numbers = #tpu.dot_dimension_numbers<[1], [0], [0], [1], [0, 0, 1, 1], [], []>} : vector<64x32xf32>, vector<32x32xf32>, vector<64x32xf32> -> vector<64x32xf32>
    %cst_33 = arith.constant dense<0.000000e+00> : vector<8x64xf32>
    %122 = tpu.matmul %120, %119, %cst_33 {dimension_numbers = #tpu.dot_dimension_numbers<[1], [1], [0], [0], [0, 0, 1, 0], [], []>} : vector<8x32xf32>, vector<64x32xf32>, vector<8x64xf32> -> vector<8x64xf32>
    %123 = vector.extract_strided_slice %122 {offsets = [0, 0], sizes = [4, 64], strides = [1, 1]} : vector<8x64xf32> to vector<4x64xf32>
    %124 = vector.extract_strided_slice %122 {offsets = [4, 0], sizes = [4, 64], strides = [1, 1]} : vector<8x64xf32> to vector<4x64xf32>
    %125 = vector.shape_cast %124 : vector<4x64xf32> to vector<4x64x1xf32>
    %126 = vector.shape_cast %123 : vector<4x64xf32> to vector<4x1x64xf32>
    %127 = vector.broadcast %125 : vector<4x64x1xf32> to vector<4x64x64xf32>
    %128 = vector.broadcast %126 : vector<4x1x64xf32> to vector<4x64x64xf32>
    %129 = arith.addf %127, %128 : vector<4x64x64xf32>
    %cst_34 = arith.constant 2.000000e-01 : f32
    %130 = vector.broadcast %cst_34 : f32 to vector<4x64x64xf32>
    %131 = arith.mulf %130, %129 : vector<4x64x64xf32>
    %132 = arith.maximumf %129, %131 : vector<4x64x64xf32>
    %133 = vector.shape_cast %0 : vector<64x64xf32> to vector<1x64x64xf32>
    %134 = vector.broadcast %133 : vector<1x64x64xf32> to vector<4x64x64xf32>
    %135 = arith.addf %132, %134 : vector<4x64x64xf32>
    %cst_35 = arith.constant dense<0xFF800000> : vector<4x64xf32>
    %136 = vector.multi_reduction <maximumf>, %135, %cst_35 [2] : vector<4x64x64xf32> to vector<4x64xf32>
    %137 = vector.shape_cast %136 : vector<4x64xf32> to vector<4x64x1xf32>
    %138 = vector.broadcast %137 : vector<4x64x1xf32> to vector<4x64x64xf32>
    %139 = arith.subf %135, %138 : vector<4x64x64xf32>
    %140 = math.exp %139 : vector<4x64x64xf32>
    %cst_36 = arith.constant dense<0.000000e+00> : vector<4x64xf32>
    %141 = vector.multi_reduction <add>, %140, %cst_36 [2] : vector<4x64x64xf32> to vector<4x64xf32>
    %142 = vector.shape_cast %141 : vector<4x64xf32> to vector<4x64x1xf32>
    %143 = vector.broadcast %142 : vector<4x64x1xf32> to vector<4x64x64xf32>
    %144 = arith.divf %140, %143 : vector<4x64x64xf32>
    %145 = vector.extract_strided_slice %4 {offsets = [0, 0], sizes = [1, 32], strides = [1, 1]} : vector<4x32xf32> to vector<1x32xf32>
    %146 = vector.broadcast %145 : vector<1x32xf32> to vector<64x32xf32>
    %147 = arith.mulf %121, %146 : vector<64x32xf32>
    %148 = vector.extract_strided_slice %144 {offsets = [0, 0, 0], sizes = [1, 64, 64], strides = [1, 1, 1]} : vector<4x64x64xf32> to vector<1x64x64xf32>
    %149 = vector.shape_cast %148 : vector<1x64x64xf32> to vector<64x64xf32>
    %cst_37 = arith.constant dense<0.000000e+00> : vector<64x32xf32>
    %150 = tpu.matmul %149, %147, %cst_37 {dimension_numbers = #tpu.dot_dimension_numbers<[1], [0], [0], [1], [0, 0, 1, 1], [], []>} : vector<64x64xf32>, vector<64x32xf32>, vector<64x32xf32> -> vector<64x32xf32>
    %151 = vector.extract_strided_slice %4 {offsets = [1, 0], sizes = [1, 32], strides = [1, 1]} : vector<4x32xf32> to vector<1x32xf32>
    %152 = vector.broadcast %151 : vector<1x32xf32> to vector<64x32xf32>
    %153 = arith.mulf %121, %152 : vector<64x32xf32>
    %154 = vector.extract_strided_slice %144 {offsets = [1, 0, 0], sizes = [1, 64, 64], strides = [1, 1, 1]} : vector<4x64x64xf32> to vector<1x64x64xf32>
    %155 = vector.shape_cast %154 : vector<1x64x64xf32> to vector<64x64xf32>
    %cst_38 = arith.constant dense<0.000000e+00> : vector<64x32xf32>
    %156 = tpu.matmul %155, %153, %cst_38 {dimension_numbers = #tpu.dot_dimension_numbers<[1], [0], [0], [1], [0, 0, 1, 1], [], []>} : vector<64x64xf32>, vector<64x32xf32>, vector<64x32xf32> -> vector<64x32xf32>
    %157 = arith.addf %150, %156 : vector<64x32xf32>
    %158 = vector.extract_strided_slice %4 {offsets = [2, 0], sizes = [1, 32], strides = [1, 1]} : vector<4x32xf32> to vector<1x32xf32>
    %159 = vector.broadcast %158 : vector<1x32xf32> to vector<64x32xf32>
    %160 = arith.mulf %121, %159 : vector<64x32xf32>
    %161 = vector.extract_strided_slice %144 {offsets = [2, 0, 0], sizes = [1, 64, 64], strides = [1, 1, 1]} : vector<4x64x64xf32> to vector<1x64x64xf32>
    %162 = vector.shape_cast %161 : vector<1x64x64xf32> to vector<64x64xf32>
    %cst_39 = arith.constant dense<0.000000e+00> : vector<64x32xf32>
    %163 = tpu.matmul %162, %160, %cst_39 {dimension_numbers = #tpu.dot_dimension_numbers<[1], [0], [0], [1], [0, 0, 1, 1], [], []>} : vector<64x64xf32>, vector<64x32xf32>, vector<64x32xf32> -> vector<64x32xf32>
    %164 = arith.addf %157, %163 : vector<64x32xf32>
    %165 = vector.extract_strided_slice %4 {offsets = [3, 0], sizes = [1, 32], strides = [1, 1]} : vector<4x32xf32> to vector<1x32xf32>
    %166 = vector.broadcast %165 : vector<1x32xf32> to vector<64x32xf32>
    %167 = arith.mulf %121, %166 : vector<64x32xf32>
    %168 = vector.extract_strided_slice %144 {offsets = [3, 0, 0], sizes = [1, 64, 64], strides = [1, 1, 1]} : vector<4x64x64xf32> to vector<1x64x64xf32>
    %169 = vector.shape_cast %168 : vector<1x64x64xf32> to vector<64x64xf32>
    %cst_40 = arith.constant dense<0.000000e+00> : vector<64x32xf32>
    %170 = tpu.matmul %169, %167, %cst_40 {dimension_numbers = #tpu.dot_dimension_numbers<[1], [0], [0], [1], [0, 0, 1, 1], [], []>} : vector<64x64xf32>, vector<64x32xf32>, vector<64x32xf32> -> vector<64x32xf32>
    %171 = arith.addf %164, %170 : vector<64x32xf32>
    %172 = vector.extract_strided_slice %3 {offsets = [6, 0], sizes = [1, 32], strides = [1, 1]} : vector<9x32xf32> to vector<1x32xf32>
    %173 = vector.broadcast %172 : vector<1x32xf32> to vector<64x32xf32>
    %174 = arith.addf %171, %173 : vector<64x32xf32>
    %cst_41 = arith.constant dense<0.000000e+00> : vector<32xf32>
    %175 = vector.multi_reduction <add>, %174, %cst_41 [0] : vector<64x32xf32> to vector<32xf32>
    %176 = vector.shape_cast %175 : vector<32xf32> to vector<1x32xf32>
    %cst_42 = arith.constant 6.400000e+01 : f32
    %177 = vector.broadcast %cst_42 : f32 to vector<1x32xf32>
    %178 = arith.divf %176, %177 : vector<1x32xf32>
    %179 = vector.broadcast %178 : vector<1x32xf32> to vector<64x32xf32>
    %180 = arith.subf %174, %179 : vector<64x32xf32>
    %181 = arith.mulf %180, %180 : vector<64x32xf32>
    %cst_43 = arith.constant dense<0.000000e+00> : vector<32xf32>
    %182 = vector.multi_reduction <add>, %181, %cst_43 [0] : vector<64x32xf32> to vector<32xf32>
    %183 = vector.shape_cast %182 : vector<32xf32> to vector<1x32xf32>
    %cst_44 = arith.constant 6.400000e+01 : f32
    %184 = vector.broadcast %cst_44 : f32 to vector<1x32xf32>
    %185 = arith.divf %183, %184 : vector<1x32xf32>
    %186 = vector.broadcast %178 : vector<1x32xf32> to vector<64x32xf32>
    %187 = arith.subf %174, %186 : vector<64x32xf32>
    %cst_45 = arith.constant 9.99999974E-6 : f32
    %188 = vector.broadcast %cst_45 : f32 to vector<1x32xf32>
    %189 = arith.addf %185, %188 : vector<1x32xf32>
    %190 = math.rsqrt %189 : vector<1x32xf32>
    %191 = vector.broadcast %190 : vector<1x32xf32> to vector<64x32xf32>
    %192 = arith.mulf %187, %191 : vector<64x32xf32>
    %193 = vector.extract_strided_slice %3 {offsets = [7, 0], sizes = [1, 32], strides = [1, 1]} : vector<9x32xf32> to vector<1x32xf32>
    %194 = vector.broadcast %193 : vector<1x32xf32> to vector<64x32xf32>
    %195 = arith.mulf %192, %194 : vector<64x32xf32>
    %196 = vector.extract_strided_slice %3 {offsets = [8, 0], sizes = [1, 32], strides = [1, 1]} : vector<9x32xf32> to vector<1x32xf32>
    %197 = vector.broadcast %196 : vector<1x32xf32> to vector<64x32xf32>
    %198 = arith.addf %195, %197 : vector<64x32xf32>
    %199 = arith.addf %198, %38 : vector<64x32xf32>
    %cst_46 = arith.constant 5.000000e-01 : f32
    %200 = vector.broadcast %cst_46 : f32 to vector<64x32xf32>
    %201 = arith.mulf %200, %119 : vector<64x32xf32>
    %202 = arith.addf %199, %201 : vector<64x32xf32>
    %cst_47 = arith.constant 0.000000e+00 : f32
    %203 = vector.broadcast %cst_47 : f32 to vector<64x32xf32>
    %204 = arith.maximumf %202, %203 : vector<64x32xf32>
    %205 = arith.addf %119, %204 : vector<64x32xf32>
    %c0_48 = arith.constant 0 : index
    %c0_49 = arith.constant 0 : index
    %206 = vector.load %arg6[%c0_48, %c0_49] : memref<32x128xf32, #tpu.memory_space<vmem>>, vector<32x128xf32>
    %cst_50 = arith.constant dense<0.000000e+00> : vector<64x128xf32>
    %207 = tpu.matmul %205, %206, %cst_50 {dimension_numbers = #tpu.dot_dimension_numbers<[1], [0], [0], [1], [0, 0, 1, 1], [], []>} : vector<64x32xf32>, vector<32x128xf32>, vector<64x128xf32> -> vector<64x128xf32>
    %c0_51 = arith.constant 0 : index
    %c0_52 = arith.constant 0 : index
    %208 = vector.load %arg7[%c0_51, %c0_52] : memref<1x128xf32, #tpu.memory_space<vmem>>, vector<1x128xf32>
    %209 = vector.broadcast %208 : vector<1x128xf32> to vector<64x128xf32>
    %210 = arith.addf %207, %209 : vector<64x128xf32>
    %c0_53 = arith.constant 0 : index
    %c0_54 = arith.constant 0 : index
    %211 = vector.load %arg8[%c0_53, %c0_54] : memref<64x128xf32, #tpu.memory_space<vmem>>, vector<64x128xf32>
    tpu.vector_store %arg8[%c0_53, %c0_54], %210 {strides = array<i32>} : memref<64x128xf32, #tpu.memory_space<vmem>>, vector<64x128xf32>,
    return
  }
}

</mosaic_0001>

<bundles_post_ra>
// kernel: tpu_custom_call.1
= control target key start
LH: loop header
LB: loop body
LE: loop exit
PB: predicated region body
PF: predicated region fallthrough
CT: control target
= control target key end

     0   :  { %vm61_vm0 = vcmask 64512   ;;  %s6797_s0 = inlined_call_operand.vmem [shape: f32[64,8], index: 0, kind: input, shape index: {}]   ;;  %s6798_s1 = inlined_call_operand.vmem [shape: f32[64,64], index: 1, kind: input, shape index: {}]   ;;  %s6799_s2 = inlined_call_operand.vmem [shape: f32[72,32], index: 2, kind: input, shape index: {}]   ;;  %s6800_s3 = inlined_call_operand.vmem [shape: f32[16,32], index: 3, kind: input, shape index: {}]   ;;  %s6801_s4 = inlined_call_operand.vmem [shape: f32[9,32], index: 4, kind: input, shape index: {}]   ;;  %s6802_s5 = inlined_call_operand.vmem [shape: f32[4,32], index: 5, kind: input, shape index: {}]   ;;  %s6803_s6 = inlined_call_operand.vmem [shape: f32[32,128], index: 6, kind: input, shape index: {}]   ;;  %s6804_s7 = inlined_call_operand.vmem [shape: f32[1,128], index: 7, kind: input, shape index: {}]   ;;  %s6805_s8 = inlined_call_operand.hbm [shape: f32[64,128], index: 8, kind: output, shape index: {}]  }
   0x1   :  { %v38_v0 = vld [vmem:[%s6799_s2] sm:$0xff] }
   0x2   :  { %v52_v1 = vld [vmem:[%s6797_s0] sm:$0xff]  ;;  %101 = vmatpush.msra.mxu0 %v38_v0 }
   0x3   :  { %3604 = vmatmul.msk.f32.vlgmr.msra.gmra.mxu0 %vm61_vm0, %v52_v1 }
   0x4   :  { %13 = vsyncpa [#allocation3], 0  ;;  %v53_v2 = vld [vmem:[%s6797_s0 + $0x8] sm:$0xff]  ;;  %v54_v3 = vld [vmem:[%s6797_s0 + $0x10] sm:$0xff]  ;;  %vm127_vm1 = vcmask 261120   ;;  %v4068_v22 = vmov 64.0  }
   0x5   :  { %v55_v4 = vld [vmem:[%s6797_s0 + $0x18] sm:$0xff]  ;;  %v56_v5 = vld [vmem:[%s6797_s0 + $0x20] sm:$0xff]  ;;  %v57_v6 = vld [vmem:[%s6797_s0 + $0x28] sm:$0xff]  ;;  %3768 = vrcp.f32 %v4068_v22  ;;  %vm664_vm6 = vcmask 523264   ;;  %s3592_s19 = sshll.u32 %s6805_s8, 4  ;;  %s4070_s20 = smov 128   ;;  %s3593_s19 = int_to_ptr.hbm [resolvable:$true] %s3592_s19 }
   0x6   :  { %v58_v7 = vld [vmem:[%s6797_s0 + $0x30] sm:$0xff]  ;;  %v59_v8 = vld [vmem:[%s6797_s0 + $0x38] sm:$0xff]  ;;  %v4155_v14 = vld [vmem:[%s6801_s4] sm:$0xff]  ;;  %s4071_s21 = smov 8  }
   0x7   :  { %v60_v15 = vperm.slane %v4155_v14, 0 }
   0xb   :  { %3605 = vmatmul.msk.f32.gmra.mxu0 %vm61_vm0, %v53_v2  ;;  %v3769_v33 = vpop.eup %3768 }
   0xc   :  { %v150_v38 = vmul.f32 64.0, %v3769_v33  ;;  %vm154_vm2 = vweird.f32 %v3769_v33 }
   0xe   :  { %v151_v44 = vsub.f32 1.0, %v150_v38 }
  0x10   :  { %v152_v47 = vmul.f32 %v3769_v33, %v151_v44 }
  0x12   :  { %v153_v50 = vadd.f32 %v3769_v33, %v152_v47 }
  0x13   :  { %3606 = vmatmul.msk.f32.gmra.mxu0 %vm61_vm0, %v54_v3 }
  0x14   :  { %v4166_v53 = vsel %vm154_vm2, %v3769_v33, %v153_v50 }
  0x1b   :  { %3607 = vmatmul.msk.f32.gmra.mxu0 %vm61_vm0, %v55_v4 }
  0x23   :  { %3608 = vmatmul.msk.f32.gmra.mxu0 %vm61_vm0, %v56_v5 }
  0x2b   :  { %3609 = vmatmul.msk.f32.gmra.mxu0 %vm61_vm0, %v57_v6 }
  0x33   :  { %3610 = vmatmul.msk.f32.gmra.mxu0 %vm61_vm0, %v58_v7 }
  0x3b   :  { %3611 = vmatmul.msk.f32.gmra.mxu0 %vm61_vm0, %v59_v8 }
  0x80   :  { %v103_v9 = vpop.f32.mrf.mxu0 }
  0x81   :  { %v104_v18 = vadd.f32 %v103_v9, %v60_v15 }
  0x83   :  { %v128_v23 = vsel %vm127_vm1, %v104_v18, 0.0 }
  0x88   :  { %v106_v10 = vpop.f32.mrf.mxu0 }
  0x89   :  { %v107_v17 = vadd.f32 %v106_v10, %v60_v15 }
  0x8b   :  { %v129_v20 = vsel %vm127_vm1, %v107_v17, 0.0 }
  0x8c   :  { %v130_v26 = vadd.f32 %v129_v20, %v128_v23 }
  0x90   :  { %v109_v11 = vpop.f32.mrf.mxu0 }
  0x91   :  { %v110_v19 = vadd.f32 %v109_v11, %v60_v15 }
  0x93   :  { %v131_v24 = vsel %vm127_vm1, %v110_v19, 0.0 }
  0x94   :  { %v132_v30 = vadd.f32 %v131_v24, %v130_v26  ;;  %v42_v26 = vld [vmem:[%s6799_s2 + $0x20] sm:$0xff] }
  0x95   :  { %276 = vmatpush.msra.mxu1 %v42_v26 }
  0x98   :  { %v112_v12 = vpop.f32.mrf.mxu0 }
  0x99   :  { %v113_v21 = vadd.f32 %v112_v12, %v60_v15 }
  0x9b   :  { %v133_v28 = vsel %vm127_vm1, %v113_v21, 0.0 }
  0x9c   :  { %v134_v34 = vadd.f32 %v133_v28, %v132_v30 }
  0xa0   :  { %v115_v13 = vpop.f32.mrf.mxu0 }
  0xa1   :  { %v116_v25 = vadd.f32 %v115_v13, %v60_v15 }
  0xa3   :  { %v135_v31 = vsel %vm127_vm1, %v116_v25, 0.0 }
  0xa4   :  { %v136_v36 = vadd.f32 %v135_v31, %v134_v34  ;;  %v39_v31 = vld [vmem:[%s6799_s2 + $0x8] sm:$0xff] }
  0xa8   :  { %v118_v16 = vpop.f32.mrf.mxu0 }
  0xa9   :  { %v119_v29 = vadd.f32 %v118_v16, %v60_v15 }
  0xab   :  { %v137_v35 = vsel %vm127_vm1, %v119_v29, 0.0 }
  0xac   :  { %v138_v39 = vadd.f32 %v137_v35, %v136_v36 }
  0xb0   :  { %v121_v27 = vpop.f32.mrf.mxu0 }
  0xb1   :  { %v122_v32 = vadd.f32 %v121_v27, %v60_v15  ;;  %v41_v27 = vld [vmem:[%s6799_s2 + $0x18] sm:$0xff] }
  0xb2   :  { %277 = vmatpush.msra.mxu1 %v41_v27 }
  0xb3   :  { %v139_v37 = vsel %vm127_vm1, %v122_v32, 0.0 }
  0xb4   :  { %v140_v42 = vadd.f32 %v139_v37, %v138_v39 }
  0xb8   :  { %v124_v40 = vpop.f32.mrf.mxu0 }
  0xb9   :  { %v125_v41 = vadd.f32 %v124_v40, %v60_v15 }
  0xbb   :  { %v141_v43 = vsel %vm127_vm1, %v125_v41, 0.0 }
  0xbc   :  { %v142_v45 = vadd.f32 %v141_v43, %v140_v42  ;;  %v214_v42 = vperm.slane %v4155_v14, 1 }
  0xbe   :  { %v143_v46 = vrot.slane %v142_v45, 4 }
  0xc0   :  { %v144_v48 = vadd.f32 %v143_v46, %v142_v45  ;;  %v223_v46 = vperm.slane %v4155_v14, 2 }
  0xc2   :  { %v145_v49 = vrot.slane %v144_v48, 2 }
  0xc4   :  { %v146_v51 = vadd.f32 %v145_v49, %v144_v48 }
  0xc6   :  { %v147_v52 = vrot.slane %v146_v51, 1 }
  0xc8   :  { %v148_v54 = vadd.f32 %v147_v52, %v146_v51 }
  0xca   :  { %v156_v55 = vmul.f32 %v4166_v53, %v148_v54 }
  0xcc   :  { %v157_v56 = vsub.f32 %v104_v18, %v156_v55  ;;  %v158_v57 = vsub.f32 %v107_v17, %v156_v55  ;;  %v4169_v58 = vsub.f32 %v110_v19, %v156_v55  ;;  %v4171_v59 = vsub.f32 %v113_v21, %v156_v55 }
  0xcd   :  { %v4173_v60 = vsub.f32 %v116_v25, %v156_v55  ;;  %v162_v0 = vsub.f32 %v119_v29, %v156_v55  ;;  %v163_v5 = vsub.f32 %v122_v32, %v156_v55  ;;  %v164_v9 = vsub.f32 %v125_v41, %v156_v55  ;;  %v40_v29 = vld [vmem:[%s6799_s2 + $0x10] sm:$0xff] }
  0xce   :  { %v165_v61 = vmul.f32 %v157_v56, %v157_v56  ;;  %v166_v62 = vmul.f32 %v158_v57, %v158_v57  ;;  %v167_v63 = vmul.f32 %v4169_v58, %v4169_v58  ;;  %v168_v1 = vmul.f32 %v4171_v59, %v4171_v59  ;;  %278 = vmatpush.msra.mxu1 %v40_v29 }
  0xcf   :  { %v169_v6 = vmul.f32 %v4173_v60, %v4173_v60  ;;  %v170_v10 = vmul.f32 %v162_v0, %v162_v0  ;;  %v171_v13 = vmul.f32 %v163_v5, %v163_v5  ;;  %v172_v17 = vmul.f32 %v164_v9, %v164_v9 }
  0xd0   :  { %v173_v2 = vsel %vm127_vm1, %v165_v61, 0.0  ;;  %v174_v3 = vsel %vm127_vm1, %v166_v62, 0.0  ;;  %v176_v7 = vsel %vm127_vm1, %v167_v63, 0.0  ;;  %v178_v11 = vsel %vm127_vm1, %v168_v1, 0.0  ;;  %279 = vmatpush.msra.mxu1 %v39_v31  ;;  %v51_v31 = vld [vmem:[%s6802_s5] sm:$0xf] }
  0xd1   :  { %v175_v4 = vadd.f32 %v174_v3, %v173_v2  ;;  %v180_v15 = vsel %vm127_vm1, %v169_v6, 0.0  ;;  %v182_v18 = vsel %vm127_vm1, %v170_v10, 0.0  ;;  %v184_v20 = vsel %vm127_vm1, %v171_v13, 0.0  ;;  %v47_v13 = vld [vmem:[%s6800_s3] sm:$0xff] }
  0xd2   :  { %v186_v22 = vsel %vm127_vm1, %v172_v17, 0.0 }
  0xd3   :  { %v177_v8 = vadd.f32 %v176_v7, %v175_v4 }
  0xd5   :  { %v179_v12 = vadd.f32 %v178_v11, %v177_v8 }
  0xd7   :  { %v181_v16 = vadd.f32 %v180_v15, %v179_v12  ;;  %v329_v15 = vlaneseq }
  0xd9   :  { %v183_v19 = vadd.f32 %v182_v18, %v181_v16  ;;  %v4259_v16 = vshrl.u32 %v329_v15, 7 }
  0xdb   :  { %v185_v21 = vadd.f32 %v184_v20, %v183_v19  ;;  %3724 = vset.pattern.permute.xlu2 %v4259_v16  ;;  %3722 = vset.pattern.permute.xlu0 %v4259_v16  ;;  %v4264_v17 = vadd.s32 8, %v4259_v16  ;;  %v4296_v29 = vadd.s32 16, %v4259_v16  ;;  %v4376_v15 = vadd.s32 40, %v4259_v16 }
  0xdd   :  { %v187_v23 = vadd.f32 %v186_v22, %v185_v21  ;;  %3723 = vset.pattern.permute.xlu1 %v4264_v17  ;;  %6846 = vst [vmem:[#allocation15_spill] sm:$0xff] %v4376_v15 }
  0xdf   :  { %v188_v24 = vrot.slane %v187_v23, 4 }
  0xe1   :  { %v189_v25 = vadd.f32 %v188_v24, %v187_v23 }
  0xe3   :  { %v190_v28 = vrot.slane %v189_v25, 2 }
  0xe5   :  { %v191_v30 = vadd.f32 %v190_v28, %v189_v25 }
  0xe7   :  { %v192_v32 = vrot.slane %v191_v30, 1 }
  0xe9   :  { %v193_v33 = vadd.f32 %v192_v32, %v191_v30  ;;  %v4304_v32 = vperm.slane %v51_v31, 2 }
  0xeb   :  { %v194_v34 = vmul.f32 %v193_v33, %v4166_v53  ;;  %v4306_v33 = vperm.slane %v51_v31, 1 }
  0xed   :  { %v195_v35 = vadd.f32 1e-05, %v194_v34  ;;  %6844 = vst [vmem:[#allocation13_spill] sm:$0xff] %v4306_v33  ;;  %v4308_v34 = vperm.slane %v51_v31, 0 }
  0xef   :  { %3770 = vrsqrt.f32 %v195_v35  ;;  %vm202_vm4 = vweird.f32 %v195_v35 }
  0xf5   :  { %v3771_v36 = vpop.eup %3770 }
  0xf6   :  { %v197_v37 = vmul.f32 %v3771_v36, %v195_v35  ;;  %vm203_vm3 = vweird.f32 %v3771_v36  ;;  %v4310_v35 = vperm.slane %v51_v31, 3 }
  0xf7   :  { %vm204_vm5 = vmor %vm202_vm4, %vm203_vm3 }
  0xf8   :  { %v198_v38 = vmul.f32 %v3771_v36, %v197_v37 }
  0xfa   :  { %v199_v39 = vmul.f32 0.5, %v198_v38 }
  0xfc   :  { %v200_v40 = vsub.f32 1.5, %v199_v39 }
  0xfe   :  { %v201_v41 = vmul.f32 %v3771_v36, %v200_v40 }
 0x100   :  { %v205_v43 = vsel %vm204_vm5, %v3771_v36, %v201_v41 }
 0x101   :  { %v213_v44 = vmul.f32 %v205_v43, %v164_v9  ;;  %v206_v45 = vmul.f32 %v205_v43, %v157_v56  ;;  %v212_v47 = vmul.f32 %v205_v43, %v163_v5  ;;  %v207_v48 = vmul.f32 %v205_v43, %v158_v57 }
 0x102   :  { %v211_v52 = vmul.f32 %v205_v43, %v162_v0  ;;  %v210_v62 = vmul.f32 %v205_v43, %v4173_v60  ;;  %v208_v14 = vmul.f32 %v205_v43, %v4169_v58  ;;  %v209_v56 = vmul.f32 %v205_v43, %v4171_v59 }
 0x103   :  { %v215_v49 = vmul.f32 %v214_v42, %v206_v45  ;;  %v222_v50 = vmul.f32 %v214_v42, %v213_v44  ;;  %v221_v51 = vmul.f32 %v214_v42, %v212_v47  ;;  %v216_v61 = vmul.f32 %v214_v42, %v207_v48 }
 0x104   :  { %v220_v3 = vmul.f32 %v214_v42, %v211_v52  ;;  %v219_v4 = vmul.f32 %v214_v42, %v210_v62  ;;  %v217_v5 = vmul.f32 %v214_v42, %v208_v14  ;;  %v218_v9 = vmul.f32 %v214_v42, %v209_v56 }
 0x105   :  { %v224_v54 = vadd.f32 %v223_v46, %v215_v49  ;;  %v231_v55 = vadd.f32 %v223_v46, %v222_v50  ;;  %v230_v2 = vadd.f32 %v223_v46, %v221_v51  ;;  %v225_v0 = vadd.f32 %v223_v46, %v216_v61 }
 0x106   :  { %v229_v60 = vadd.f32 %v223_v46, %v220_v3  ;;  %v228_v8 = vadd.f32 %v223_v46, %v219_v4  ;;  %v226_v59 = vadd.f32 %v223_v46, %v217_v5  ;;  %v227_v10 = vadd.f32 %v223_v46, %v218_v9 }
 0x107   :  { %v4205_v63 = vmax.f32 %v224_v54, 0.0  ;;  %v4207_v1 = vmax.f32 %v231_v55, 0.0  ;;  %v4215_v57 = vmax.f32 %v230_v2, 0.0  ;;  %v4219_v6 = vmax.f32 %v225_v0, 0.0 }
 0x108   :  { %v4221_v7 = vmax.f32 %v229_v60, 0.0  ;;  %v4227_v58 = vmax.f32 %v228_v8, 0.0  ;;  %v4231_v11 = vmax.f32 %v226_v59, 0.0  ;;  %v4233_v12 = vmax.f32 %v227_v10, 0.0 }
 0x109   :  { %6836 = vst [vmem:[#allocation5_spill] sm:$0xff] %v4205_v63  ;;  %3612 = vmatmul.msk.f32.vlgmr.msra.gmra.mxu1 %vm127_vm1, %v4205_v63  ;;  %3620 = vmatpush.xpose.msk.msrb.mxu0 %vm127_vm1, %v4207_v1  ;;  %v4329_v50 = vadd.s32 24, %v4259_v16 }
 0x10a   :  { %6837 = vst [vmem:[#allocation6_spill] sm:$0xff] %v4207_v1 }
 0x10b   :  { %6838 = vst [vmem:[#allocation7_spill] sm:$0xff] %v4215_v57 }
 0x10c   :  { %6839 = vst [vmem:[#allocation8_spill] sm:$0xff] %v4219_v6 }
 0x10d   :  { %3621 = vmatpush.xpose.msk.msrb.mxu0 %vm127_vm1, %v4215_v57  ;;  %6840 = vst [vmem:[#allocation9_spill] sm:$0xff] %v4221_v7 }
 0x10e   :  { %6841 = vst [vmem:[#allocation10_spill] sm:$0xff] %v4227_v58 }
 0x10f   :  { %6842 = vst [vmem:[#allocation11_spill] sm:$0xff] %v4231_v11 }
 0x110   :  { %6843 = vst [vmem:[#allocation12_spill] sm:$0xff] %v4233_v12 }
 0x111   :  { %3613 = vmatmul.msk.f32.gmra.mxu1 %vm127_vm1, %v4219_v6  ;;  %3622 = vmatpush.xpose.msk.msrb.mxu0 %vm127_vm1, %v4221_v7  ;;  %6845 = vst [vmem:[#allocation14_spill] sm:$0xff] %v4329_v50 }
 0x115   :  { %3623 = vmatpush.xpose.msk.msrb.mxu0 %vm127_vm1, %v4227_v58 }
 0x119   :  { %3614 = vmatmul.msk.f32.gmra.mxu1 %vm127_vm1, %v4231_v11  ;;  %3624 = vmatpush.xpose.msk.msrb.mxu0 %vm127_vm1, %v4233_v12 }
 0x11d   :  { %3625 = vmatpush.xpose.msk.msrb.mxu0 %vm127_vm1, %v4231_v11 }
 0x121   :  { %3615 = vmatmul.msk.f32.gmra.mxu1 %vm127_vm1, %v4233_v12  ;;  %3626 = vmatpush.xpose.msk.msrb.mxu0 %vm127_vm1, %v4219_v6 }
 0x125   :  { %3627 = vmatpush.xpose.msk.msrb.mxu0 %vm127_vm1, %v4205_v63 }
 0x128   :  { %3628 = vmatmul.msk.f32.vlgmr.msrb.gmra.mxu0 %vm127_vm1, %v47_v13 }
 0x129   :  { %3616 = vmatmul.msk.f32.gmra.mxu1 %vm127_vm1, %v4227_v58 }
 0x131   :  { %3617 = vmatmul.msk.f32.gmra.mxu1 %vm127_vm1, %v4221_v7 }
 0x139   :  { %3618 = vmatmul.msk.f32.gmra.mxu1 %vm127_vm1, %v4215_v57 }
 0x141   :  { %3619 = vmatmul.msk.f32.gmra.mxu1 %vm127_vm1, %v4207_v1 }
 0x186   :  { %v4267_v18 = vpop.f32.mrf.mxu1 }
 0x187   :  { %v1443_v9 = vmul.f32 %v4306_v33, %v4267_v18  ;;  %v1434_v59 = vmul.f32 %v4308_v34, %v4267_v18  ;;  %v1582_v10 = vmul.f32 %v4304_v32, %v4267_v18  ;;  %v1664_v13 = vmul.f32 %v4310_v35, %v4267_v18 }
 0x188   :  { %v4382_v18 = vadd.s32 32, %v4259_v16 }
 0x18a   :  { %6847 = vst [vmem:[#allocation16_spill] sm:$0xff] %v4382_v18 }
 0x18e   :  { %v4269_v19 = vpop.f32.mrf.mxu1 }
 0x18f   :  { %v1444_v60 = vmul.f32 %v4306_v33, %v4269_v19  ;;  %v1435_v4 = vmul.f32 %v4308_v34, %v4269_v19  ;;  %v1583_v5 = vmul.f32 %v4304_v32, %v4269_v19  ;;  %v1665_v8 = vmul.f32 %v4310_v35, %v4269_v19 }
 0x190   :  { %v4394_v19 = vadd.s32 56, %v4259_v16 }
 0x192   :  { %6848 = vst [vmem:[#allocation17_spill] sm:$0xff] %v4394_v19 }
 0x196   :  { %v4271_v20 = vpop.f32.mrf.mxu1 }
 0x197   :  { %v1445_v3 = vmul.f32 %v4306_v33, %v4271_v20  ;;  %v1436_v14 = vmul.f32 %v4308_v34, %v4271_v20  ;;  %v1584_v56 = vmul.f32 %v4304_v32, %v4271_v20  ;;  %v1666_v0 = vmul.f32 %v4310_v35, %v4271_v20 }
 0x198   :  { %v4406_v20 = vadd.s32 48, %v4259_v16 }
 0x19a   :  { %6849 = vst [vmem:[#allocation18_spill] sm:$0xff] %v4406_v20 }
 0x19e   :  { %v4273_v21 = vpop.f32.mrf.mxu1 }
 0x19f   :  { %v1446_v55 = vmul.f32 %v4306_v33, %v4273_v21  ;;  %v1437_v61 = vmul.f32 %v4308_v34, %v4273_v21  ;;  %v1585_v62 = vmul.f32 %v4304_v32, %v4273_v21  ;;  %v1667_v2 = vmul.f32 %v4310_v35, %v4273_v21 }
 0x1a5   :  { %v4275_v22 = vpop.f32.mrf.mxu0 }
 0x1a6   :  { %v4278_v23 = vperm.slane %v4275_v22, 4  ;;  %v4281_v24 = vperm.slane %v4275_v22, 6  ;;  %v293_v25 = vpop.f32.mrf.mxu1  ;;  %v4287_v26 = vperm.slane %v4275_v22, 5  ;;  %v4290_v27 = vperm.slane %v4275_v22, 7 }
 0x1a7   :  { %v1447_v49 = vmul.f32 %v4306_v33, %v293_v25  ;;  %v1438_v51 = vmul.f32 %v4308_v34, %v293_v25  ;;  %v1586_v52 = vmul.f32 %v4304_v32, %v293_v25  ;;  %v1668_v54 = vmul.f32 %v4310_v35, %v293_v25 }
 0x1a8   :  { %431 = vperm.xlu2 %3724, %v4281_v24   ;;  %339 = vperm.xlu1 %3723, %v4278_v23   ;;  %v525_v31 = vrot.slane %v4275_v22, 1 }
 0x1a9   :  { %333 = vperm.xlu0 %3722, %v4278_v23  }
 0x1ae   :  { %v296_v28 = vpop.f32.mrf.mxu1 }
 0x1af   :  { %v1448_v45 = vmul.f32 %v4306_v33, %v296_v28  ;;  %v1439_v46 = vmul.f32 %v4308_v34, %v296_v28  ;;  %v1587_v47 = vmul.f32 %v4304_v32, %v296_v28  ;;  %v1669_v48 = vmul.f32 %v4310_v35, %v296_v28 }
 0x1b0   :  { %480 = vperm.xlu2 %3724, %v4290_v27   ;;  %388 = vperm.xlu1 %3723, %v4287_v26   ;;  %v4423_v28 = vperm.slane %v4275_v22, 0 }
 0x1b1   :  { %382 = vperm.xlu0 %3722, %v4287_v26  }
 0x1b6   :  { %v299_v30 = vpop.f32.mrf.mxu1 }
 0x1b7   :  { %v1449_v41 = vmul.f32 %v4306_v33, %v299_v30  ;;  %v1440_v42 = vmul.f32 %v4308_v34, %v299_v30  ;;  %v1588_v43 = vmul.f32 %v4304_v32, %v299_v30  ;;  %v1670_v44 = vmul.f32 %v4310_v35, %v299_v30 }
 0x1b8   :  { %3727 = vset.pattern.permute.xlu2 %v4264_v17  ;;  %3726 = vset.pattern.permute.xlu1 %v4296_v29 }
 0x1b9   :  { %3725 = vset.pattern.permute.xlu0 %v4296_v29 }
 0x1be   :  { %v302_v36 = vpop.f32.mrf.mxu1 }
 0x1bf   :  { %v1589_v37 = vmul.f32 %v4304_v32, %v302_v36  ;;  %v1450_v38 = vmul.f32 %v4306_v33, %v302_v36  ;;  %v1441_v39 = vmul.f32 %v4308_v34, %v302_v36  ;;  %v1671_v40 = vmul.f32 %v4310_v35, %v302_v36 }
 0x1c0   :  { %437 = vperm.xlu2 %3727, %v4281_v24   ;;  %394 = vperm.xlu1 %3726, %v4287_v26  }
 0x1c1   :  { %345 = vperm.xlu0 %3725, %v4278_v23   ;;  %1483 = vmatpush.msra.mxu3 %v1450_v38 }
 0x1c2   :  { %1548 = vmatpush.msra.mxu2 %v1441_v39  ;;  %1622 = vmatpush.msra.mxu0 %v1589_v37 }
 0x1c3   :  { %1704 = vmatpush.msrb.mxu1 %v1671_v40  ;;  %1484 = vmatpush.msra.mxu3 %v1449_v41 }
 0x1c4   :  { %1549 = vmatpush.msra.mxu2 %v1440_v42  ;;  %1623 = vmatpush.msra.mxu0 %v1588_v43 }
 0x1c5   :  { %1705 = vmatpush.msrb.mxu1 %v1670_v44  ;;  %1485 = vmatpush.msra.mxu3 %v1448_v45  ;;  %v526_v44 = vrot.slane %v4275_v22, 2 }
 0x1c6   :  { %1550 = vmatpush.msra.mxu2 %v1439_v46  ;;  %1624 = vmatpush.msra.mxu0 %v1587_v47  ;;  %v30_v46 = vld [vmem:[%s6798_s1] sm:$0xff] }
 0x1c7   :  { %1706 = vmatpush.msrb.mxu1 %v1669_v48  ;;  %1486 = vmatpush.msra.mxu3 %v1447_v49 }
 0x1c8   :  { %1551 = vmatpush.msra.mxu2 %v1438_v51  ;;  %1625 = vmatpush.msra.mxu0 %v1586_v52 }
 0x1c9   :  { %1707 = vmatpush.msrb.mxu1 %v1668_v54  ;;  %3729 = vset.pattern.permute.xlu2 %v4329_v50 }
 0x1ca   :  { %3728 = vset.pattern.permute.xlu1 %v4264_v17  ;;  %3730 = vset.pattern.permute.xlu0 %v4329_v50 }
 0x1cb   :  { %1487 = vmatpush.msra.mxu3 %v1446_v55  ;;  %1552 = vmatpush.msra.mxu2 %v1437_v61  ;;  %v4441_v55 = vperm.slane %v526_v44, 0 }
 0x1cc   :  { %1626 = vmatpush.msra.mxu0 %v1585_v62  ;;  %1708 = vmatpush.msrb.mxu1 %v1667_v2 }
 0x1cd   :  { %1488 = vmatpush.msra.mxu3 %v1445_v3  ;;  %1553 = vmatpush.msra.mxu2 %v1436_v14 }
 0x1ce   :  { %1627 = vmatpush.msra.mxu0 %v1584_v56  ;;  %1709 = vmatpush.msrb.mxu1 %v1666_v0 }
 0x1cf   :  { %1489 = vmatpush.msra.mxu3 %v1444_v60  ;;  %1554 = vmatpush.msra.mxu2 %v1435_v4  ;;  %v31_v4 = vld [vmem:[%s6798_s1 + $0x8] sm:$0xff] }
 0x1d0   :  { %1628 = vmatpush.msra.mxu0 %v1583_v5  ;;  %1710 = vmatpush.msrb.mxu1 %v1665_v8 }
 0x1d1   :  { %1490 = vmatpush.msra.mxu3 %v1443_v9  ;;  %1555 = vmatpush.msra.mxu2 %v1434_v59 }
 0x1d2   :  { %1629 = vmatpush.msra.mxu0 %v1582_v10  ;;  %1711 = vmatpush.msrb.mxu1 %v1664_v13 }
 0x1d3   :  { %351 = vperm.xlu2 %3729, %v4278_v23   ;;  %486 = vperm.xlu1 %3728, %v4290_v27  }
 0x1d4   :  { %400 = vperm.xlu0 %3730, %v4287_v26  }
 0x1db   :  { %3732 = vset.pattern.permute.xlu2 %v4296_v29  ;;  %3731 = vset.pattern.permute.xlu1 %v4296_v29 }
 0x1dc   :  { %449 = vperm.xlu0 %3730, %v4281_v24  }
 0x1e3   :  { %492 = vperm.xlu2 %3732, %v4290_v27   ;;  %443 = vperm.xlu1 %3731, %v4281_v24  }
 0x1e4   :  { %3737 = vset.pattern.permute.xlu0 %v4376_v15 }
 0x1eb   :  { %3734 = vset.pattern.permute.xlu2 %v4382_v18  ;;  %3733 = vset.pattern.permute.xlu1 %v4382_v18 }
 0x1ec   :  { %412 = vperm.xlu0 %3737, %v4287_v26  }
 0x1f3   :  { %406 = vperm.xlu2 %3734, %v4287_v26   ;;  %357 = vperm.xlu1 %3733, %v4278_v23  }
 0x1f4   :  { %461 = vperm.xlu0 %3737, %v4281_v24  }
 0x1fb   :  { %3736 = vset.pattern.permute.xlu2 %v4376_v15  ;;  %3735 = vset.pattern.permute.xlu1 %v4329_v50 }
 0x1fc   :  { %510 = vperm.xlu0 %3737, %v4290_v27  }
 0x202   :  { %v432_v25 = vpop.permute.xlu2 %431 }
 0x203   :  { %363 = vperm.xlu2 %3736, %v4278_v23   ;;  %498 = vperm.xlu1 %3735, %v4290_v27  }
 0x204   :  { %3742 = vset.pattern.permute.xlu0 %v4394_v19 }
 0x20a   :  { %v481_v39 = vpop.permute.xlu2 %480 }
 0x20b   :  { %3739 = vset.pattern.permute.xlu2 %v4382_v18  ;;  %3738 = vset.pattern.permute.xlu1 %v4382_v18 }
 0x20c   :  { %375 = vperm.xlu0 %3742, %v4278_v23  }
 0x213   :  { %504 = vperm.xlu2 %3739, %v4290_v27   ;;  %455 = vperm.xlu1 %3738, %v4281_v24  }
 0x214   :  { %424 = vperm.xlu0 %3742, %v4287_v26  }
 0x21a   :  { %v438_v54 = vpop.permute.xlu2 %437 }
 0x21b   :  { %3741 = vset.pattern.permute.xlu2 %v4406_v20  ;;  %3740 = vset.pattern.permute.xlu1 %v4406_v20  ;;  %v334_v21 = vpop.permute.xlu0 %333  ;;  %v553_v56 = vadd.f32 %v4441_v55, %v438_v54 }
 0x21c   :  { %3743 = vset.pattern.permute.xlu0 %v4406_v20  ;;  %v536_v30 = vadd.f32 %v4423_v28, %v334_v21  ;;  %v552_v21 = vadd.f32 %v4441_v55, %v432_v25  ;;  %v4469_v25 = vld [vmem:[%s6798_s1 + $0x10] sm:$0xff] }
 0x21d   :  { %v585_v9 = vmul.f32 0.2, %v553_v56 }
 0x21e   :  { %v568_v36 = vmul.f32 0.2, %v536_v30 }
 0x220   :  { %v600_v41 = vmax.f32 %v536_v30, %v568_v36  ;;  %v617_v36 = vmax.f32 %v553_v56, %v585_v9 }
 0x222   :  { %v4439_v49 = vadd.f32 %v600_v41, %v30_v46 }
 0x223   :  { %418 = vperm.xlu2 %3741, %v4287_v26   ;;  %369 = vperm.xlu1 %3740, %v4278_v23   ;;  %v340_v23 = vpop.permute.xlu1 %339  ;;  %v383_v26 = vpop.permute.xlu0 %382 }
 0x224   :  { %467 = vperm.xlu0 %3743, %v4281_v24   ;;  %v537_v61 = vadd.f32 %v4423_v28, %v340_v23  ;;  %v665_v3 = vsel %vm664_vm6, %v4439_v49, -inf }
 0x226   :  { %v569_v0 = vmul.f32 0.2, %v537_v61 }
 0x228   :  { %v601_v23 = vmax.f32 %v537_v61, %v569_v0 }
 0x22b   :  { %3744 = vset.pattern.permute.xlu2 %v4394_v19  ;;  %516 = vperm.xlu1 %3740, %v4290_v27   ;;  %v389_v38 = vpop.permute.xlu1 %388 }
 0x22c   :  { %3745 = vset.pattern.permute.xlu0 %v4394_v19 }
 0x233   :  { %473 = vperm.xlu2 %3744, %v4281_v24   ;;  %3747 = vset.pattern.permute.xlu1 %v4259_v16  ;;  %v527_v24 = vrot.slane %v4275_v22, 3  ;;  %v346_v37 = vpop.permute.xlu0 %345  ;;  %v395_v52 = vpop.permute.xlu1 %394 }
 0x234   :  { %522 = vperm.xlu0 %3745, %v4290_v27   ;;  %v4428_v27 = vperm.slane %v525_v31, 0  ;;  %v538_v22 = vadd.f32 %v4423_v28, %v346_v37 }
 0x235   :  { %v4430_v40 = vperm.slane %v527_v24, 0 }
 0x236   :  { %v545_v42 = vadd.f32 %v4428_v27, %v389_v38  ;;  %v570_v5 = vmul.f32 0.2, %v538_v22  ;;  %v546_v54 = vadd.f32 %v4428_v27, %v395_v52 }
 0x237   :  { %v560_v43 = vadd.f32 %v4430_v40, %v481_v39  ;;  %v584_v39 = vmul.f32 0.2, %v552_v21 }
 0x238   :  { %v577_v47 = vmul.f32 0.2, %v545_v42  ;;  %v602_v30 = vmax.f32 %v538_v22, %v570_v5  ;;  %v578_v56 = vmul.f32 0.2, %v546_v54  ;;  %v4493_v5 = vld [vmem:[%s6798_s1 + $0x18] sm:$0xff] }
 0x239   :  { %v592_v51 = vmul.f32 0.2, %v560_v43 }
 0x23a   :  { %v609_v2 = vmax.f32 %v545_v42, %v577_v47  ;;  %v4474_v42 = vadd.f32 %v602_v30, %v4469_v25 }
 0x23b   :  { %3748 = vset.pattern.permute.xlu2 %v4259_v16  ;;  %v624_v14 = vmax.f32 %v560_v43, %v592_v51  ;;  %v352_v43 = vpop.permute.xlu2 %351  ;;  %v616_v51 = vmax.f32 %v552_v21, %v584_v39  ;;  %v610_v21 = vmax.f32 %v546_v54, %v578_v56 }
 0x23c   :  { %3746 = vset.pattern.permute.xlu0 %v4259_v16  ;;  %v544_v16 = vadd.f32 %v4428_v27, %v383_v26  ;;  %v4453_v8 = vadd.f32 %v609_v2, %v31_v4  ;;  %v671_v22 = vsel %vm664_vm6, %v4474_v42, -inf }
 0x23d   :  { %v4455_v10 = vadd.f32 %v624_v14, %v30_v46  ;;  %v4488_v0 = vadd.f32 %v616_v51, %v30_v46 }
 0x23e   :  { %v576_v45 = vmul.f32 0.2, %v544_v16  ;;  %v692_v24 = vsel %vm664_vm6, %v4453_v8, -inf }
 0x23f   :  { %v737_v38 = vsel %vm664_vm6, %v4455_v10, -inf }
 0x240   :  { %v608_v62 = vmax.f32 %v544_v16, %v576_v45  ;;  %v4471_v16 = vadd.f32 %v601_v23, %v31_v4  ;;  %v4476_v45 = vadd.f32 %v617_v36, %v31_v4  ;;  %v713_v23 = vsel %vm664_vm6, %v4488_v0, -inf }
 0x242   :  { %v4448_v60 = vadd.f32 %v608_v62, %v30_v46  ;;  %v668_v61 = vsel %vm664_vm6, %v4471_v16, -inf  ;;  %v716_v14 = vsel %vm664_vm6, %v4476_v45, -inf }
 0x243   :  { %v493_v9 = vpop.permute.xlu2 %492 }
 0x244   :  { %v689_v26 = vsel %vm664_vm6, %v4448_v60, -inf  ;;  %v562_v46 = vadd.f32 %v4430_v40, %v493_v9 }
 0x245   :  { %v487_v59 = vpop.permute.xlu1 %486 }
 0x246   :  { %v401_v48 = vpop.permute.xlu0 %400  ;;  %v561_v31 = vadd.f32 %v4430_v40, %v487_v59 }
 0x247   :  { %v547_v2 = vadd.f32 %v4428_v27, %v401_v48 }
 0x248   :  { %v593_v41 = vmul.f32 0.2, %v561_v31 }
 0x249   :  { %v579_v52 = vmul.f32 0.2, %v547_v2 }
 0x24a   :  { %v625_v62 = vmax.f32 %v561_v31, %v593_v41 }
 0x24c   :  { %v4495_v48 = vadd.f32 %v625_v62, %v31_v4 }
 0x24d   :  { %v407_v41 = vpop.permute.xlu2 %406 }
 0x24e   :  { %v450_v13 = vpop.permute.xlu0 %449  ;;  %v740_v4 = vsel %vm664_vm6, %v4495_v48, -inf }
 0x24f   :  { %v555_v37 = vadd.f32 %v4441_v55, %v450_v13  ;;  %v539_v13 = vadd.f32 %v4423_v28, %v352_v43 }
 0x251   :  { %v587_v44 = vmul.f32 0.2, %v555_v37  ;;  %v571_v36 = vmul.f32 0.2, %v539_v13 }
 0x253   :  { %v603_v43 = vmax.f32 %v539_v13, %v571_v36 }
 0x255   :  { %666 = vmax.xlane.f32.xlu1 %v665_v3  ;;  %v619_v3 = vmax.f32 %v555_v37, %v587_v44  ;;  %v444_v31 = vpop.permute.xlu1 %443  ;;  %v4511_v37 = vadd.f32 %v610_v21, %v4469_v25 }
 0x256   :  { %v554_v44 = vadd.f32 %v4441_v55, %v444_v31 }
 0x257   :  { %v4498_v59 = vadd.f32 %v619_v3, %v4493_v5  ;;  %v695_v51 = vsel %vm664_vm6, %v4511_v37, -inf }
 0x258   :  { %v586_v3 = vmul.f32 0.2, %v554_v44 }
 0x25a   :  { %v618_v13 = vmax.f32 %v554_v44, %v586_v3 }
 0x25c   :  { %690 = vmax.xlane.f32.xlu2 %v689_v26  ;;  %v611_v26 = vmax.f32 %v547_v2, %v579_v52 }
 0x25d   :  { %693 = vmax.xlane.f32.xlu1 %v692_v24  ;;  %v722_v24 = vsel %vm664_vm6, %v4498_v59, -inf  ;;  %v364_v9 = vpop.permute.xlu2 %363 }
 0x25e   :  { %738 = vmax.xlane.f32.xlu0 %v737_v38  ;;  %v4478_v47 = vpop.permute.xlu0 %412  ;;  %v594_v38 = vmul.f32 0.2, %v562_v46  ;;  %v4514_v39 = vadd.f32 %v611_v26, %v4493_v5  ;;  %v541_v26 = vadd.f32 %v4423_v28, %v364_v9 }
 0x260   :  { %v626_v54 = vmax.f32 %v562_v46, %v594_v38  ;;  %v698_v62 = vsel %vm664_vm6, %v4514_v39, -inf  ;;  %v573_v44 = vmul.f32 0.2, %v541_v26 }
 0x262   :  { %v4528_v52 = vadd.f32 %v626_v54, %v4469_v25  ;;  %v605_v9 = vmax.f32 %v541_v26, %v573_v44 }
 0x264   :  { %669 = vmax.xlane.f32.xlu2 %v668_v61  ;;  %v548_v61 = vadd.f32 %v4428_v27, %v407_v41 }
 0x265   :  { %672 = vmax.xlane.f32.xlu1 %v671_v22  ;;  %v358_v2 = vpop.permute.xlu1 %357 }
 0x266   :  { %717 = vmax.xlane.f32.xlu0 %v716_v14  ;;  %v4504_v30 = vpop.permute.xlu0 %461  ;;  %v4525_v14 = vadd.f32 %v603_v43, %v4493_v5  ;;  %v580_v56 = vmul.f32 0.2, %v548_v61  ;;  %v540_v21 = vadd.f32 %v4423_v28, %v358_v2  ;;  %v4543_v43 = vadd.f32 %v618_v13, %v4469_v25 }
 0x268   :  { %v612_v46 = vmax.f32 %v548_v61, %v580_v56  ;;  %v572_v38 = vmul.f32 0.2, %v540_v21  ;;  %v4551_v61 = vld [vmem:[%s6798_s1 + $0x38] sm:$0xff]  ;;  %v719_v56 = vsel %vm664_vm6, %v4543_v43, -inf }
 0x26c   :  { %714 = vmax.xlane.f32.xlu2 %v713_v23  ;;  %v674_v23 = vsel %vm664_vm6, %v4525_v14, -inf }
 0x26d   :  { %741 = vmax.xlane.f32.xlu1 %v740_v4  ;;  %v743_v4 = vsel %vm664_vm6, %v4528_v52, -inf }
 0x26e   :  { %723 = vmax.xlane.f32.xlu0 %v722_v24  ;;  %v4522_v22 = vpop.permute.xlu0 %510  ;;  %v4539_v24 = vld [vmem:[%s6798_s1 + $0x20] sm:$0xff] }
 0x274   :  { %696 = vmax.xlane.f32.xlu2 %v695_v51  ;;  %v4546_v51 = vadd.f32 %v612_v46, %v4539_v24 }
 0x275   :  { %699 = vmax.xlane.f32.xlu1 %v698_v62  ;;  %v499_v31 = vpop.permute.xlu1 %498  ;;  %v604_v62 = vmax.f32 %v540_v21, %v572_v38  ;;  %v4564_v21 = vld [vmem:[%s6798_s1 + $0x28] sm:$0xff] }
 0x276   :  { %v563_v2 = vadd.f32 %v4430_v40, %v499_v31  ;;  %v701_v25 = vsel %vm664_vm6, %v4546_v51, -inf  ;;  %v4573_v38 = vadd.f32 %v605_v9, %v4564_v21 }
 0x277   :  { %v4570_v31 = vadd.f32 %v604_v62, %v4539_v24 }
 0x27c   :  { %675 = vmax.xlane.f32.xlu2 %v674_v23 }
 0x27d   :  { %744 = vmax.xlane.f32.xlu1 %v743_v4  ;;  %v595_v4 = vmul.f32 0.2, %v563_v2 }
 0x27e   :  { %v376_v36 = vpop.permute.xlu0 %375 }
 0x27f   :  { %v543_v41 = vadd.f32 %v4423_v28, %v376_v36  ;;  %v627_v44 = vmax.f32 %v563_v2, %v595_v4 }
 0x281   :  { %v575_v54 = vmul.f32 0.2, %v543_v41 }
 0x283   :  { %v607_v3 = vmax.f32 %v543_v41, %v575_v54  ;;  %v549_v41 = vadd.f32 %v4428_v27, %v4478_v47  ;;  %v677_v54 = vsel %vm664_vm6, %v4570_v31, -inf }
 0x284   :  { %720 = vmax.xlane.f32.xlu2 %v719_v56  ;;  %v680_v56 = vsel %vm664_vm6, %v4573_v38, -inf }
 0x285   :  { %v456_v13 = vpop.permute.xlu1 %455  ;;  %702 = vmax.xlane.f32.xlu1 %v701_v25  ;;  %v4559_v23 = vadd.f32 %v607_v3, %v4551_v61  ;;  %v581_v62 = vmul.f32 0.2, %v549_v41  ;;  %v4582_v25 = vadd.f32 %v627_v44, %v4493_v5  ;;  %v557_v5 = vadd.f32 %v4441_v55, %v4504_v30  ;;  %v36_v30 = vld [vmem:[%s6798_s1 + $0x30] sm:$0xff] }
 0x286   :  { %v556_v46 = vadd.f32 %v4441_v55, %v456_v13  ;;  %v505_v13 = vpop.permute.xlu2 %504 }
 0x287   :  { %v686_v26 = vsel %vm664_vm6, %v4559_v23, -inf  ;;  %v564_v47 = vadd.f32 %v4430_v40, %v505_v13  ;;  %v746_v2 = vsel %vm664_vm6, %v4582_v25, -inf }
 0x288   :  { %v588_v36 = vmul.f32 0.2, %v556_v46  ;;  %687 = vmax.xlane.f32.xlu0 %v686_v26  ;;  %v613_v26 = vmax.f32 %v549_v41, %v581_v62  ;;  %v589_v62 = vmul.f32 0.2, %v557_v5 }
 0x28a   :  { %v620_v3 = vmax.f32 %v556_v46, %v588_v36  ;;  %v425_v36 = vpop.permute.xlu0 %424  ;;  %v4596_v41 = vadd.f32 %v613_v26, %v4564_v21  ;;  %v621_v26 = vmax.f32 %v557_v5, %v589_v62 }
 0x28b   :  { %v551_v57 = vadd.f32 %v4428_v27, %v425_v36 }
 0x28c   :  { %678 = vmax.xlane.f32.xlu2 %v677_v54  ;;  %v4585_v9 = vadd.f32 %v620_v3, %v4539_v24  ;;  %v596_v54 = vmul.f32 0.2, %v564_v47 }
 0x28d   :  { %681 = vmax.xlane.f32.xlu1 %v680_v56  ;;  %v583_v58 = vmul.f32 0.2, %v551_v57 }
 0x28e   :  { %v725_v46 = vsel %vm664_vm6, %v4585_v9, -inf  ;;  %v419_v3 = vpop.permute.xlu2 %418 }
 0x28f   :  { %v550_v1 = vadd.f32 %v4428_v27, %v419_v3  ;;  %v565_v27 = vadd.f32 %v4430_v40, %v4522_v22 }
 0x294   :  { %747 = vmax.xlane.f32.xlu2 %v746_v2  ;;  %v628_v2 = vmax.f32 %v564_v47, %v596_v54  ;;  %v582_v54 = vmul.f32 0.2, %v550_v1 }
 0x295   :  { %v370_v4 = vpop.permute.xlu1 %369  ;;  %726 = vmax.xlane.f32.xlu1 %v725_v46  ;;  %v704_v46 = vsel %vm664_vm6, %v4596_v41, -inf }
 0x296   :  { %v542_v44 = vadd.f32 %v4423_v28, %v370_v4  ;;  %v468_v7 = vpop.permute.xlu0 %467  ;;  %v4611_v3 = vadd.f32 %v628_v2, %v4539_v24  ;;  %v614_v5 = vmax.f32 %v550_v1, %v582_v54 }
 0x298   :  { %v574_v56 = vmul.f32 0.2, %v542_v44  ;;  %v749_v36 = vsel %vm664_vm6, %v4611_v3, -inf  ;;  %v4627_v1 = vadd.f32 %v614_v5, %v36_v30 }
 0x29a   :  { %v606_v13 = vmax.f32 %v542_v44, %v574_v56 }
 0x29c   :  { %705 = vmax.xlane.f32.xlu2 %v704_v46  ;;  %v4604_v28 = vadd.f32 %v606_v13, %v36_v30  ;;  %v4614_v13 = vadd.f32 %v621_v26, %v4564_v21  ;;  %v597_v26 = vmul.f32 0.2, %v565_v27 }
 0x29d   :  { %v517_v4 = vpop.permute.xlu1 %516 }
 0x29e   :  { %v566_v44 = vadd.f32 %v4430_v40, %v517_v4  ;;  %v683_v47 = vsel %vm664_vm6, %v4604_v28, -inf  ;;  %v615_v4 = vmax.f32 %v551_v57, %v583_v58  ;;  %v728_v2 = vsel %vm664_vm6, %v4614_v13, -inf }
 0x29f   :  { %684 = vmax.xlane.f32.xlu1 %v683_v47  ;;  %v558_v57 = vadd.f32 %v4441_v55, %v468_v7  ;;  %v474_v7 = vpop.permute.xlu2 %473 }
 0x2a0   :  { %v598_v56 = vmul.f32 0.2, %v566_v44  ;;  %v4630_v54 = vadd.f32 %v615_v4, %v4551_v61  ;;  %v559_v4 = vadd.f32 %v4441_v55, %v474_v7 }
 0x2a1   :  { %v590_v5 = vmul.f32 0.2, %v558_v57 }
 0x2a2   :  { %v630_v46 = vmax.f32 %v566_v44, %v598_v56  ;;  %v629_v56 = vmax.f32 %v565_v27, %v597_v26  ;;  %v591_v26 = vmul.f32 0.2, %v559_v4 }
 0x2a4   :  { %750 = vmax.xlane.f32.xlu2 %v749_v36  ;;  %v4620_v62 = vadd.f32 %v630_v46, %v36_v30  ;;  %v707_v46 = vsel %vm664_vm6, %v4627_v1, -inf  ;;  %v4643_v27 = vadd.f32 %v629_v56, %v4564_v21 }
 0x2a6   :  { %v523_v47 = vpop.permute.xlu0 %522  ;;  %v755_v24 = vsel %vm664_vm6, %v4620_v62, -inf }
 0x2a7   :  { %v567_v44 = vadd.f32 %v4430_v40, %v523_v47  ;;  %756 = vmax.xlane.f32.xlu0 %v755_v24  ;;  %729 = vmax.xlane.f32.xlu1 %v728_v2  ;;  %v710_v40 = vsel %vm664_vm6, %v4630_v54, -inf  ;;  %v622_v24 = vmax.f32 %v558_v57, %v590_v5  ;;  %v752_v2 = vsel %vm664_vm6, %v4643_v27, -inf }
 0x2a9   :  { %v599_v22 = vmul.f32 0.2, %v567_v44 }
 0x2ab   :  { %v631_v58 = vmax.f32 %v567_v44, %v599_v22  ;;  %v4648_v44 = vadd.f32 %v622_v24, %v36_v30  ;;  %v623_v22 = vmax.f32 %v559_v4, %v591_v26 }
 0x2ac   :  { %708 = vmax.xlane.f32.xlu2 %v707_v46 }
 0x2ad   :  { %v4636_v36 = vadd.f32 %v631_v58, %v4551_v61  ;;  %v731_v58 = vsel %vm664_vm6, %v4648_v44, -inf  ;;  %v4653_v21 = vadd.f32 %v623_v22, %v4551_v61 }
 0x2af   :  { %v758_v47 = vsel %vm664_vm6, %v4636_v36, -inf  ;;  %711 = vmax.xlane.f32.xlu1 %v710_v40  ;;  %v734_v56 = vsel %vm664_vm6, %v4653_v21, -inf }
 0x2b0   :  { %759 = vmax.xlane.f32.xlu0 %v758_v47 }
 0x2b4   :  { %753 = vmax.xlane.f32.xlu2 %v752_v2 }
 0x2bc   :  { %732 = vmax.xlane.f32.xlu2 %v731_v58 }
 0x2c4   :  { %735 = vmax.xlane.f32.xlu2 %v734_v56 }
 0x2c8   :  { %v667_v55 = vpop.xlane.xlu1 %666 }
 0x2c9   :  { %v761_v57 = vsub.f32 %v4439_v49, %v667_v55 }
 0x2cb   :  { %v793_v46 = vmul.f32 1.442695, %v761_v57 }
 0x2cd   :  { %3772 = vpow2.f32 %v793_v46 }
 0x2cf   :  { %v691_v40 = vpop.xlane.xlu2 %690 }
 0x2d0   :  { %v769_v30 = vsub.f32 %v4448_v60, %v691_v40  ;;  %v694_v5 = vpop.xlane.xlu1 %693 }
 0x2d1   :  { %v770_v7 = vsub.f32 %v4453_v8, %v694_v5  ;;  %v739_v24 = vpop.xlane.xlu0 %738 }
 0x2d2   :  { %v809_v47 = vmul.f32 1.442695, %v769_v30  ;;  %v785_v60 = vsub.f32 %v4455_v10, %v739_v24 }
 0x2d3   :  { %v4660_v4 = vpop.eup %3772  ;;  %v811_v2 = vmul.f32 1.442695, %v770_v7 }
 0x2d4   :  { %3774 = vpow2.f32 %v809_v47  ;;  %v857_v61 = vsel %vm664_vm6, %v4660_v4, 0.0  ;;  %v841_v55 = vmul.f32 1.442695, %v785_v60 }
 0x2d5   :  { %858 = vadd.xlane.f32.xlu1 %v857_v61  ;;  %3776 = vpow2.f32 %v811_v2 }
 0x2d7   :  { %v670_v26 = vpop.xlane.xlu2 %669 }
 0x2d8   :  { %v762_v49 = vsub.f32 %v4471_v16, %v670_v26  ;;  %v673_v22 = vpop.xlane.xlu1 %672 }
 0x2d9   :  { %v718_v57 = vpop.xlane.xlu0 %717  ;;  %v763_v7 = vsub.f32 %v4474_v42, %v673_v22 }
 0x2da   :  { %v4665_v58 = vpop.eup %3774  ;;  %v795_v56 = vmul.f32 1.442695, %v762_v49  ;;  %v778_v10 = vsub.f32 %v4476_v45, %v718_v57 }
 0x2db   :  { %v881_v8 = vsel %vm664_vm6, %v4665_v58, 0.0  ;;  %v4670_v40 = vpop.eup %3776 }
 0x2dc   :  { %3778 = vpow2.f32 %v795_v56  ;;  %882 = vadd.xlane.f32.xlu2 %v881_v8  ;;  %v884_v24 = vsel %vm664_vm6, %v4670_v40, 0.0  ;;  %v827_v2 = vmul.f32 1.442695, %v778_v10 }
 0x2dd   :  { %3780 = vpow2.f32 %v841_v55 }
 0x2df   :  { %v715_v46 = vpop.xlane.xlu2 %714 }
 0x2e0   :  { %v777_v30 = vsub.f32 %v4488_v0, %v715_v46  ;;  %v742_v16 = vpop.xlane.xlu1 %741  ;;  %v797_v0 = vmul.f32 1.442695, %v763_v7 }
 0x2e1   :  { %v786_v8 = vsub.f32 %v4495_v48, %v742_v16 }
 0x2e2   :  { %v4673_v5 = vpop.eup %3778  ;;  %v825_v47 = vmul.f32 1.442695, %v777_v30 }
 0x2e3   :  { %v860_v61 = vsel %vm664_vm6, %v4673_v5, 0.0  ;;  %v4681_v49 = vpop.eup %3780  ;;  %v843_v46 = vmul.f32 1.442695, %v786_v8 }
 0x2e4   :  { %3782 = vpow2.f32 %v825_v47  ;;  %861 = vadd.xlane.f32.xlu1 %v860_v61  ;;  %885 = vadd.xlane.f32.xlu2 %v884_v24  ;;  %v929_v57 = vsel %vm664_vm6, %v4681_v49, 0.0 }
 0x2e5   :  { %3784 = vpow2.f32 %v827_v2 }
 0x2e6   :  { %3786 = vpow2.f32 %v797_v0 }
 0x2e7   :  { %v697_v26 = vpop.xlane.xlu2 %696 }
 0x2e8   :  { %v771_v60 = vsub.f32 %v4511_v37, %v697_v26  ;;  %v700_v45 = vpop.xlane.xlu1 %699  ;;  %v724_v26 = vpop.xlane.xlu0 %723 }
 0x2e9   :  { %v772_v22 = vsub.f32 %v4514_v39, %v700_v45 }
 0x2ea   :  { %v4684_v56 = vpop.eup %3782  ;;  %v813_v42 = vmul.f32 1.442695, %v771_v60 }
 0x2eb   :  { %v905_v55 = vsel %vm664_vm6, %v4684_v56, 0.0  ;;  %v815_v37 = vmul.f32 1.442695, %v772_v22  ;;  %v4692_v10 = vpop.eup %3784 }
 0x2ec   :  { %3788 = vpow2.f32 %v813_v42  ;;  %906 = vadd.xlane.f32.xlu0 %v905_v55  ;;  %930 = vadd.xlane.f32.xlu1 %v929_v57  ;;  %v4695_v7 = vpop.eup %3786  ;;  %v908_v24 = vsel %vm664_vm6, %v4692_v10, 0.0  ;;  %v780_v55 = vsub.f32 %v4498_v59, %v724_v26 }
 0x2ed   :  { %3790 = vpow2.f32 %v815_v37 }
 0x2ee   :  { %3792 = vpow2.f32 %v843_v46 }
 0x2ef   :  { %v676_v30 = vpop.xlane.xlu2 %675 }
 0x2f0   :  { %v764_v47 = vsub.f32 %v4525_v14, %v676_v30  ;;  %v745_v39 = vpop.xlane.xlu1 %744  ;;  %v863_v14 = vsel %vm664_vm6, %v4695_v7, 0.0 }
 0x2f1   :  { %v787_v61 = vsub.f32 %v4528_v52, %v745_v39 }
 0x2f2   :  { %v4697_v48 = vpop.eup %3788  ;;  %v799_v16 = vmul.f32 1.442695, %v764_v47  ;;  %v831_v47 = vmul.f32 1.442695, %v780_v55 }
 0x2f3   :  { %v887_v2 = vsel %vm664_vm6, %v4697_v48, 0.0  ;;  %v845_v0 = vmul.f32 1.442695, %v787_v61  ;;  %v4706_v45 = vpop.eup %3790 }
 0x2f4   :  { %3794 = vpow2.f32 %v799_v16  ;;  %909 = vadd.xlane.f32.xlu0 %v908_v24  ;;  %888 = vadd.xlane.f32.xlu2 %v887_v2  ;;  %v4709_v22 = vpop.eup %3792  ;;  %v890_v30 = vsel %vm664_vm6, %v4706_v45, 0.0 }
 0x2f5   :  { %864 = vadd.xlane.f32.xlu1 %v863_v14  ;;  %3796 = vpow2.f32 %v845_v0 }
 0x2f7   :  { %v721_v60 = vpop.xlane.xlu2 %720 }
 0x2f8   :  { %v779_v52 = vsub.f32 %v4543_v43, %v721_v60  ;;  %v703_v42 = vpop.xlane.xlu1 %702  ;;  %v932_v43 = vsel %vm664_vm6, %v4709_v22, 0.0 }
 0x2f9   :  { %v773_v37 = vsub.f32 %v4546_v51, %v703_v42 }
 0x2fa   :  { %v4711_v8 = vpop.eup %3794  ;;  %v829_v57 = vmul.f32 1.442695, %v779_v52 }
 0x2fb   :  { %v866_v46 = vsel %vm664_vm6, %v4711_v8, 0.0  ;;  %v817_v39 = vmul.f32 1.442695, %v773_v37  ;;  %v4721_v16 = vpop.eup %3796 }
 0x2fc   :  { %3798 = vpow2.f32 %v829_v57  ;;  %867 = vadd.xlane.f32.xlu2 %v866_v46  ;;  %891 = vadd.xlane.f32.xlu0 %v890_v30  ;;  %v935_v26 = vsel %vm664_vm6, %v4721_v16, 0.0 }
 0x2fd   :  { %933 = vadd.xlane.f32.xlu1 %v932_v43  ;;  %3800 = vpow2.f32 %v831_v47 }
 0x2fe   :  { %3802 = vpow2.f32 %v817_v39 }
 0x2ff   :  { %v679_v59 = vpop.xlane.xlu2 %678 }
 0x300   :  { %v765_v51 = vsub.f32 %v4570_v31, %v679_v59  ;;  %v682_v61 = vpop.xlane.xlu1 %681 }
 0x301   :  { %v766_v14 = vsub.f32 %v4573_v38, %v682_v61 }
 0x302   :  { %v4724_v24 = vpop.eup %3798  ;;  %v801_v2 = vmul.f32 1.442695, %v765_v51 }
 0x303   :  { %v911_v0 = vsel %vm664_vm6, %v4724_v24, 0.0  ;;  %v803_v60 = vmul.f32 1.442695, %v766_v14  ;;  %v4731_v31 = vpop.eup %3800 }
 0x304   :  { %3804 = vpow2.f32 %v801_v2  ;;  %936 = vadd.xlane.f32.xlu2 %v935_v26  ;;  %v4734_v57 = vpop.eup %3802  ;;  %v914_v43 = vsel %vm664_vm6, %v4731_v31, 0.0 }
 0x305   :  { %912 = vadd.xlane.f32.xlu1 %v911_v0  ;;  %3806 = vpow2.f32 %v803_v60 }
 0x307   :  { %v748_v52 = vpop.xlane.xlu2 %747 }
 0x308   :  { %v788_v42 = vsub.f32 %v4582_v25, %v748_v52  ;;  %v727_v55 = vpop.xlane.xlu1 %726  ;;  %v893_v25 = vsel %vm664_vm6, %v4734_v57, 0.0 }
 0x309   :  { %v781_v46 = vsub.f32 %v4585_v9, %v727_v55 }
 0x30a   :  { %v4736_v37 = vpop.eup %3804  ;;  %v847_v38 = vmul.f32 1.442695, %v788_v42 }
 0x30b   :  { %v869_v30 = vsel %vm664_vm6, %v4736_v37, 0.0  ;;  %v833_v47 = vmul.f32 1.442695, %v781_v46  ;;  %v4746_v51 = vpop.eup %3806 }
 0x30c   :  { %3808 = vpow2.f32 %v847_v38  ;;  %870 = vadd.xlane.f32.xlu0 %v869_v30  ;;  %915 = vadd.xlane.f32.xlu2 %v914_v43  ;;  %v872_v26 = vsel %vm664_vm6, %v4746_v51, 0.0 }
 0x30d   :  { %894 = vadd.xlane.f32.xlu1 %v893_v25  ;;  %3810 = vpow2.f32 %v833_v47  ;;  %v688_v25 = vpop.xlane.xlu0 %687 }
 0x30f   :  { %v706_v39 = vpop.xlane.xlu2 %705 }
 0x310   :  { %v774_v59 = vsub.f32 %v4596_v41, %v706_v39 }
 0x312   :  { %v4748_v9 = vpop.eup %3808  ;;  %v819_v61 = vmul.f32 1.442695, %v774_v59  ;;  %v685_v2 = vpop.xlane.xlu1 %684 }
 0x313   :  { %v767_v14 = vsub.f32 %v4604_v28, %v685_v2  ;;  %v938_v0 = vsel %vm664_vm6, %v4748_v9, 0.0  ;;  %v4755_v52 = vpop.eup %3810 }
 0x314   :  { %3812 = vpow2.f32 %v819_v61  ;;  %939 = vadd.xlane.f32.xlu0 %v938_v0  ;;  %v917_v43 = vsel %vm664_vm6, %v4755_v52, 0.0 }
 0x315   :  { %873 = vadd.xlane.f32.xlu1 %v872_v26  ;;  %v805_v60 = vmul.f32 1.442695, %v767_v14 }
 0x317   :  { %v751_v41 = vpop.xlane.xlu2 %750  ;;  %3814 = vpow2.f32 %v805_v60 }
 0x318   :  { %v789_v42 = vsub.f32 %v4611_v3, %v751_v41 }
 0x31a   :  { %v4758_v55 = vpop.eup %3812  ;;  %v849_v38 = vmul.f32 1.442695, %v789_v42  ;;  %v730_v28 = vpop.xlane.xlu1 %729 }
 0x31b   :  { %v782_v46 = vsub.f32 %v4614_v13, %v730_v28  ;;  %v896_v30 = vsel %vm664_vm6, %v4758_v55, 0.0  ;;  %v768_v13 = vsub.f32 %v4559_v23, %v688_v25  ;;  %v757_v41 = vpop.xlane.xlu0 %756 }
 0x31c   :  { %3816 = vpow2.f32 %v849_v38  ;;  %897 = vadd.xlane.f32.xlu2 %v896_v30  ;;  %918 = vadd.xlane.f32.xlu0 %v917_v43 }
 0x31d   :  { %v835_v47 = vmul.f32 1.442695, %v782_v46  ;;  %v4765_v3 = vpop.eup %3814 }
 0x31e   :  { %v875_v60 = vsel %vm664_vm6, %v4765_v3, 0.0 }
 0x31f   :  { %v709_v39 = vpop.xlane.xlu2 %708  ;;  %3818 = vpow2.f32 %v835_v47 }
 0x320   :  { %v775_v59 = vsub.f32 %v4627_v1, %v709_v39  ;;  %v807_v1 = vmul.f32 1.442695, %v768_v13 }
 0x322   :  { %v4768_v61 = vpop.eup %3816  ;;  %v821_v2 = vmul.f32 1.442695, %v775_v59  ;;  %v712_v14 = vpop.xlane.xlu1 %711 }
 0x323   :  { %v776_v0 = vsub.f32 %v4630_v54, %v712_v14  ;;  %v941_v26 = vsel %vm664_vm6, %v4768_v61, 0.0  ;;  %v791_v54 = vsub.f32 %v4620_v62, %v757_v41  ;;  %v760_v39 = vpop.xlane.xlu0 %759 }
 0x324   :  { %3820 = vpow2.f32 %v821_v2  ;;  %942 = vadd.xlane.f32.xlu1 %v941_v26  ;;  %876 = vadd.xlane.f32.xlu2 %v875_v60  ;;  %v792_v14 = vsub.f32 %v4636_v36, %v760_v39 }
 0x325   :  { %v823_v42 = vmul.f32 1.442695, %v776_v0  ;;  %v4776_v28 = vpop.eup %3818  ;;  %3822 = vpow2.f32 %v807_v1  ;;  %v853_v47 = vmul.f32 1.442695, %v791_v54 }
 0x326   :  { %v920_v25 = vsel %vm664_vm6, %v4776_v28, 0.0  ;;  %v855_v41 = vmul.f32 1.442695, %v792_v14 }
 0x327   :  { %v754_v38 = vpop.xlane.xlu2 %753  ;;  %3824 = vpow2.f32 %v823_v42 }
 0x328   :  { %v790_v23 = vsub.f32 %v4643_v27, %v754_v38 }
 0x32a   :  { %v4779_v46 = vpop.eup %3820  ;;  %v851_v30 = vmul.f32 1.442695, %v790_v23 }
 0x32b   :  { %v899_v43 = vsel %vm664_vm6, %v4779_v46, 0.0  ;;  %v4786_v27 = vpop.eup %3822 }
 0x32c   :  { %3826 = vpow2.f32 %v851_v30  ;;  %900 = vadd.xlane.f32.xlu0 %v899_v43  ;;  %921 = vadd.xlane.f32.xlu1 %v920_v25  ;;  %v878_v26 = vsel %vm664_vm6, %v4786_v27, 0.0 }
 0x32d   :  { %v4789_v2 = vpop.eup %3824  ;;  %3828 = vpow2.f32 %v853_v47 }
 0x32f   :  { %v733_v59 = vpop.xlane.xlu2 %732 }
 0x330   :  { %v783_v13 = vsub.f32 %v4648_v44, %v733_v59  ;;  %v902_v44 = vsel %vm664_vm6, %v4789_v2, 0.0 }
 0x332   :  { %v4791_v62 = vpop.eup %3826  ;;  %v837_v0 = vmul.f32 1.442695, %v783_v13 }
 0x333   :  { %v944_v60 = vsel %vm664_vm6, %v4791_v62, 0.0  ;;  %v4800_v42 = vpop.eup %3828 }
 0x334   :  { %3830 = vpow2.f32 %v837_v0  ;;  %879 = vadd.xlane.f32.xlu0 %v878_v26  ;;  %945 = vadd.xlane.f32.xlu2 %v944_v60  ;;  %v947_v54 = vsel %vm664_vm6, %v4800_v42, 0.0 }
 0x335   :  { %903 = vadd.xlane.f32.xlu1 %v902_v44  ;;  %3832 = vpow2.f32 %v855_v41 }
 0x337   :  { %v736_v1 = vpop.xlane.xlu2 %735 }
 0x338   :  { %v784_v36 = vsub.f32 %v4653_v21, %v736_v1 }
 0x33a   :  { %v4803_v38 = vpop.eup %3830  ;;  %v839_v23 = vmul.f32 1.442695, %v784_v36 }
 0x33b   :  { %v923_v30 = vsel %vm664_vm6, %v4803_v38, 0.0  ;;  %v4809_v43 = vpop.eup %3832 }
 0x33c   :  { %3834 = vpow2.f32 %v839_v23  ;;  %948 = vadd.xlane.f32.xlu0 %v947_v54  ;;  %924 = vadd.xlane.f32.xlu2 %v923_v30  ;;  %v950_v21 = vsel %vm664_vm6, %v4809_v43, 0.0 }
 0x342   :  { %v4811_v25 = vpop.eup %3834 }
 0x343   :  { %v926_v47 = vsel %vm664_vm6, %v4811_v25, 0.0 }
 0x344   :  { %951 = vadd.xlane.f32.xlu2 %v950_v21  ;;  %927 = vadd.xlane.f32.xlu1 %v926_v47 }
 0x348   :  { %v859_v39 = vpop.xlane.xlu1 %858 }
 0x349   :  { %3836 = vrcp.f32 %v859_v39  ;;  %v964_v60 = vand.u32 2147483648, %v859_v39  ;;  %v962_v44 = vand.u32 2147483647, %v859_v39  ;;  %vm958_vm8 = vweird.f32 %v859_v39 }
 0x34b   :  { %v965_v30 = vor.u32 1.1754944e-38, %v964_v60  ;;  %vm963_vm10 = vcmp.eq.f32.partialorder %v962_v44, 8.507059e+37 }
 0x34f   :  { %v3837_v59 = vpop.eup %3836  ;;  %v883_v13 = vpop.xlane.xlu2 %882 }
 0x350   :  { %v954_v14 = vmul.f32 %v3837_v59, %v859_v39  ;;  %3838 = vrcp.f32 %v883_v13  ;;  %vm959_vm7 = vweird.f32 %v3837_v59  ;;  %v1084_v11 = vand.u32 2147483648, %v883_v13 }
 0x351   :  { %vm960_vm9 = vmor %vm958_vm8, %vm959_vm7  ;;  %vm1078_vm12 = vweird.f32 %v883_v13  ;;  %v1082_v6 = vand.u32 2147483647, %v883_v13 }
 0x352   :  { %v955_v0 = vsub.f32 1.0, %v954_v14  ;;  %v1085_v44 = vor.u32 1.1754944e-38, %v1084_v11 }
 0x353   :  { %vm1083_vm14 = vcmp.eq.f32.partialorder %v1082_v6, 8.507059e+37 }
 0x354   :  { %v956_v26 = vmul.f32 %v3837_v59, %v955_v0 }
 0x356   :  { %v3839_v41 = vpop.eup %3838  ;;  %v957_v1 = vadd.f32 %v3837_v59, %v956_v26 }
 0x357   :  { %v1074_v36 = vmul.f32 %v3839_v41, %v883_v13  ;;  %v886_v23 = vpop.xlane.xlu2 %885  ;;  %v4817_v54 = vpop.xlane.xlu1 %861  ;;  %vm1079_vm11 = vweird.f32 %v3839_v41 }
 0x358   :  { %3840 = vrcp.f32 %v886_v23  ;;  %v961_v47 = vsel %vm960_vm9, %v3837_v59, %v957_v1  ;;  %vm1080_vm13 = vmor %vm1078_vm12, %vm1079_vm11  ;;  %vm1093_vm0 = vweird.f32 %v886_v23  ;;  %vm973_vm2 = vweird.f32 %v4817_v54 }
 0x359   :  { %v1075_v21 = vsub.f32 1.0, %v1074_v36  ;;  %3842 = vrcp.f32 %v4817_v54  ;;  %v966_v14 = vsel %vm963_vm10, %v965_v30, %v961_v47 }
 0x35a   :  { %v967_v12 = vmul.f32 %v4660_v4, %v966_v14  ;;  %v1097_v14 = vand.u32 2147483647, %v886_v23 }
 0x35b   :  { %v1076_v0 = vmul.f32 %v3839_v41, %v1075_v21  ;;  %v979_v21 = vand.u32 2147483648, %v4817_v54 }
 0x35c   :  { %3637 = vmatmul.msk.f32.vlgmr.msra.gmra.mxu2 %vm664_vm6, %v967_v12  ;;  %v1099_v12 = vand.u32 2147483648, %v886_v23  ;;  %vm4845_vm4 = vcmp.eq.f32.partialorder %v1097_v14, 8.507059e+37 }
 0x35d   :  { %v1077_v39 = vadd.f32 %v3839_v41, %v1076_v0 }
 0x35e   :  { %v3841_v26 = vpop.eup %3840 }
 0x35f   :  { %v4822_v60 = vpop.eup %3842  ;;  %v1089_v63 = vmul.f32 %v3841_v26, %v886_v23  ;;  %v907_v36 = vpop.xlane.xlu0 %906  ;;  %v1081_v4 = vsel %vm1080_vm13, %v3839_v41, %v1077_v39  ;;  %vm1094_vm15 = vweird.f32 %v3841_v26  ;;  %v977_v41 = vand.u32 2147483647, %v4817_v54 }
 0x360   :  { %v4824_v15 = vpop.xlane.xlu1 %930  ;;  %v969_v59 = vmul.f32 %v4822_v60, %v4817_v54  ;;  %3844 = vrcp.f32 %v907_v36  ;;  %v1086_v47 = vsel %vm1083_vm14, %v1085_v44, %v1081_v4  ;;  %v980_v39 = vor.u32 1.1754944e-38, %v979_v21  ;;  %vm4841_vm3 = vmor %vm1093_vm0, %vm1094_vm15 }
 0x361   :  { %v1090_v1 = vsub.f32 1.0, %v1089_v63  ;;  %3846 = vrcp.f32 %v4824_v15  ;;  %v1087_v19 = vmul.f32 %v4665_v58, %v1086_v47  ;;  %v1100_v63 = vor.u32 1.1754944e-38, %v1099_v12 }
 0x362   :  { %v970_v30 = vsub.f32 1.0, %v969_v59  ;;  %vm974_vm5 = vweird.f32 %v4822_v60  ;;  %v1202_v21 = vand.u32 2147483647, %v907_v36  ;;  %vm4859_vm7 = vcmp.eq.f32.partialorder %v977_v41, 8.507059e+37 }
 0x363   :  { %v1091_v13 = vmul.f32 %v3841_v26, %v1090_v1  ;;  %3629 = vmatmul.msk.f32.vlgmr.msra.gmra.mxu3 %vm664_vm6, %v1087_v19  ;;  %v1204_v14 = vand.u32 2147483648, %v907_v36  ;;  %v1322_v18 = vand.u32 2147483647, %v4824_v15  ;;  %vm1198_vm8 = vweird.f32 %v907_v36  ;;  %vm975_vm10 = vmor %vm973_vm2, %vm974_vm5 }
 0x364   :  { %v971_v0 = vmul.f32 %v4822_v60, %v970_v30  ;;  %vm1318_vm11 = vweird.f32 %v4824_v15  ;;  %vm4875_vm12 = vcmp.eq.f32.partialorder %v1202_v21, 8.507059e+37 }
 0x365   :  { %v1092_v20 = vadd.f32 %v3841_v26, %v1091_v13  ;;  %v1205_v1 = vor.u32 1.1754944e-38, %v1204_v14  ;;  %vm4889_vm15 = vcmp.eq.f32.partialorder %v1322_v18, 8.507059e+37 }
 0x366   :  { %v3845_v11 = vpop.eup %3844  ;;  %v972_v30 = vadd.f32 %v4822_v60, %v971_v0 }
 0x367   :  { %v4835_v6 = vpop.eup %3846  ;;  %v1194_v59 = vmul.f32 %v3845_v11, %v907_v36  ;;  %v4837_v4 = vpop.xlane.xlu0 %909  ;;  %v1096_v12 = vsel %vm4841_vm3, %v3841_v26, %v1092_v20  ;;  %vm1199_vm9 = vweird.f32 %v3845_v11 }
 0x368   :  { %v4839_v44 = vpop.xlane.xlu2 %888  ;;  %v1314_v19 = vmul.f32 %v4835_v6, %v4824_v15  ;;  %3848 = vrcp.f32 %v4837_v4  ;;  %v4853_v23 = vpop.xlane.xlu1 %864  ;;  %v1101_v20 = vsel %vm4845_vm4, %v1100_v63, %v1096_v12  ;;  %v976_v41 = vsel %vm975_vm10, %v4822_v60, %v972_v30  ;;  %vm4884_vm13 = vmor %vm1198_vm8, %vm1199_vm9 }
 0x369   :  { %v1195_v13 = vsub.f32 1.0, %v1194_v59  ;;  %3850 = vrcp.f32 %v4839_v44  ;;  %v1102_v0 = vmul.f32 %v4670_v40, %v1101_v20  ;;  %v1324_v63 = vand.u32 2147483648, %v4824_v15 }
 0x36a   :  { %v1315_v50 = vsub.f32 1.0, %v1314_v19  ;;  %3852 = vrcp.f32 %v4853_v23  ;;  %v981_v58 = vsel %vm4859_vm7, %v980_v39, %v976_v41  ;;  %vm1319_vm14 = vweird.f32 %v4835_v6 }
 0x36b   :  { %v1196_v33 = vmul.f32 %v3845_v11, %v1195_v13  ;;  %3630 = vmatmul.msk.f32.gmra.mxu3 %vm664_vm6, %v1102_v0  ;;  %v982_v40 = vmul.f32 %v4673_v5, %v981_v58  ;;  %v1219_v12 = vand.u32 2147483648, %v4837_v4  ;;  %v1114_v30 = vand.u32 2147483648, %v4839_v44  ;;  %vm1320_vm4 = vmor %vm1318_vm11, %vm1319_vm14 }
 0x36c   :  { %v1316_v26 = vmul.f32 %v4835_v6, %v1315_v50  ;;  %vm1108_vm0 = vweird.f32 %v4839_v44  ;;  %vm1213_vm2 = vweird.f32 %v4837_v4  ;;  %vm988_vm3 = vweird.f32 %v4853_v23 }
 0x36d   :  { %v1197_v59 = vadd.f32 %v3845_v11, %v1196_v33  ;;  %3638 = vmatmul.msk.f32.gmra.mxu2 %vm664_vm6, %v982_v40  ;;  %v1220_v58 = vor.u32 1.1754944e-38, %v1219_v12  ;;  %v1115_v50 = vor.u32 1.1754944e-38, %v1114_v30 }
 0x36e   :  { %v4882_v54 = vpop.eup %3848  ;;  %v1317_v5 = vadd.f32 %v4835_v6, %v1316_v26  ;;  %v1325_v26 = vor.u32 1.1754944e-38, %v1324_v63 }
 0x36f   :  { %v4895_v60 = vpop.eup %3850  ;;  %v1201_v39 = vsel %vm4884_vm13, %v3845_v11, %v1197_v59  ;;  %v1209_v19 = vmul.f32 %v4882_v54, %v4837_v4  ;;  %v4905_v13 = vpop.xlane.xlu0 %891  ;;  %v994_v11 = vand.u32 2147483648, %v4853_v23  ;;  %vm1214_vm9 = vweird.f32 %v4882_v54 }
 0x370   :  { %v4903_v18 = vpop.xlane.xlu2 %867  ;;  %v4907_v21 = vpop.eup %3852  ;;  %v1104_v47 = vmul.f32 %v4895_v60, %v4839_v44  ;;  %v1206_v20 = vsel %vm4875_vm12, %v1205_v1, %v1201_v39  ;;  %v1112_v39 = vand.u32 2147483647, %v4839_v44  ;;  %v1321_v30 = vsel %vm1320_vm4, %v4835_v6, %v1317_v5 }
 0x371   :  { %3854 = vrcp.f32 %v4903_v18  ;;  %v4915_v14 = vpop.xlane.xlu1 %933  ;;  %v1210_v0 = vsub.f32 1.0, %v1209_v19  ;;  %v984_v41 = vmul.f32 %v4907_v21, %v4853_v23  ;;  %v995_v63 = vor.u32 1.1754944e-38, %v994_v11 }
 0x372   :  { %3856 = vrcp.f32 %v4905_v13  ;;  %v1105_v59 = vsub.f32 1.0, %v1104_v47  ;;  %v1207_v1 = vmul.f32 %v4684_v56, %v1206_v20  ;;  %v992_v47 = vand.u32 2147483647, %v4853_v23 }
 0x373   :  { %3858 = vrcp.f32 %v4915_v14  ;;  %v985_v40 = vsub.f32 1.0, %v984_v41  ;;  %v1211_v19 = vmul.f32 %v4882_v54, %v1210_v0  ;;  %v1326_v15 = vsel %vm4889_vm15, %v1325_v26, %v1321_v30  ;;  %vm1215_vm15 = vmor %vm1213_vm2, %vm1214_vm9 }
 0x374   :  { %v1106_v36 = vmul.f32 %v4895_v60, %v1105_v59  ;;  %3645 = vmatmul.msk.f32.vlgmr.msra.gmra.mxu0 %vm664_vm6, %v1207_v1  ;;  %vm1109_vm5 = vweird.f32 %v4895_v60  ;;  %v1217_v56 = vand.u32 2147483647, %v4837_v4  ;;  %v1327_v5 = vmul.f32 %v4681_v49, %v1326_v15 }
 0x375   :  { %v986_v12 = vmul.f32 %v4907_v21, %v985_v40  ;;  %vm989_vm7 = vweird.f32 %v4907_v21  ;;  %vm1113_vm8 = vcmp.eq.f32.partialorder %v1112_v39, 8.507059e+37  ;;  %vm1110_vm10 = vmor %vm1108_vm0, %vm1109_vm5  ;;  %v1212_v1 = vadd.f32 %v4882_v54, %v1211_v19 }
 0x376   :  { %v1107_v11 = vadd.f32 %v4895_v60, %v1106_v36  ;;  %3653 = vmatmul.msk.f32.vlgmr.msrb.gmra.mxu1 %vm664_vm6, %v1327_v5  ;;  %vm1003_vm11 = vweird.f32 %v4903_v18  ;;  %v1009_v39 = vand.u32 2147483648, %v4903_v18  ;;  %vm990_vm12 = vmor %vm988_vm3, %vm989_vm7  ;;  %vm1123_vm13 = vweird.f32 %v4905_v13 }
 0x377   :  { %v4937_v41 = vpop.eup %3854  ;;  %v987_v59 = vadd.f32 %v4907_v21, %v986_v12  ;;  %vm993_vm14 = vcmp.eq.f32.partialorder %v992_v47, 8.507059e+37  ;;  %vm1218_vm0 = vcmp.eq.f32.partialorder %v1217_v56, 8.507059e+37  ;;  %vm1333_vm4 = vweird.f32 %v4915_v14 }
 0x378   :  { %v4945_v20 = vpop.eup %3856  ;;  %v999_v6 = vmul.f32 %v4937_v41, %v4903_v18  ;;  %v4950_v0 = vpop.xlane.xlu2 %936  ;;  %v1111_v30 = vsel %vm1110_vm10, %v4895_v60, %v1107_v11  ;;  %v1010_v47 = vor.u32 1.1754944e-38, %v1009_v39  ;;  %v1129_v11 = vand.u32 2147483648, %v4905_v13 }
 0x379   :  { %v4954_v33 = vpop.eup %3858  ;;  %v1119_v26 = vmul.f32 %v4945_v20, %v4905_v13  ;;  %3860 = vrcp.f32 %v4950_v0  ;;  %v4959_v40 = vpop.xlane.xlu1 %912  ;;  %v1116_v15 = vsel %vm1113_vm8, %v1115_v50, %v1111_v30  ;;  %v991_v44 = vsel %vm990_vm12, %v4907_v21, %v987_v59 }
 0x37a   :  { %v1000_v36 = vsub.f32 1.0, %v999_v6  ;;  %v1329_v49 = vmul.f32 %v4954_v33, %v4915_v14  ;;  %3862 = vrcp.f32 %v4959_v40  ;;  %v1117_v5 = vmul.f32 %v4697_v48, %v1116_v15 }
 0x37b   :  { %v1120_v12 = vsub.f32 1.0, %v1119_v26  ;;  %v996_v26 = vsel %vm993_vm14, %v995_v63, %v991_v44  ;;  %v1216_v50 = vsel %vm1215_vm15, %v4882_v54, %v1212_v1  ;;  %v1339_v59 = vand.u32 2147483648, %v4915_v14 }
 0x37c   :  { %v1001_v19 = vmul.f32 %v4937_v41, %v1000_v36  ;;  %v1330_v23 = vsub.f32 1.0, %v1329_v49  ;;  %v997_v60 = vmul.f32 %v4695_v7, %v996_v26  ;;  %3631 = vmatmul.msk.f32.gmra.mxu3 %vm664_vm6, %v1117_v5  ;;  %v1221_v48 = vsel %vm1218_vm0, %v1220_v58, %v1216_v50 }
 0x37d   :  { %v1121_v6 = vmul.f32 %v4945_v20, %v1120_v12  ;;  %v1222_v4 = vmul.f32 %v4692_v10, %v1221_v48  ;;  %vm1124_vm2 = vweird.f32 %v4945_v20  ;;  %v1127_v36 = vand.u32 2147483647, %v4905_v13 }
 0x37e   :  { %3639 = vmatmul.msk.f32.gmra.mxu2 %vm664_vm6, %v997_v60  ;;  %v1002_v1 = vadd.f32 %v4937_v41, %v1001_v19  ;;  %vm1004_vm3 = vweird.f32 %v4937_v41  ;;  %v1331_v10 = vmul.f32 %v4954_v33, %v1330_v23  ;;  %v1130_v12 = vor.u32 1.1754944e-38, %v1129_v11  ;;  %vm1125_vm5 = vmor %vm1123_vm13, %vm1124_vm2 }
 0x37f   :  { %v4989_v21 = vpop.eup %3860  ;;  %v4998_v7 = vpop.xlane.xlu0 %870  ;;  %v1122_v56 = vadd.f32 %v4945_v20, %v1121_v6  ;;  %3646 = vmatmul.msk.f32.gmra.mxu0 %vm664_vm6, %v1222_v4  ;;  %v1340_v30 = vor.u32 1.1754944e-38, %v1339_v59  ;;  %v1354_v44 = vand.u32 2147483648, %v4950_v0  ;;  %vm1228_vm7 = vweird.f32 %v4959_v40  ;;  %vm5031_vm8 = vmor %vm1003_vm11, %vm1004_vm3 }
 0x380   :  { %v4994_v63 = vpop.eup %3862  ;;  %v5000_v54 = vpop.xlane.xlu2 %915  ;;  %3864 = vrcp.f32 %v4998_v7  ;;  %v1344_v39 = vmul.f32 %v4989_v21, %v4950_v0  ;;  %v1234_v19 = vand.u32 2147483648, %v4959_v40  ;;  %vm1128_vm9 = vcmp.eq.f32.partialorder %v1127_v36, 8.507059e+37 }
 0x381   :  { %v1224_v49 = vmul.f32 %v4994_v63, %v4959_v40  ;;  %v5008_v58 = vpop.xlane.xlu1 %894  ;;  %3866 = vrcp.f32 %v5000_v54  ;;  %v1126_v6 = vsel %vm1125_vm5, %v4945_v20, %v1122_v56  ;;  %v1006_v13 = vsel %vm5031_vm8, %v4937_v41, %v1002_v1 }
 0x382   :  { %3868 = vrcp.f32 %v5008_v58  ;;  %v1007_v23 = vand.u32 2147483647, %v4903_v18  ;;  %v1345_v60 = vsub.f32 1.0, %v1344_v39  ;;  %vm1348_vm10 = vweird.f32 %v4950_v0 }
 0x383   :  { %v1225_v15 = vsub.f32 1.0, %v1224_v49  ;;  %v1131_v20 = vsel %vm1128_vm9, %v1130_v12, %v1126_v6  ;;  %v1332_v50 = vadd.f32 %v4954_v33, %v1331_v10  ;;  %vm1334_vm11 = vweird.f32 %v4954_v33 }
 0x384   :  { %v1024_v59 = vand.u32 2147483648, %v4998_v7  ;;  %v1132_v48 = vmul.f32 %v4706_v45, %v1131_v20  ;;  %vm1008_vm12 = vcmp.eq.f32.partialorder %v1007_v23, 8.507059e+37  ;;  %vm5049_vm13 = vmor %vm1333_vm4, %vm1334_vm11  ;;  %v1337_v18 = vand.u32 2147483647, %v4915_v14 }
 0x385   :  { %v1226_v26 = vmul.f32 %v4994_v63, %v1225_v15  ;;  %v1011_v36 = vsel %vm1008_vm12, %v1010_v47, %v1006_v13  ;;  %v1336_v49 = vsel %vm5049_vm13, %v4954_v33, %v1332_v50  ;;  %vm1229_vm15 = vweird.f32 %v4994_v63 }
 0x386   :  { %v5043_v11 = vpop.eup %3864  ;;  %3632 = vmatmul.msk.f32.gmra.mxu3 %vm664_vm6, %v1132_v48  ;;  %v1012_v14 = vmul.f32 %v4711_v8, %v1011_v36  ;;  %vm1338_vm14 = vcmp.eq.f32.partialorder %v1337_v18, 8.507059e+37  ;;  %v1346_v47 = vmul.f32 %v4989_v21, %v1345_v60  ;;  %v1355_v6 = vor.u32 1.1754944e-38, %v1354_v44  ;;  %vm5085_vm0 = vmor %vm1228_vm7, %vm1229_vm15 }
 0x387   :  { %v5054_v4 = vpop.eup %3866  ;;  %v1014_v56 = vmul.f32 %v5043_v11, %v4998_v7  ;;  %v5061_v45 = vpop.xlane.xlu0 %939  ;;  %v1227_v1 = vadd.f32 %v4994_v63, %v1226_v26  ;;  %v1341_v15 = vsel %vm1338_vm14, %v1340_v30, %v1336_v49  ;;  %v1235_v26 = vor.u32 1.1754944e-38, %v1234_v19 }
 0x388   :  { %v5064_v10 = vpop.eup %3868  ;;  %3870 = vrcp.f32 %v5061_v45  ;;  %v1239_v33 = vmul.f32 %v5054_v4, %v5000_v54  ;;  %3640 = vmatmul.msk.f32.gmra.mxu2 %vm664_vm6, %v1012_v14  ;;  %v1342_v8 = vmul.f32 %v4709_v22, %v1341_v15  ;;  %v5080_v13 = vor.u32 1.1754944e-38, %v1024_v59 }
 0x389   :  { %v5069_v39 = vpop.xlane.xlu1 %873  ;;  %v1134_v12 = vmul.f32 %v5064_v10, %v5008_v58  ;;  %v1015_v5 = vsub.f32 1.0, %v1014_v56  ;;  %v1249_v23 = vand.u32 2147483648, %v5000_v54  ;;  %vm1018_vm2 = vweird.f32 %v4998_v7 }
 0x38a   :  { %3872 = vrcp.f32 %v5069_v39  ;;  %vm1138_vm3 = vweird.f32 %v5008_v58  ;;  %v1144_v22 = vand.u32 2147483648, %v5008_v58  ;;  %3654 = vmatmul.msk.f32.gmra.mxu1 %vm664_vm6, %v1342_v8  ;;  %v1231_v30 = vsel %vm5085_vm0, %v4994_v63, %v1227_v1 }
 0x38b   :  { %v1135_v60 = vsub.f32 1.0, %v1134_v12  ;;  %v1232_v44 = vand.u32 2147483647, %v4959_v40  ;;  %v1240_v19 = vsub.f32 1.0, %v1239_v33  ;;  %v1347_v59 = vadd.f32 %v4989_v21, %v1346_v47 }
 0x38c   :  { %vm1349_vm4 = vweird.f32 %v4989_v21  ;;  %v1016_v41 = vmul.f32 %v5043_v11, %v1015_v5  ;;  %vm1243_vm5 = vweird.f32 %v5000_v54  ;;  %v1352_v40 = vand.u32 2147483647, %v4950_v0 }
 0x38d   :  { %v1136_v50 = vmul.f32 %v5064_v10, %v1135_v60  ;;  %vm1233_vm7 = vcmp.eq.f32.partialorder %v1232_v44, 8.507059e+37  ;;  %vm5106_vm8 = vmor %vm1348_vm10, %vm1349_vm4  ;;  %vm1139_vm9 = vweird.f32 %v5064_v10  ;;  %v1142_v33 = vand.u32 2147483647, %v5008_v58 }
 0x38e   :  { %v5100_v48 = vpop.eup %3870  ;;  %v1236_v56 = vsel %vm1233_vm7, %v1235_v26, %v1231_v30  ;;  %v1351_v36 = vsel %vm5106_vm8, %v4989_v21, %v1347_v59  ;;  %vm1353_vm10 = vcmp.eq.f32.partialorder %v1352_v40, 8.507059e+37  ;;  %v1241_v12 = vmul.f32 %v5054_v4, %v1240_v19  ;;  %vm1140_vm11 = vmor %vm1138_vm3, %vm1139_vm9 }
 0x38f   :  { %v1359_v18 = vmul.f32 %v5100_v48, %v5061_v45  ;;  %v5117_v49 = vpop.xlane.xlu2 %897  ;;  %v5119_v1 = vpop.xlane.xlu0 %918  ;;  %v1137_v14 = vadd.f32 %v5064_v10, %v1136_v50  ;;  %v1237_v0 = vmul.f32 %v4724_v24, %v1236_v56  ;;  %v1356_v5 = vsel %vm1353_vm10, %v1355_v6, %v1351_v36 }
 0x390   :  { %v5122_v47 = vpop.eup %3872  ;;  %3874 = vrcp.f32 %v5117_v49  ;;  %v1250_v8 = vor.u32 1.1754944e-38, %v1249_v23  ;;  %v1145_v26 = vor.u32 1.1754944e-38, %v1144_v22  ;;  %v1357_v60 = vmul.f32 %v4721_v16, %v1356_v5 }
 0x391   :  { %v1360_v15 = vsub.f32 1.0, %v1359_v18  ;;  %v1029_v21 = vmul.f32 %v5122_v47, %v5069_v39  ;;  %3647 = vmatmul.msk.f32.gmra.mxu0 %vm664_vm6, %v1237_v0  ;;  %3876 = vrcp.f32 %v5119_v1  ;;  %v1369_v24 = vand.u32 2147483648, %v5061_v45 }
 0x392   :  { %v1039_v30 = vand.u32 2147483648, %v5069_v39  ;;  %v1141_v6 = vsel %vm1140_vm11, %v5064_v10, %v1137_v14  ;;  %3655 = vmatmul.msk.f32.gmra.mxu1 %vm664_vm6, %v1357_v60  ;;  %vm1143_vm12 = vcmp.eq.f32.partialorder %v1142_v33, 8.507059e+37  ;;  %v1017_v16 = vadd.f32 %v5043_v11, %v1016_v41 }
 0x393   :  { %v1030_v20 = vsub.f32 1.0, %v1029_v21  ;;  %v1361_v23 = vmul.f32 %v5100_v48, %v1360_v15  ;;  %vm1019_vm13 = vweird.f32 %v5043_v11  ;;  %vm1363_vm14 = vweird.f32 %v5061_v45 }
 0x394   :  { %v1146_v22 = vsel %vm1143_vm12, %v1145_v26, %v1141_v6  ;;  %vm5148_vm15 = vmor %vm1018_vm2, %vm1019_vm13  ;;  %v1022_v10 = vand.u32 2147483647, %v4998_v7  ;;  %v1242_v19 = vadd.f32 %v5054_v4, %v1241_v12  ;;  %vm1244_vm0 = vweird.f32 %v5054_v4 }
 0x395   :  { %v1031_v58 = vmul.f32 %v5122_v47, %v1030_v20  ;;  %v1147_v59 = vmul.f32 %v4734_v57, %v1146_v22  ;;  %v1021_v41 = vsel %vm5148_vm15, %v5043_v11, %v1017_v16  ;;  %v1247_v63 = vand.u32 2147483647, %v5000_v54  ;;  %vm1245_vm3 = vmor %vm1243_vm5, %vm1244_vm0 }
 0x396   :  { %v5154_v50 = vpop.eup %3874  ;;  %vm1023_vm2 = vcmp.eq.f32.partialorder %v1022_v10, 8.507059e+37  ;;  %vm1034_vm4 = vweird.f32 %v5122_v47  ;;  %v1246_v36 = vsel %vm1245_vm3, %v5054_v4, %v1242_v19  ;;  %v1370_v12 = vor.u32 1.1754944e-38, %v1369_v24 }
 0x397   :  { %v1149_v40 = vmul.f32 %v5154_v50, %v5117_v49  ;;  %v5166_v7 = vpop.xlane.xlu2 %876  ;;  %v5168_v18 = vpop.xlane.xlu1 %942  ;;  %v1032_v57 = vadd.f32 %v5122_v47, %v1031_v58  ;;  %3633 = vmatmul.msk.f32.gmra.mxu3 %vm664_vm6, %v1147_v59  ;;  %v1026_v56 = vsel %vm1023_vm2, %v5080_v13, %v1021_v41  ;;  %vm1248_vm7 = vcmp.eq.f32.partialorder %v1247_v63, 8.507059e+37 }
 0x398   :  { %v5172_v11 = vpop.eup %3876  ;;  %3878 = vrcp.f32 %v5166_v7  ;;  %v1027_v0 = vmul.f32 %v4736_v37, %v1026_v56  ;;  %v1251_v33 = vsel %vm1248_vm7, %v1250_v8, %v1246_v36  ;;  %vm1033_vm5 = vweird.f32 %v5069_v39 }
 0x399   :  { %v1150_v54 = vsub.f32 1.0, %v1149_v40  ;;  %v1254_v14 = vmul.f32 %v5172_v11, %v5119_v1  ;;  %v1252_v15 = vmul.f32 %v4731_v31, %v1251_v33  ;;  %3880 = vrcp.f32 %v5168_v18  ;;  %vm5190_vm9 = vmor %vm1033_vm5, %vm1034_vm4 }
 0x39a   :  { %v1040_v13 = vor.u32 1.1754944e-38, %v1039_v30  ;;  %vm1153_vm8 = vweird.f32 %v5117_v49  ;;  %v1159_v21 = vand.u32 2147483648, %v5117_v49  ;;  %3641 = vmatmul.msk.f32.gmra.mxu2 %vm664_vm6, %v1027_v0  ;;  %v1036_v31 = vsel %vm5190_vm9, %v5122_v47, %v1032_v57 }
 0x39b   :  { %v1151_v4 = vmul.f32 %v5154_v50, %v1150_v54  ;;  %v1255_v5 = vsub.f32 1.0, %v1254_v14  ;;  %3648 = vmatmul.msk.f32.gmra.mxu0 %vm664_vm6, %v1252_v15  ;;  %v1037_v8 = vand.u32 2147483647, %v5069_v39  ;;  %v1362_v26 = vadd.f32 %v5100_v48, %v1361_v23 }
 0x39c   :  { %vm1258_vm10 = vweird.f32 %v5119_v1  ;;  %v1264_v60 = vand.u32 2147483648, %v5119_v1  ;;  %vm1364_vm11 = vweird.f32 %v5100_v48  ;;  %v1367_v24 = vand.u32 2147483647, %v5061_v45 }
 0x39d   :  { %vm1038_vm12 = vcmp.eq.f32.partialorder %v1037_v8, 8.507059e+37  ;;  %vm1365_vm13 = vmor %vm1363_vm14, %vm1364_vm11  ;;  %v1152_v47 = vadd.f32 %v5154_v50, %v1151_v4  ;;  %vm1154_vm15 = vweird.f32 %v5154_v50  ;;  %v1157_v39 = vand.u32 2147483647, %v5117_v49 }
 0x39e   :  { %v5204_v20 = vpop.eup %3878  ;;  %v1041_v6 = vsel %vm1038_vm12, %v1040_v13, %v1036_v31  ;;  %v1366_v23 = vsel %vm1365_vm13, %v5100_v48, %v1362_v26  ;;  %vm1368_vm0 = vcmp.eq.f32.partialorder %v1367_v24, 8.507059e+37  ;;  %v1256_v45 = vmul.f32 %v5172_v11, %v1255_v5  ;;  %vm1155_vm14 = vmor %vm1153_vm8, %vm1154_vm15 }
 0x39f   :  { %v1044_v30 = vmul.f32 %v5204_v20, %v5166_v7  ;;  %v5214_v16 = vpop.xlane.xlu0 %900  ;;  %v5216_v58 = vpop.xlane.xlu1 %921  ;;  %v1042_v44 = vmul.f32 %v4746_v51, %v1041_v6  ;;  %v1371_v10 = vsel %vm1368_vm0, %v1370_v12, %v1366_v23  ;;  %v1160_v19 = vor.u32 1.1754944e-38, %v1159_v21 }
 0x3a0   :  { %v5218_v22 = vpop.eup %3880  ;;  %3882 = vrcp.f32 %v5214_v16  ;;  %v1372_v48 = vmul.f32 %v4748_v9, %v1371_v10  ;;  %v1265_v63 = vor.u32 1.1754944e-38, %v1264_v60  ;;  %v1054_v40 = vand.u32 2147483648, %v5166_v7 }
 0x3a1   :  { %v1045_v59 = vsub.f32 1.0, %v1044_v30  ;;  %v1374_v41 = vmul.f32 %v5218_v22, %v5168_v18  ;;  %3884 = vrcp.f32 %v5216_v58  ;;  %v1156_v51 = vsel %vm1155_vm14, %v5154_v50, %v1152_v47 }
 0x3a2   :  { %vm1048_vm2 = vweird.f32 %v5166_v7  ;;  %3642 = vmatmul.msk.f32.gmra.mxu2 %vm664_vm6, %v1042_v44  ;;  %3656 = vmatmul.msk.f32.gmra.mxu1 %vm664_vm6, %v1372_v48  ;;  %vm1158_vm3 = vcmp.eq.f32.partialorder %v1157_v39, 8.507059e+37  ;;  %vm1378_vm4 = vweird.f32 %v5168_v18  ;;  %v1257_v49 = vadd.f32 %v5172_v11, %v1256_v45 }
 0x3a3   :  { %v1046_v57 = vmul.f32 %v5204_v20, %v1045_v59  ;;  %v1375_v56 = vsub.f32 1.0, %v1374_v41  ;;  %v1161_v9 = vsel %vm1158_vm3, %v1160_v19, %v1156_v51  ;;  %vm1259_vm7 = vweird.f32 %v5172_v11 }
 0x3a4   :  { %v1384_v50 = vand.u32 2147483648, %v5168_v18  ;;  %v1162_v54 = vmul.f32 %v4758_v55, %v1161_v9  ;;  %vm5245_vm5 = vmor %vm1258_vm10, %vm1259_vm7  ;;  %v1262_v0 = vand.u32 2147483647, %v5119_v1  ;;  %v1055_v12 = vor.u32 1.1754944e-38, %v1054_v40 }
 0x3a5   :  { %v1376_v36 = vmul.f32 %v5218_v22, %v1375_v56  ;;  %v1261_v15 = vsel %vm5245_vm5, %v5172_v11, %v1257_v49  ;;  %v1047_v13 = vadd.f32 %v5204_v20, %v1046_v57  ;;  %vm1049_vm8 = vweird.f32 %v5204_v20 }
 0x3a6   :  { %v5250_v33 = vpop.eup %3882  ;;  %3634 = vmatmul.msk.f32.gmra.mxu3 %vm664_vm6, %v1162_v54  ;;  %vm1263_vm9 = vcmp.eq.f32.partialorder %v1262_v0, 8.507059e+37  ;;  %v1052_v21 = vand.u32 2147483647, %v5166_v7  ;;  %vm1379_vm10 = vweird.f32 %v5218_v22  ;;  %v1382_v8 = vand.u32 2147483647, %v5168_v18  ;;  %vm1050_vm12 = vmor %vm1048_vm2, %vm1049_vm8 }
 0x3a7   :  { %v1164_v55 = vmul.f32 %v5250_v33, %v5214_v16  ;;  %v5260_v4 = vpop.xlane.xlu0 %879  ;;  %v5262_v1 = vpop.xlane.xlu2 %945  ;;  %v1266_v11 = vsel %vm1263_vm9, %v1265_v63, %v1261_v15  ;;  %v1377_v31 = vadd.f32 %v5218_v22, %v1376_v36  ;;  %v1385_v47 = vor.u32 1.1754944e-38, %v1384_v50  ;;  %vm1380_vm15 = vmor %vm1378_vm4, %vm1379_vm10 }
 0x3a8   :  { %v5266_v37 = vpop.eup %3884  ;;  %3886 = vrcp.f32 %v5260_v4  ;;  %v5269_v5 = vpop.xlane.xlu1 %903  ;;  %v1267_v24 = vmul.f32 %v4755_v52, %v1266_v11  ;;  %vm1168_vm11 = vweird.f32 %v5214_v16  ;;  %v1174_v39 = vand.u32 2147483648, %v5214_v16 }
 0x3a9   :  { %v1165_v26 = vsub.f32 1.0, %v1164_v55  ;;  %v1269_v60 = vmul.f32 %v5266_v37, %v5216_v58  ;;  %3888 = vrcp.f32 %v5262_v1  ;;  %vm1273_vm13 = vweird.f32 %v5216_v58 }
 0x3aa   :  { %3890 = vrcp.f32 %v5269_v5  ;;  %v1279_v52 = vand.u32 2147483648, %v5216_v58  ;;  %3649 = vmatmul.msk.f32.gmra.mxu0 %vm664_vm6, %v1267_v24  ;;  %v1069_v23 = vand.u32 2147483648, %v5260_v4  ;;  %v1051_v45 = vsel %vm1050_vm12, %v5204_v20, %v1047_v13 }
 0x3ab   :  { %v1166_v30 = vmul.f32 %v5250_v33, %v1165_v26  ;;  %v1270_v6 = vsub.f32 1.0, %v1269_v60  ;;  %vm1053_vm0 = vcmp.eq.f32.partialorder %v1052_v21, 8.507059e+37  ;;  %v1381_v7 = vsel %vm1380_vm15, %v5218_v22, %v1377_v31 }
 0x3ac   :  { %v1399_v10 = vand.u32 2147483648, %v5262_v1  ;;  %v1056_v19 = vsel %vm1053_vm0, %v1055_v12, %v1051_v45  ;;  %vm1383_vm14 = vcmp.eq.f32.partialorder %v1382_v8, 8.507059e+37  ;;  %vm1169_vm2 = vweird.f32 %v5250_v33 }
 0x3ad   :  { %v1271_v44 = vmul.f32 %v5266_v37, %v1270_v6  ;;  %v1057_v41 = vmul.f32 %v4765_v3, %v1056_v19  ;;  %v1386_v48 = vsel %vm1383_vm14, %v1385_v47, %v1381_v7  ;;  %v1167_v18 = vadd.f32 %v5250_v33, %v1166_v30  ;;  %vm1170_vm4 = vmor %vm1168_vm11, %vm1169_vm2 }
 0x3ae   :  { %v5297_v59 = vpop.eup %3886  ;;  %v1175_v20 = vor.u32 1.1754944e-38, %v1174_v39  ;;  %v1387_v40 = vmul.f32 %v4768_v61, %v1386_v48  ;;  %v1172_v56 = vand.u32 2147483647, %v5214_v16  ;;  %v1280_v9 = vor.u32 1.1754944e-38, %v1279_v52 }
 0x3af   :  { %v5302_v63 = vpop.eup %3888  ;;  %v1059_v22 = vmul.f32 %v5297_v59, %v5260_v4  ;;  %v5307_v51 = vpop.xlane.xlu0 %948  ;;  %v1189_v36 = vand.u32 2147483648, %v5269_v5  ;;  %3643 = vmatmul.msk.f32.gmra.mxu2 %vm664_vm6, %v1057_v41  ;;  %vm1063_vm3 = vweird.f32 %v5260_v4  ;;  %v1272_v54 = vadd.f32 %v5266_v37, %v1271_v44 }
 0x3b0   :  { %v5309_v57 = vpop.xlane.xlu2 %924  ;;  %v5312_v3 = vpop.eup %3890  ;;  %v1389_v49 = vmul.f32 %v5302_v63, %v5262_v1  ;;  %3892 = vrcp.f32 %v5307_v51  ;;  %3657 = vmatmul.msk.f32.gmra.mxu1 %vm664_vm6, %v1387_v40  ;;  %v1070_v14 = vor.u32 1.1754944e-38, %v1069_v23  ;;  %v5329_v0 = vor.u32 1.1754944e-38, %v1399_v10 }
 0x3b1   :  { %v1060_v50 = vsub.f32 1.0, %v1059_v22  ;;  %v1179_v61 = vmul.f32 %v5312_v3, %v5269_v5  ;;  %3894 = vrcp.f32 %v5309_v57  ;;  %vm1183_vm7 = vweird.f32 %v5269_v5 }
 0x3b2   :  { %v1171_v12 = vsel %vm1170_vm4, %v5250_v33, %v1167_v18  ;;  %vm1173_vm5 = vcmp.eq.f32.partialorder %v1172_v56, 8.507059e+37  ;;  %vm1274_vm8 = vweird.f32 %v5266_v37  ;;  %v1390_v55 = vsub.f32 1.0, %v1389_v49 }
 0x3b3   :  { %v1061_v15 = vmul.f32 %v5297_v59, %v1060_v50  ;;  %v1180_v13 = vsub.f32 1.0, %v1179_v61  ;;  %v1190_v21 = vor.u32 1.1754944e-38, %v1189_v36  ;;  %v1176_v11 = vsel %vm1173_vm5, %v1175_v20, %v1171_v12  ;;  %vm5337_vm9 = vmor %vm1273_vm13, %vm1274_vm8 }
 0x3b4   :  { %v1277_v31 = vand.u32 2147483647, %v5216_v58  ;;  %vm1393_vm10 = vweird.f32 %v5262_v1  ;;  %v1294_v8 = vand.u32 2147483648, %v5309_v57  ;;  %v1177_v26 = vmul.f32 %v4779_v46, %v1176_v11 }
 0x3b5   :  { %v1181_v33 = vmul.f32 %v5312_v3, %v1180_v13  ;;  %v1276_v60 = vsel %vm5337_vm9, %v5266_v37, %v1272_v54  ;;  %vm1184_vm12 = vweird.f32 %v5312_v3  ;;  %v1187_v47 = vand.u32 2147483647, %v5269_v5 }
 0x3b6   :  { %v5349_v24 = vpop.eup %3892  ;;  %vm1278_vm11 = vcmp.eq.f32.partialorder %v1277_v31, 8.507059e+37  ;;  %v1062_v58 = vadd.f32 %v5297_v59, %v1061_v15  ;;  %3635 = vmatmul.msk.f32.gmra.mxu3 %vm664_vm6, %v1177_v26  ;;  %vm1064_vm13 = vweird.f32 %v5297_v59  ;;  %v1067_v7 = vand.u32 2147483647, %v5260_v4  ;;  %vm1185_vm0 = vmor %vm1183_vm7, %vm1184_vm12 }
 0x3b7   :  { %v3895_v39 = vpop.eup %3894  ;;  %v1404_v30 = vmul.f32 %v5349_v24, %v5307_v51  ;;  %v1281_v46 = vsel %vm1278_vm11, %v1280_v9, %v1276_v60  ;;  %v5359_v52 = vpop.xlane.xlu1 %927  ;;  %v1182_v37 = vadd.f32 %v5312_v3, %v1181_v33  ;;  %v1391_v44 = vmul.f32 %v5302_v63, %v1390_v55  ;;  %vm1065_vm2 = vmor %vm1063_vm3, %vm1064_vm13 }
 0x3b8   :  { %v5357_v6 = vpop.xlane.xlu2 %951  ;;  %v1284_v23 = vmul.f32 %v3895_v39, %v5309_v57  ;;  %v1282_v45 = vmul.f32 %v4776_v28, %v1281_v46  ;;  %vm1408_vm15 = vweird.f32 %v5307_v51  ;;  %v1414_v19 = vand.u32 2147483648, %v5307_v51 }
 0x3b9   :  { %3896 = vrcp.f32 %v5357_v6  ;;  %v1405_v10 = vsub.f32 1.0, %v1404_v30  ;;  %v1186_v28 = vsel %vm1185_vm0, %v5312_v3, %v1182_v37  ;;  %vm1188_vm14 = vcmp.eq.f32.partialorder %v1187_v47, 8.507059e+37 }
 0x3ba   :  { %3898 = vrcp.f32 %v5359_v52  ;;  %v1285_v41 = vsub.f32 1.0, %v1284_v23  ;;  %3650 = vmatmul.msk.f32.gmra.mxu0 %vm664_vm6, %v1282_v45  ;;  %vm1288_vm4 = vweird.f32 %v5309_v57  ;;  %v1191_v18 = vsel %vm1188_vm14, %v1190_v21, %v1186_v28 }
 0x3bb   :  { %v1406_v48 = vmul.f32 %v5349_v24, %v1405_v10  ;;  %v1066_v5 = vsel %vm1065_vm2, %v5297_v59, %v1062_v58  ;;  %v1295_v22 = vor.u32 1.1754944e-38, %v1294_v8  ;;  %v1192_v40 = vmul.f32 %v4789_v2, %v1191_v18 }
 0x3bc   :  { %v1286_v20 = vmul.f32 %v3895_v39, %v1285_v41  ;;  %vm1068_vm7 = vcmp.eq.f32.partialorder %v1067_v7, 8.507059e+37  ;;  %v1392_v3 = vadd.f32 %v5302_v63, %v1391_v44  ;;  %vm1394_vm5 = vweird.f32 %v5302_v63 }
 0x3bd   :  { %v1071_v56 = vsel %vm1068_vm7, %v1070_v14, %v1066_v5  ;;  %v1397_v4 = vand.u32 2147483647, %v5262_v1  ;;  %vm1395_vm3 = vmor %vm1393_vm10, %vm1394_vm5  ;;  %vm1289_vm8 = vweird.f32 %v3895_v39  ;;  %v1292_v59 = vand.u32 2147483647, %v5309_v57 }
 0x3be   :  { %v1072_v49 = vmul.f32 %v4786_v27, %v1071_v56  ;;  %v1287_v36 = vadd.f32 %v3895_v39, %v1286_v20  ;;  %3636 = vmatmul.msk.f32.gmra.mxu3 %vm664_vm6, %v1192_v40  ;;  %v1396_v61 = vsel %vm1395_vm3, %v5302_v63, %v1392_v3  ;;  %vm1290_vm11 = vmor %vm1288_vm4, %vm1289_vm8  ;;  %v1407_v27 = vadd.f32 %v5349_v24, %v1406_v48 }
 0x3bf   :  { %v3897_v9 = vpop.eup %3896  ;;  %vm1398_vm9 = vcmp.eq.f32.partialorder %v1397_v4, 8.507059e+37  ;;  %vm1293_vm10 = vcmp.eq.f32.partialorder %v1292_v59, 8.507059e+37  ;;  %vm1409_vm12 = vweird.f32 %v5349_v24  ;;  %v1412_v55 = vand.u32 2147483647, %v5307_v51 }
 0x3c0   :  { %v3899_v50 = vpop.eup %3898  ;;  %v1419_v2 = vmul.f32 %v3897_v9, %v5357_v6  ;;  %3644 = vmatmul.msk.f32.gmra.mxu2 %vm664_vm6, %v1072_v49  ;;  %v1401_v54 = vsel %vm1398_vm9, %v5329_v0, %v1396_v61  ;;  %v1291_v14 = vsel %vm1290_vm11, %v3895_v39, %v1287_v36  ;;  %vm1410_vm13 = vmor %vm1408_vm15, %vm1409_vm12  ;;  %v1415_v21 = vor.u32 1.1754944e-38, %v1414_v19 }
 0x3c1   :  { %v1299_v1 = vmul.f32 %v3899_v50, %v5359_v52  ;;  %v1402_v15 = vmul.f32 %v4791_v62, %v1401_v54  ;;  %v1296_v13 = vsel %vm1293_vm10, %v1295_v22, %v1291_v14  ;;  %v1309_v0 = vand.u32 2147483648, %v5359_v52 }
 0x3c2   :  { %v1420_v12 = vsub.f32 1.0, %v1419_v2  ;;  %v1297_v57 = vmul.f32 %v4803_v38, %v1296_v13  ;;  %v1411_v16 = vsel %vm1410_vm13, %v5349_v24, %v1407_v27  ;;  %vm1413_vm0 = vcmp.eq.f32.partialorder %v1412_v55, 8.507059e+37 }
 0x3c3   :  { %v1300_v63 = vsub.f32 1.0, %v1299_v1  ;;  %3658 = vmatmul.msk.f32.gmra.mxu1 %vm664_vm6, %v1402_v15  ;;  %vm1304_vm14 = vweird.f32 %v3899_v50  ;;  %v1307_v38 = vand.u32 2147483647, %v5359_v52  ;;  %v1416_v31 = vsel %vm1413_vm0, %v1415_v21, %v1411_v16  ;;  %v5425_v15 = vld [vmem:[%s6801_s4] sm:$0xff] }
 0x3c4   :  { %v1421_v11 = vmul.f32 %v3897_v9, %v1420_v12  ;;  %3651 = vmatmul.msk.f32.gmra.mxu0 %vm664_vm6, %v1297_v57  ;;  %vm1424_vm15 = vweird.f32 %v3897_v9  ;;  %v1429_v51 = vand.u32 2147483648, %v5357_v6  ;;  %vm1303_vm2 = vweird.f32 %v5359_v52 }
 0x3c5   :  { %v1301_v62 = vmul.f32 %v3899_v50, %v1300_v63  ;;  %vm1423_vm4 = vweird.f32 %v5357_v6  ;;  %v1310_v26 = vor.u32 1.1754944e-38, %v1309_v0  ;;  %v1417_v60 = vmul.f32 %v4800_v42, %v1416_v31  ;;  %vm1305_vm7 = vmor %vm1303_vm2, %vm1304_vm14 }
 0x3c6   :  { %v1422_v33 = vadd.f32 %v3897_v9, %v1421_v11  ;;  %v1427_v24 = vand.u32 2147483647, %v5357_v6  ;;  %vm1308_vm5 = vcmp.eq.f32.partialorder %v1307_v38, 8.507059e+37  ;;  %vm1425_vm3 = vmor %vm1423_vm4, %vm1424_vm15  ;;  %v1430_v30 = vor.u32 1.1754944e-38, %v1429_v51 }
 0x3c7   :  { %v1302_v8 = vadd.f32 %v3899_v50, %v1301_v62  ;;  %v1745_v13 = vperm.slane %v5425_v15, 3 }
 0x3c8   :  { %v1426_v39 = vsel %vm1425_vm3, %v3897_v9, %v1422_v33  ;;  %vm1428_vm8 = vcmp.eq.f32.partialorder %v1427_v24, 8.507059e+37 }
 0x3c9   :  { %v1306_v47 = vsel %vm1305_vm7, %v3899_v50, %v1302_v8  ;;  %v1431_v52 = vsel %vm1428_vm8, %v1430_v30, %v1426_v39 }
 0x3ca   :  { %v1311_v58 = vsel %vm1308_vm5, %v1310_v26, %v1306_v47  ;;  %v1432_v37 = vmul.f32 %v4809_v43, %v1431_v52 }
 0x3cb   :  { %v1312_v46 = vmul.f32 %v4811_v25, %v1311_v58  ;;  %3659 = vmatmul.msk.f32.gmra.mxu1 %vm664_vm6, %v1417_v60 }
 0x3cd   :  { %3652 = vmatmul.msk.f32.gmra.mxu0 %vm664_vm6, %v1312_v46 }
 0x3d3   :  { %3660 = vmatmul.msk.f32.gmra.mxu1 %vm664_vm6, %v1432_v37 }
 0x3df   :  { %v1557_v6 = vpop.f32.mrf.mxu2 }
 0x3e6   :  { %v1492_v42 = vpop.f32.mrf.mxu3 }
 0x3e7   :  { %v1558_v36 = vadd.f32 %v1557_v6, %v1492_v42 }
 0x3ee   :  { %v1495_v45 = vpop.f32.mrf.mxu3 }
 0x3f0   :  { %v1560_v7 = vpop.f32.mrf.mxu2 }
 0x3f1   :  { %v1631_v23 = vpop.f32.mrf.mxu0  ;;  %v1561_v59 = vadd.f32 %v1560_v7, %v1495_v45 }
 0x3f2   :  { %v1655_v2 = vadd.f32 %v1631_v23, %v1558_v36 }
 0x3f3   :  { %v1713_v44 = vpop.f32.mrf.mxu1 }
 0x3f4   :  { %v1737_v12 = vadd.f32 %v1713_v44, %v1655_v2 }
 0x3f6   :  { %v1746_v51 = vadd.f32 %v1745_v13, %v1737_v12 }
 0x3f8   :  { %v1754_v37 = vsel %vm127_vm1, %v1746_v51, 0.0 }
 0x3fc   :  { %v1634_v10 = vpop.f32.mrf.mxu0 }
 0x3fd   :  { %v1656_v61 = vadd.f32 %v1634_v10, %v1561_v59 }
 0x3ff   :  { %v1498_v19 = vpop.f32.mrf.mxu3 }
 0x401   :  { %v1563_v41 = vpop.f32.mrf.mxu2 }
 0x402   :  { %v1564_v50 = vadd.f32 %v1563_v41, %v1498_v19 }
 0x407   :  { %v1716_v25 = vpop.f32.mrf.mxu1 }
 0x408   :  { %v1738_v54 = vadd.f32 %v1716_v25, %v1656_v61 }
 0x409   :  { %v1501_v48 = vpop.f32.mrf.mxu3 }
 0x40a   :  { %v1747_v16 = vadd.f32 %v1745_v13, %v1738_v54 }
 0x40b   :  { %v1566_v18 = vpop.f32.mrf.mxu2 }
 0x40c   :  { %v1567_v14 = vadd.f32 %v1566_v18, %v1501_v48  ;;  %v1755_v47 = vsel %vm127_vm1, %v1747_v16, 0.0 }
 0x40d   :  { %v1756_v45 = vadd.f32 %v1755_v47, %v1754_v37 }
 0x40e   :  { %v1637_v28 = vpop.f32.mrf.mxu0 }
 0x40f   :  { %v1719_v5 = vpop.f32.mrf.mxu1  ;;  %v1657_v27 = vadd.f32 %v1637_v28, %v1564_v50 }
 0x411   :  { %v1739_v55 = vadd.f32 %v1719_v5, %v1657_v27 }
 0x413   :  { %v1748_v8 = vadd.f32 %v1745_v13, %v1739_v55 }
 0x415   :  { %v1757_v42 = vsel %vm127_vm1, %v1748_v8, 0.0 }
 0x416   :  { %v1758_v41 = vadd.f32 %v1757_v42, %v1756_v45 }
 0x418   :  { %v1640_v20 = vpop.f32.mrf.mxu0 }
 0x419   :  { %v1658_v21 = vadd.f32 %v1640_v20, %v1567_v14 }
 0x41a   :  { %v1504_v22 = vpop.f32.mrf.mxu3 }
 0x41d   :  { %v1569_v40 = vpop.f32.mrf.mxu2 }
 0x41e   :  { %v1570_v11 = vadd.f32 %v1569_v40, %v1504_v22 }
 0x41f   :  { %v1722_v43 = vpop.f32.mrf.mxu1 }
 0x420   :  { %v1740_v62 = vadd.f32 %v1722_v43, %v1658_v21 }
 0x422   :  { %v1749_v58 = vadd.f32 %v1745_v13, %v1740_v62 }
 0x424   :  { %v1759_v44 = vsel %vm127_vm1, %v1749_v58, 0.0 }
 0x425   :  { %v1572_v4 = vpop.f32.mrf.mxu2  ;;  %v1760_v18 = vadd.f32 %v1759_v44, %v1758_v41 }
 0x427   :  { %v1643_v56 = vpop.f32.mrf.mxu0 }
 0x428   :  { %v1659_v38 = vadd.f32 %v1643_v56, %v1570_v11 }
 0x429   :  { %v1507_v3 = vpop.f32.mrf.mxu3 }
 0x42a   :  { %v1573_v31 = vadd.f32 %v1572_v4, %v1507_v3 }
 0x42d   :  { %v1725_v9 = vpop.f32.mrf.mxu1 }
 0x42e   :  { %v1741_v26 = vadd.f32 %v1725_v9, %v1659_v38 }
 0x430   :  { %v1750_v6 = vadd.f32 %v1745_v13, %v1741_v26 }
 0x432   :  { %v1575_v63 = vpop.f32.mrf.mxu2  ;;  %v1761_v25 = vsel %vm127_vm1, %v1750_v6, 0.0 }
 0x433   :  { %v1762_v20 = vadd.f32 %v1761_v25, %v1760_v18  ;;  %v46_v25 = vld [vmem:[%s6799_s2 + $0x40] sm:$0xff]  ;;  %v44_v18 = vld [vmem:[%s6799_s2 + $0x30] sm:$0xff] }
 0x434   :  { %1895 = vmatpush.msrb.mxu3 %v46_v25 }
 0x437   :  { %v1646_v49 = vpop.f32.mrf.mxu0 }
 0x438   :  { %v1660_v60 = vadd.f32 %v1646_v49, %v1573_v31 }
 0x439   :  { %v1510_v1 = vpop.f32.mrf.mxu3 }
 0x43a   :  { %v1576_v33 = vadd.f32 %v1575_v63, %v1510_v1 }
 0x440   :  { %v1728_v57 = vpop.f32.mrf.mxu1 }
 0x441   :  { %v1649_v0 = vpop.f32.mrf.mxu0  ;;  %v1742_v39 = vadd.f32 %v1728_v57, %v1660_v60  ;;  %v1513_v30 = vpop.f32.mrf.mxu3 }
 0x442   :  { %v1661_v24 = vadd.f32 %v1649_v0, %v1576_v33 }
 0x443   :  { %v1578_v46 = vpop.f32.mrf.mxu2  ;;  %v1751_v10 = vadd.f32 %v1745_v13, %v1742_v39 }
 0x444   :  { %v1579_v19 = vadd.f32 %v1578_v46, %v1513_v30 }
 0x445   :  { %v1763_v5 = vsel %vm127_vm1, %v1751_v10, 0.0 }
 0x446   :  { %v1764_v56 = vadd.f32 %v1763_v5, %v1762_v20  ;;  %v43_v20 = vld [vmem:[%s6799_s2 + $0x28] sm:$0xff] }
 0x448   :  { %v1731_v52 = vpop.f32.mrf.mxu1 }
 0x449   :  { %v1743_v23 = vadd.f32 %v1731_v52, %v1661_v24 }
 0x44a   :  { %v1652_v7 = vpop.f32.mrf.mxu0 }
 0x44b   :  { %v1752_v28 = vadd.f32 %v1745_v13, %v1743_v23  ;;  %v1662_v48 = vadd.f32 %v1652_v7, %v1579_v19 }
 0x44d   :  { %v1765_v40 = vsel %vm127_vm1, %v1752_v28, 0.0 }
 0x44e   :  { %v1766_v4 = vadd.f32 %v1765_v40, %v1764_v56 }
 0x450   :  { %v1734_v22 = vpop.f32.mrf.mxu1 }
 0x451   :  { %v1744_v43 = vadd.f32 %v1734_v22, %v1662_v48 }
 0x453   :  { %v1753_v3 = vadd.f32 %v1745_v13, %v1744_v43 }
 0x455   :  { %v1767_v9 = vsel %vm127_vm1, %v1753_v3, 0.0 }
 0x456   :  { %v1768_v49 = vadd.f32 %v1767_v9, %v1766_v4 }
 0x458   :  { %v1769_v36 = vrot.slane %v1768_v49, 4 }
 0x45a   :  { %v1770_v59 = vadd.f32 %v1769_v36, %v1768_v49  ;;  %v1833_v49 = vperm.slane %v5425_v15, 4 }
 0x45c   :  { %v1771_v50 = vrot.slane %v1770_v59, 2 }
 0x45e   :  { %v1772_v2 = vadd.f32 %v1771_v50, %v1770_v59  ;;  %v1842_v50 = vperm.slane %v5425_v15, 5 }
 0x460   :  { %v1773_v61 = vrot.slane %v1772_v2, 1 }
 0x462   :  { %v1774_v27 = vadd.f32 %v1773_v61, %v1772_v2 }
 0x464   :  { %v1775_v1 = vmul.f32 %v1774_v27, %v4166_v53 }
 0x466   :  { %v1776_v54 = vsub.f32 %v1746_v51, %v1775_v1  ;;  %v1777_v14 = vsub.f32 %v1747_v16, %v1775_v1  ;;  %v5437_v12 = vsub.f32 %v1748_v8, %v1775_v1  ;;  %v5439_v63 = vsub.f32 %v1749_v58, %v1775_v1 }
 0x467   :  { %v5441_v57 = vsub.f32 %v1750_v6, %v1775_v1  ;;  %v1781_v11 = vsub.f32 %v1751_v10, %v1775_v1  ;;  %v1782_v31 = vsub.f32 %v1752_v28, %v1775_v1  ;;  %v1783_v26 = vsub.f32 %v1753_v3, %v1775_v1  ;;  %v45_v28 = vld [vmem:[%s6799_s2 + $0x38] sm:$0xff] }
 0x468   :  { %v1784_v13 = vmul.f32 %v1776_v54, %v1776_v54  ;;  %v1785_v55 = vmul.f32 %v1777_v14, %v1777_v14  ;;  %v1786_v21 = vmul.f32 %v5437_v12, %v5437_v12  ;;  %v1787_v0 = vmul.f32 %v5439_v63, %v5439_v63  ;;  %1896 = vmatpush.msrb.mxu3 %v45_v28 }
 0x469   :  { %v1788_v33 = vmul.f32 %v5441_v57, %v5441_v57  ;;  %v1789_v60 = vmul.f32 %v1781_v11, %v1781_v11  ;;  %v1790_v58 = vmul.f32 %v1782_v31, %v1782_v31  ;;  %v1791_v46 = vmul.f32 %v1783_v26, %v1783_v26 }
 0x46a   :  { %v1792_v62 = vsel %vm127_vm1, %v1784_v13, 0.0  ;;  %v1793_v38 = vsel %vm127_vm1, %v1785_v55, 0.0  ;;  %v1795_v51 = vsel %vm127_vm1, %v1786_v21, 0.0  ;;  %v1797_v24 = vsel %vm127_vm1, %v1787_v0, 0.0  ;;  %1897 = vmatpush.msrb.mxu3 %v44_v18 }
 0x46b   :  { %v1794_v16 = vadd.f32 %v1793_v38, %v1792_v62  ;;  %v1799_v39 = vsel %vm127_vm1, %v1788_v33, 0.0  ;;  %v1801_v52 = vsel %vm127_vm1, %v1789_v60, 0.0  ;;  %v1803_v42 = vsel %vm127_vm1, %v1790_v58, 0.0 }
 0x46c   :  { %v1805_v23 = vsel %vm127_vm1, %v1791_v46, 0.0  ;;  %1898 = vmatpush.msrb.mxu3 %v43_v20 }
 0x46d   :  { %v1796_v8 = vadd.f32 %v1795_v51, %v1794_v16 }
 0x46f   :  { %v1798_v47 = vadd.f32 %v1797_v24, %v1796_v8 }
 0x471   :  { %v1800_v30 = vadd.f32 %v1799_v39, %v1798_v47 }
 0x473   :  { %v1802_v37 = vadd.f32 %v1801_v52, %v1800_v30 }
 0x475   :  { %v1804_v6 = vadd.f32 %v1803_v42, %v1802_v37  ;;  %v48_v37 = vld [vmem:[%s6800_s3 + $0x8] sm:$0xff] }
 0x477   :  { %v1806_v45 = vadd.f32 %v1805_v23, %v1804_v6 }
 0x479   :  { %v1807_v7 = vrot.slane %v1806_v45, 4 }
 0x47b   :  { %v1808_v44 = vadd.f32 %v1807_v7, %v1806_v45 }
 0x47d   :  { %v1809_v10 = vrot.slane %v1808_v44, 2 }
 0x47f   :  { %v1810_v19 = vadd.f32 %v1809_v10, %v1808_v44 }
 0x481   :  { %v1811_v41 = vrot.slane %v1810_v19, 1 }
 0x483   :  { %v1812_v48 = vadd.f32 %v1811_v41, %v1810_v19 }
 0x485   :  { %v1813_v5 = vmul.f32 %v1812_v48, %v4166_v53 }
 0x487   :  { %v1814_v22 = vadd.f32 1e-05, %v1813_v5 }
 0x489   :  { %3900 = vrsqrt.f32 %v1814_v22  ;;  %vm1821_vm11 = vweird.f32 %v1814_v22 }
 0x48f   :  { %v3901_v40 = vpop.eup %3900 }
 0x490   :  { %v1816_v43 = vmul.f32 %v3901_v40, %v1814_v22  ;;  %vm1822_vm9 = vweird.f32 %v3901_v40 }
 0x491   :  { %vm1823_vm10 = vmor %vm1821_vm11, %vm1822_vm9 }
 0x492   :  { %v1817_v56 = vmul.f32 %v3901_v40, %v1816_v43 }
 0x494   :  { %v1818_v3 = vmul.f32 0.5, %v1817_v56  ;;  %v6884_v56 = vld [vmem:[#allocation16_spill] sm:$0xff] }
 0x496   :  { %v1819_v4 = vsub.f32 1.5, %v1818_v3 }
 0x498   :  { %v1820_v9 = vmul.f32 %v3901_v40, %v1819_v4 }
 0x49a   :  { %v1824_v36 = vsel %vm1823_vm10, %v3901_v40, %v1820_v9  ;;  %v6883_v40 = vld [vmem:[#allocation13_spill] sm:$0xff] }
 0x49b   :  { %v1832_v59 = vmul.f32 %v1824_v36, %v1783_v26  ;;  %v1825_v2 = vmul.f32 %v1824_v36, %v1776_v54  ;;  %v1831_v61 = vmul.f32 %v1824_v36, %v1782_v31  ;;  %v1826_v27 = vmul.f32 %v1824_v36, %v1777_v14 }
 0x49c   :  { %v1830_v21 = vmul.f32 %v1824_v36, %v1781_v11  ;;  %v1829_v16 = vmul.f32 %v1824_v36, %v5441_v57  ;;  %v1827_v15 = vmul.f32 %v1824_v36, %v5437_v12  ;;  %v1828_v54 = vmul.f32 %v1824_v36, %v5439_v63 }
 0x49d   :  { %v1841_v1 = vmul.f32 %v1833_v49, %v1832_v59  ;;  %v1834_v13 = vmul.f32 %v1833_v49, %v1825_v2  ;;  %v1840_v55 = vmul.f32 %v1833_v49, %v1831_v61  ;;  %v1835_v38 = vmul.f32 %v1833_v49, %v1826_v27 }
 0x49e   :  { %v1839_v26 = vmul.f32 %v1833_v49, %v1830_v21  ;;  %v1838_v31 = vmul.f32 %v1833_v49, %v1829_v16  ;;  %v1836_v60 = vmul.f32 %v1833_v49, %v1827_v15  ;;  %v1837_v39 = vmul.f32 %v1833_v49, %v1828_v54 }
 0x49f   :  { %v1850_v0 = vadd.f32 %v1842_v50, %v1841_v1  ;;  %v1843_v62 = vadd.f32 %v1842_v50, %v1834_v13  ;;  %v1849_v8 = vadd.f32 %v1842_v50, %v1840_v55  ;;  %v1844_v11 = vadd.f32 %v1842_v50, %v1835_v38 }
 0x4a0   :  { %v1848_v57 = vadd.f32 %v1842_v50, %v1839_v26  ;;  %v1847_v58 = vadd.f32 %v1842_v50, %v1838_v31  ;;  %v1845_v63 = vadd.f32 %v1842_v50, %v1836_v60  ;;  %v1846_v30 = vadd.f32 %v1842_v50, %v1837_v39 }
 0x4a1   :  { %v5473_v33 = vmax.f32 %v1850_v0, 0.0  ;;  %v5475_v51 = vmax.f32 %v1843_v62, 0.0  ;;  %v5483_v14 = vmax.f32 %v1849_v8, 0.0  ;;  %v5487_v24 = vmax.f32 %v1844_v11, 0.0 }
 0x4a2   :  { %v5489_v47 = vmax.f32 %v1848_v57, 0.0  ;;  %v5495_v12 = vmax.f32 %v1847_v58, 0.0  ;;  %v5499_v46 = vmax.f32 %v1845_v63, 0.0  ;;  %v5501_v52 = vmax.f32 %v1846_v30, 0.0  ;;  %v6885_v58 = vld [vmem:[#allocation14_spill] sm:$0xff] }
 0x4a3   :  { %6878 = vst [vmem:[#allocation19_spill] sm:$0xff] %v5473_v33  ;;  %3661 = vmatmul.msk.f32.vlgmr.msrb.gmra.mxu3 %vm127_vm1, %v5475_v51  ;;  %3669 = vmatpush.xpose.msk.msra.mxu1 %vm127_vm1, %v5473_v33 }
 0x4a4   :  { %6879 = vst [vmem:[#allocation20_spill] sm:$0xff] %v5483_v14 }
 0x4a5   :  { %6880 = vst [vmem:[#allocation21_spill] sm:$0xff] %v5489_v47 }
 0x4a6   :  { %6881 = vst [vmem:[#allocation22_spill] sm:$0xff] %v5495_v12 }
 0x4a7   :  { %3670 = vmatpush.xpose.msk.msra.mxu1 %vm127_vm1, %v5483_v14  ;;  %6882 = vst [vmem:[#allocation23_spill] sm:$0xff] %v5501_v52 }
 0x4ab   :  { %3662 = vmatmul.msk.f32.gmra.mxu3 %vm127_vm1, %v5487_v24  ;;  %3671 = vmatpush.xpose.msk.msra.mxu1 %vm127_vm1, %v5489_v47 }
 0x4af   :  { %3672 = vmatpush.xpose.msk.msra.mxu1 %vm127_vm1, %v5495_v12 }
 0x4b3   :  { %3663 = vmatmul.msk.f32.gmra.mxu3 %vm127_vm1, %v5499_v46  ;;  %3673 = vmatpush.xpose.msk.msra.mxu1 %vm127_vm1, %v5501_v52 }
 0x4b7   :  { %3674 = vmatpush.xpose.msk.msra.mxu1 %vm127_vm1, %v5499_v46 }
 0x4bb   :  { %3664 = vmatmul.msk.f32.gmra.mxu3 %vm127_vm1, %v5501_v52  ;;  %3675 = vmatpush.xpose.msk.msra.mxu1 %vm127_vm1, %v5487_v24 }
 0x4bf   :  { %3676 = vmatpush.xpose.msk.msra.mxu1 %vm127_vm1, %v5475_v51 }
 0x4c2   :  { %3677 = vmatmul.msk.f32.vlgmr.msra.gmra.mxu1 %vm127_vm1, %v48_v37 }
 0x4c3   :  { %3665 = vmatmul.msk.f32.gmra.mxu3 %vm127_vm1, %v5495_v12 }
 0x4cb   :  { %3666 = vmatmul.msk.f32.gmra.mxu3 %vm127_vm1, %v5489_v47 }
 0x4d3   :  { %3667 = vmatmul.msk.f32.gmra.mxu3 %vm127_vm1, %v5483_v14 }
 0x4db   :  { %3668 = vmatmul.msk.f32.gmra.mxu3 %vm127_vm1, %v5473_v33 }
 0x526   :  { %v5527_v42 = vpop.f32.mrf.mxu3 }
 0x527   :  { %v3059_v11 = vmul.f32 %v5527_v42, %v6883_v40  ;;  %v3051_v57 = vmul.f32 %v5527_v42, %v4308_v34  ;;  %v3197_v31 = vmul.f32 %v5527_v42, %v4304_v32  ;;  %v3278_v60 = vmul.f32 %v5527_v42, %v4310_v35 }
 0x52e   :  { %v5529_v6 = vpop.f32.mrf.mxu3 }
 0x52f   :  { %v3052_v26 = vmul.f32 %v5529_v6, %v4308_v34  ;;  %v3198_v15 = vmul.f32 %v5529_v6, %v4304_v32  ;;  %v3279_v54 = vmul.f32 %v5529_v6, %v4310_v35 }
 0x536   :  { %v5531_v23 = vpop.f32.mrf.mxu3 }
 0x537   :  { %v3061_v62 = vmul.f32 %v5531_v23, %v6883_v40  ;;  %v3053_v38 = vmul.f32 %v5531_v23, %v4308_v34  ;;  %v3199_v16 = vmul.f32 %v5531_v23, %v4304_v32  ;;  %v3280_v8 = vmul.f32 %v5531_v23, %v4310_v35  ;;  %v5639_v23 = vld [vmem:[%s6798_s1] sm:$0xff] }
 0x53e   :  { %v1909_v45 = vpop.f32.mrf.mxu3 }
 0x53f   :  { %v5533_v7 = vpop.f32.mrf.mxu1  ;;  %v3062_v13 = vmul.f32 %v1909_v45, %v6883_v40  ;;  %v3054_v55 = vmul.f32 %v1909_v45, %v4308_v34  ;;  %v3200_v21 = vmul.f32 %v1909_v45, %v4304_v32  ;;  %v3281_v0 = vmul.f32 %v1909_v45, %v4310_v35 }
 0x540   :  { %v5536_v44 = vperm.slane %v5533_v7, 4  ;;  %v5539_v10 = vperm.slane %v5533_v7, 5  ;;  %v5542_v19 = vperm.slane %v5533_v7, 7  ;;  %v5548_v25 = vperm.slane %v5533_v7, 6 }
 0x541   :  { %v2146_v39 = vrot.slane %v5533_v7, 3 }
 0x542   :  { %2099 = vperm.xlu1 %3747, %v5542_v19   ;;  %2001 = vperm.xlu0 %3746, %v5539_v10  }
 0x543   :  { %1952 = vperm.xlu2 %3748, %v5536_v44   ;;  %v5631_v63 = vperm.slane %v2146_v39, 0 }
 0x546   :  { %v1912_v41 = vpop.f32.mrf.mxu3 }
 0x547   :  { %v3063_v2 = vmul.f32 %v1912_v41, %v6883_v40  ;;  %v3055_v61 = vmul.f32 %v1912_v41, %v4308_v34  ;;  %v3201_v27 = vmul.f32 %v1912_v41, %v4304_v32  ;;  %v3282_v1 = vmul.f32 %v1912_v41, %v4310_v35 }
 0x54a   :  { %3749 = vset.pattern.permute.xlu1 %v4264_v17  ;;  %3751 = vset.pattern.permute.xlu0 %v4296_v29 }
 0x54b   :  { %2050 = vperm.xlu2 %3748, %v5548_v25  }
 0x54e   :  { %v1915_v28 = vpop.f32.mrf.mxu3 }
 0x54f   :  { %v3064_v49 = vmul.f32 %v1915_v28, %v6883_v40  ;;  %v3056_v36 = vmul.f32 %v1915_v28, %v4308_v34  ;;  %v3202_v59 = vmul.f32 %v1915_v28, %v4304_v32  ;;  %v3283_v50 = vmul.f32 %v1915_v28, %v4310_v35 }
 0x552   :  { %2007 = vperm.xlu1 %3749, %v5539_v10   ;;  %2013 = vperm.xlu0 %3751, %v5539_v10  }
 0x553   :  { %3750 = vset.pattern.permute.xlu2 %v4264_v17 }
 0x556   :  { %v1918_v48 = vpop.f32.mrf.mxu3 }
 0x557   :  { %v3065_v17 = vmul.f32 %v1918_v48, %v6883_v40  ;;  %v3057_v3 = vmul.f32 %v1918_v48, %v4308_v34  ;;  %v3203_v4 = vmul.f32 %v1918_v48, %v4304_v32  ;;  %v3284_v9 = vmul.f32 %v1918_v48, %v4310_v35 }
 0x55a   :  { %2105 = vperm.xlu1 %3749, %v5542_v19   ;;  %2062 = vperm.xlu0 %3751, %v5548_v25  }
 0x55b   :  { %1958 = vperm.xlu2 %3750, %v5536_v44  }
 0x55e   :  { %v1921_v18 = vpop.f32.mrf.mxu3 }
 0x55f   :  { %v3058_v5 = vmul.f32 %v1921_v18, %v4308_v34  ;;  %v3204_v20 = vmul.f32 %v1921_v18, %v4304_v32  ;;  %v3285_v22 = vmul.f32 %v1921_v18, %v4310_v35  ;;  %v3066_v43 = vmul.f32 %v1921_v18, %v6883_v40  ;;  %v6886_v34 = vld [vmem:[#allocation18_spill] sm:$0xff]  ;;  %v6887_v32 = vld [vmem:[#allocation17_spill] sm:$0xff]  ;;  %v6888_v35 = vld [vmem:[#allocation15_spill] sm:$0xff] }
 0x561   :  { %3099 = vmatpush.msrb.mxu2 %v3066_v43  ;;  %3164 = vmatpush.msrb.mxu0 %v3058_v5  ;;  %v2144_v5 = vrot.slane %v5533_v7, 1 }
 0x562   :  { %3237 = vmatpush.msrb.mxu1 %v3204_v20  ;;  %3318 = vmatpush.msra.mxu3 %v3285_v22 }
 0x563   :  { %2056 = vperm.xlu1 %3749, %v5548_v25   ;;  %3756 = vset.pattern.permute.xlu0 %v6884_v56 }
 0x564   :  { %3752 = vset.pattern.permute.xlu2 %v4296_v29  ;;  %3100 = vmatpush.msrb.mxu2 %v3065_v17 }
 0x565   :  { %3165 = vmatpush.msrb.mxu0 %v3057_v3  ;;  %3238 = vmatpush.msrb.mxu1 %v3203_v4  ;;  %v2145_v3 = vrot.slane %v5533_v7, 2 }
 0x566   :  { %3319 = vmatpush.msra.mxu3 %v3284_v9  ;;  %3101 = vmatpush.msrb.mxu2 %v3064_v49 }
 0x567   :  { %3166 = vmatpush.msrb.mxu0 %v3056_v36  ;;  %3239 = vmatpush.msrb.mxu1 %v3202_v59  ;;  %v5671_v59 = vperm.slane %v2145_v3, 0 }
 0x568   :  { %3320 = vmatpush.msra.mxu3 %v3283_v50  ;;  %3102 = vmatpush.msrb.mxu2 %v3063_v2 }
 0x569   :  { %3167 = vmatpush.msrb.mxu0 %v3055_v61  ;;  %3240 = vmatpush.msrb.mxu1 %v3201_v27 }
 0x56a   :  { %3321 = vmatpush.msra.mxu3 %v3282_v1  ;;  %3103 = vmatpush.msrb.mxu2 %v3062_v13  ;;  %v5680_v13 = vld [vmem:[%s6798_s1 + $0x10] sm:$0xff] }
 0x56b   :  { %3168 = vmatpush.msrb.mxu0 %v3054_v55  ;;  %3241 = vmatpush.msrb.mxu1 %v3200_v21 }
 0x56c   :  { %3322 = vmatpush.msra.mxu3 %v3281_v0  ;;  %3753 = vset.pattern.permute.xlu1 %v4296_v29  ;;  %v3060_v29 = vmul.f32 %v5529_v6, %v6883_v40  ;;  %v5655_v40 = vperm.slane %v2144_v5, 0 }
 0x56d   :  { %2025 = vperm.xlu0 %3756, %v5539_v10   ;;  %2111 = vperm.xlu2 %3752, %v5542_v19  }
 0x56e   :  { %3104 = vmatpush.msrb.mxu2 %v3061_v62  ;;  %3169 = vmatpush.msrb.mxu0 %v3053_v38 }
 0x56f   :  { %3242 = vmatpush.msrb.mxu1 %v3199_v16  ;;  %3323 = vmatpush.msra.mxu3 %v3280_v8 }
 0x570   :  { %3105 = vmatpush.msrb.mxu2 %v3060_v29  ;;  %3170 = vmatpush.msrb.mxu0 %v3052_v26 }
 0x571   :  { %3243 = vmatpush.msrb.mxu1 %v3198_v15  ;;  %3324 = vmatpush.msra.mxu3 %v3279_v54 }
 0x572   :  { %3106 = vmatpush.msrb.mxu2 %v3059_v11  ;;  %3171 = vmatpush.msrb.mxu0 %v3051_v57 }
 0x573   :  { %3244 = vmatpush.msrb.mxu1 %v3197_v31  ;;  %3325 = vmatpush.msra.mxu3 %v3278_v60 }
 0x574   :  { %1964 = vperm.xlu1 %3753, %v5536_v44  }
 0x575   :  { %2074 = vperm.xlu0 %3756, %v5548_v25   ;;  %3754 = vset.pattern.permute.xlu2 %v6885_v58 }
 0x57c   :  { %3755 = vset.pattern.permute.xlu1 %v6885_v58 }
 0x57d   :  { %3761 = vset.pattern.permute.xlu0 %v6886_v34  ;;  %2019 = vperm.xlu2 %3754, %v5539_v10  }
 0x584   :  { %2117 = vperm.xlu1 %3755, %v5542_v19  }
 0x585   :  { %2037 = vperm.xlu0 %3761, %v5539_v10   ;;  %1970 = vperm.xlu2 %3754, %v5536_v44  }
 0x58c   :  { %2068 = vperm.xlu1 %3755, %v5548_v25  }
 0x58d   :  { %2086 = vperm.xlu0 %3761, %v5548_v25   ;;  %3757 = vset.pattern.permute.xlu2 %v6884_v56 }
 0x594   :  { %3758 = vset.pattern.permute.xlu1 %v6884_v56 }
 0x595   :  { %2123 = vperm.xlu2 %3757, %v5542_v19   ;;  %3765 = vset.pattern.permute.xlu0 %v6887_v32 }
 0x59c   :  { %1976 = vperm.xlu1 %3758, %v5536_v44  }
 0x59d   :  { %3759 = vset.pattern.permute.xlu2 %v6888_v35  ;;  %v5648_v28 = vpop.permute.xlu2 %1952 }
 0x5a4   :  { %3760 = vset.pattern.permute.xlu1 %v6888_v35 }
 0x5a5   :  { %2031 = vperm.xlu2 %3759, %v5539_v10   ;;  %v2051_v20 = vpop.permute.xlu2 %2050 }
 0x5a6   :  { %v2171_v11 = vadd.f32 %v5671_v59, %v2051_v20 }
 0x5ac   :  { %2129 = vperm.xlu1 %3760, %v5542_v19  }
 0x5ad   :  { %1982 = vperm.xlu2 %3759, %v5536_v44  }
 0x5b4   :  { %2080 = vperm.xlu1 %3760, %v5548_v25   ;;  %v2100_v30 = vpop.permute.xlu1 %2099  ;;  %v2002_v48 = vpop.permute.xlu0 %2001 }
 0x5b5   :  { %3763 = vset.pattern.permute.xlu2 %v6887_v32  ;;  %v2179_v37 = vadd.f32 %v5631_v63, %v2100_v30  ;;  %v5661_v49 = vpop.permute.xlu2 %1958  ;;  %v2163_v0 = vadd.f32 %v5655_v40, %v2002_v48 }
 0x5b7   :  { %v2211_v42 = vmul.f32 0.2, %v2179_v37  ;;  %v2195_v29 = vmul.f32 0.2, %v2163_v0 }
 0x5b9   :  { %v2243_v6 = vmax.f32 %v2179_v37, %v2211_v42 }
 0x5bb   :  { %v5642_v45 = vadd.f32 %v5639_v23, %v2243_v6 }
 0x5bc   :  { %3762 = vset.pattern.permute.xlu1 %v6886_v34  ;;  %v2203_v34 = vmul.f32 0.2, %v2171_v11 }
 0x5bd   :  { %2043 = vperm.xlu2 %3763, %v5539_v10   ;;  %v2355_v41 = vsel %vm664_vm6, %v5642_v45, -inf }
 0x5be   :  { %2356 = vmax.xlane.f32.xlu0 %v2355_v41  ;;  %v2235_v37 = vmax.f32 %v2171_v11, %v2203_v34 }
 0x5c4   :  { %2135 = vperm.xlu1 %3762, %v5542_v19   ;;  %v5651_v18 = vpop.permute.xlu1 %2007  ;;  %v2014_v22 = vpop.permute.xlu0 %2013 }
 0x5c5   :  { %2092 = vperm.xlu2 %3763, %v5548_v25   ;;  %v2165_v43 = vadd.f32 %v5655_v40, %v2014_v22  ;;  %v5666_v25 = vld [vmem:[%s6798_s1 + $0x8] sm:$0xff]  ;;  %v5715_v22 = vadd.f32 %v5639_v23, %v2235_v37 }
 0x5c7   :  { %v2197_v4 = vmul.f32 0.2, %v2165_v43  ;;  %v2112_v21 = vpop.permute.xlu2 %2111  ;;  %v2331_v3 = vsel %vm664_vm6, %v5715_v22, -inf }
 0x5c8   :  { %v2181_v62 = vadd.f32 %v5631_v63, %v2112_v21 }
 0x5c9   :  { %v2229_v50 = vmax.f32 %v2165_v43, %v2197_v4 }
 0x5ca   :  { %v2213_v26 = vmul.f32 0.2, %v2181_v62 }
 0x5cb   :  { %v5683_v55 = vadd.f32 %v5680_v13, %v2229_v50 }
 0x5cc   :  { %1988 = vperm.xlu1 %3762, %v5536_v44   ;;  %v2106_v10 = vpop.permute.xlu1 %2105  ;;  %v5690_v8 = vpop.permute.xlu0 %2062  ;;  %v2245_v57 = vmax.f32 %v2181_v62, %v2213_v26 }
 0x5cd   :  { %v2180_v17 = vadd.f32 %v5631_v63, %v2106_v10  ;;  %v2313_v16 = vsel %vm664_vm6, %v5683_v55, -inf }
 0x5ce   :  { %v5704_v39 = vadd.f32 %v5680_v13, %v2245_v57 }
 0x5cf   :  { %v2212_v56 = vmul.f32 0.2, %v2180_v17 }
 0x5d0   :  { %v2361_v48 = vsel %vm664_vm6, %v5704_v39, -inf }
 0x5d1   :  { %v2244_v9 = vmax.f32 %v2180_v17, %v2212_v56 }
 0x5d3   :  { %v5669_v36 = vadd.f32 %v5666_v25, %v2244_v9 }
 0x5d4   :  { %3764 = vset.pattern.permute.xlu1 %v6887_v32 }
 0x5d5   :  { %v2057_v2 = vpop.permute.xlu1 %2056  ;;  %v2358_v61 = vsel %vm664_vm6, %v5669_v36, -inf }
 0x5d6   :  { %v2172_v27 = vadd.f32 %v5671_v59, %v2057_v2  ;;  %2359 = vmax.xlane.f32.xlu0 %v2358_v61 }
 0x5d7   :  { %v2020_v54 = vpop.permute.xlu2 %2019 }
 0x5d8   :  { %v2204_v1 = vmul.f32 0.2, %v2172_v27  ;;  %v2166_v31 = vadd.f32 %v5655_v40, %v2020_v54 }
 0x5da   :  { %v2236_v38 = vmax.f32 %v2172_v27, %v2204_v1  ;;  %v2198_v32 = vmul.f32 0.2, %v2166_v31 }
 0x5dc   :  { %2141 = vperm.xlu1 %3764, %v5542_v19   ;;  %v5693_v15 = vadd.f32 %v5666_v25, %v2236_v38  ;;  %v2227_v19 = vmax.f32 %v2163_v0, %v2195_v29  ;;  %v2230_v42 = vmax.f32 %v2166_v31, %v2198_v32 }
 0x5de   :  { %2314 = vmax.xlane.f32.xlu0 %v2313_v16  ;;  %v2334_v60 = vsel %vm664_vm6, %v5693_v15, -inf  ;;  %v5701_v35 = vadd.f32 %v5639_v23, %v2227_v19 }
 0x5df   :  { %v2026_v58 = vpop.permute.xlu0 %2025  ;;  %v5725_v43 = vpop.permute.xlu2 %1970 }
 0x5e0   :  { %v2307_v41 = vsel %vm664_vm6, %v5701_v35, -inf  ;;  %v2167_v50 = vadd.f32 %v5655_v40, %v2026_v58 }
 0x5e2   :  { %v2199_v62 = vmul.f32 0.2, %v2167_v50 }
 0x5e4   :  { %1994 = vperm.xlu1 %3764, %v5536_v44   ;;  %v5707_v44 = vperm.slane %v5533_v7, 0  ;;  %v5720_v7 = vld [vmem:[%s6798_s1 + $0x18] sm:$0xff]  ;;  %v2231_v19 = vmax.f32 %v2167_v50, %v2199_v62 }
 0x5e5   :  { %v5723_v10 = vadd.f32 %v5720_v7, %v2230_v42 }
 0x5e6   :  { %2335 = vmax.xlane.f32.xlu0 %v2334_v60  ;;  %v1965_v30 = vpop.permute.xlu1 %1964  ;;  %v2155_v16 = vadd.f32 %v5707_v44, %v5648_v28  ;;  %v5751_v28 = vld [vmem:[%s6798_s1 + $0x20] sm:$0xff] }
 0x5e7   :  { %v2157_v6 = vadd.f32 %v5707_v44, %v1965_v30  ;;  %v2075_v5 = vpop.permute.xlu0 %2074  ;;  %v2316_v4 = vsel %vm664_vm6, %v5723_v10, -inf  ;;  %v5757_v42 = vadd.f32 %v5751_v28, %v2231_v19 }
 0x5e8   :  { %v2175_v17 = vadd.f32 %v5671_v59, %v2075_v5  ;;  %v2187_v60 = vmul.f32 0.2, %v2155_v16 }
 0x5e9   :  { %v2189_v20 = vmul.f32 0.2, %v2157_v6 }
 0x5ea   :  { %v2207_v27 = vmul.f32 0.2, %v2175_v17 }
 0x5eb   :  { %v2221_v56 = vmax.f32 %v2157_v6, %v2189_v20  ;;  %v2219_v6 = vmax.f32 %v2155_v16, %v2187_v60  ;;  %v5799_v60 = vld [vmem:[%s6798_s1 + $0x28] sm:$0xff] }
 0x5ec   :  { %v2239_v29 = vmax.f32 %v2175_v17, %v2207_v27 }
 0x5ed   :  { %v5735_v21 = vadd.f32 %v5680_v13, %v2221_v56 }
 0x5ee   :  { %2308 = vmax.xlane.f32.xlu2 %v2307_v41  ;;  %2362 = vmax.xlane.f32.xlu0 %v2361_v48  ;;  %v5754_v34 = vadd.f32 %v5751_v28, %v2239_v29  ;;  %v2164_v41 = vadd.f32 %v5655_v40, %v5651_v18  ;;  %v5773_v18 = vld [vmem:[%s6798_s1 + $0x30] sm:$0xff] }
 0x5ef   :  { %v2124_v0 = vpop.permute.xlu2 %2123  ;;  %v2289_v54 = vsel %vm664_vm6, %v5735_v21, -inf }
 0x5f0   :  { %v2183_v57 = vadd.f32 %v5631_v63, %v2124_v0  ;;  %v2343_v20 = vsel %vm664_vm6, %v5754_v34, -inf }
 0x5f2   :  { %v2215_v37 = vmul.f32 0.2, %v2183_v57 }
 0x5f4   :  { %v2247_v17 = vmax.f32 %v2183_v57, %v2215_v37  ;;  %v2173_v37 = vadd.f32 %v5671_v59, %v5690_v8 }
 0x5f6   :  { %2332 = vmax.xlane.f32.xlu2 %v2331_v3  ;;  %v2118_v9 = vpop.permute.xlu1 %2117  ;;  %2317 = vmax.xlane.f32.xlu0 %v2316_v4  ;;  %v2319_v3 = vsel %vm664_vm6, %v5757_v42, -inf  ;;  %v5768_v4 = vadd.f32 %v5639_v23, %v2219_v6  ;;  %v5779_v27 = vadd.f32 %v5751_v28, %v2247_v17  ;;  %v2156_v23 = vadd.f32 %v5707_v44, %v5661_v49 }
 0x5f7   :  { %v2182_v2 = vadd.f32 %v5631_v63, %v2118_v9  ;;  %v2038_v61 = vpop.permute.xlu0 %2037  ;;  %v2196_v9 = vmul.f32 0.2, %v2164_v41 }
 0x5f8   :  { %v2169_v26 = vadd.f32 %v5655_v40, %v2038_v61  ;;  %v2283_v0 = vsel %vm664_vm6, %v5768_v4, -inf  ;;  %v2188_v19 = vmul.f32 0.2, %v2156_v23 }
 0x5f9   :  { %v2214_v1 = vmul.f32 0.2, %v2182_v2  ;;  %v2228_v62 = vmax.f32 %v2164_v41, %v2196_v9  ;;  %v2158_v9 = vadd.f32 %v5707_v44, %v5725_v43 }
 0x5fa   :  { %v2201_v58 = vmul.f32 0.2, %v2169_v26 }
 0x5fb   :  { %v2246_v38 = vmax.f32 %v2182_v2, %v2214_v1  ;;  %v5794_v49 = vadd.f32 %v5666_v25, %v2228_v62 }
 0x5fc   :  { %v2233_v48 = vmax.f32 %v2169_v26, %v2201_v58 }
 0x5fd   :  { %v5743_v11 = vadd.f32 %v5720_v7, %v2246_v38  ;;  %v2310_v41 = vsel %vm664_vm6, %v5794_v49, -inf }
 0x5fe   :  { %2290 = vmax.xlane.f32.xlu2 %v2289_v54  ;;  %v5776_v2 = vadd.f32 %v5773_v18, %v2233_v48  ;;  %v2367_v54 = vsel %vm664_vm6, %v5779_v27, -inf }
 0x5ff   :  { %v2364_v31 = vsel %vm664_vm6, %v5743_v11, -inf  ;;  %v2087_v32 = vpop.permute.xlu0 %2086  ;;  %v2032_v30 = vpop.permute.xlu2 %2031 }
 0x600   :  { %2365 = vmax.xlane.f32.xlu0 %v2364_v31  ;;  %v2177_v5 = vadd.f32 %v5671_v59, %v2087_v32  ;;  %v2168_v56 = vadd.f32 %v5655_v40, %v2032_v30  ;;  %v2325_v16 = vsel %vm664_vm6, %v5776_v2, -inf  ;;  %v2069_v32 = vpop.permute.xlu1 %2068  ;;  %v2220_v30 = vmax.f32 %v2156_v23, %v2188_v19 }
 0x601   :  { %v2174_v62 = vadd.f32 %v5671_v59, %v2069_v32 }
 0x602   :  { %v2209_v50 = vmul.f32 0.2, %v2177_v5  ;;  %v2200_v61 = vmul.f32 0.2, %v2168_v56  ;;  %v5813_v17 = vadd.f32 %v5666_v25, %v2220_v30 }
 0x603   :  { %v2206_v43 = vmul.f32 0.2, %v2174_v62 }
 0x604   :  { %v2241_v38 = vmax.f32 %v2177_v5, %v2209_v50  ;;  %v2232_v29 = vmax.f32 %v2168_v56, %v2200_v61  ;;  %v2286_v50 = vsel %vm664_vm6, %v5813_v17, -inf }
 0x606   :  { %2344 = vmax.xlane.f32.xlu2 %v2343_v20  ;;  %v5791_v57 = vadd.f32 %v5773_v18, %v2241_v38  ;;  %v5802_v58 = vadd.f32 %v5799_v60, %v2232_v29  ;;  %v2205_v20 = vmul.f32 0.2, %v2173_v37  ;;  %v2238_v29 = vmax.f32 %v2174_v62, %v2206_v43  ;;  %v4040_v43 = vld [vmem:[%s6798_s1 + $0x38] sm:$0xff] }
 0x607   :  { %v1983_v1 = vpop.permute.xlu2 %1982 }
 0x608   :  { %2320 = vmax.xlane.f32.xlu0 %v2319_v3  ;;  %v2160_v26 = vadd.f32 %v5707_v44, %v1983_v1  ;;  %v2349_v6 = vsel %vm664_vm6, %v5791_v57, -inf  ;;  %v2322_v5 = vsel %vm664_vm6, %v5802_v58, -inf  ;;  %v2237_v3 = vmax.f32 %v2173_v37, %v2205_v20 }
 0x609   :  { %v2190_v1 = vmul.f32 0.2, %v2158_v9 }
 0x60a   :  { %v2192_v31 = vmul.f32 0.2, %v2160_v26  ;;  %v5825_v25 = vadd.f32 %v5680_v13, %v2237_v3 }
 0x60b   :  { %v2222_v23 = vmax.f32 %v2158_v9, %v2190_v1 }
 0x60c   :  { %v2224_v48 = vmax.f32 %v2160_v26, %v2192_v31  ;;  %v2337_v38 = vsel %vm664_vm6, %v5825_v25, -inf  ;;  %v5837_v31 = vadd.f32 %v5720_v7, %v2238_v29 }
 0x60e   :  { %2326 = vmax.xlane.f32.xlu2 %v2325_v16  ;;  %2284 = vmax.xlane.f32.xlu1 %v2283_v0  ;;  %v5816_v56 = vadd.f32 %v5799_v60, %v2224_v48  ;;  %v1977_v8 = vpop.permute.xlu1 %1976  ;;  %v5831_v16 = vadd.f32 %v5720_v7, %v2222_v23 }
 0x60f   :  { %v2159_v26 = vadd.f32 %v5707_v44, %v1977_v8 }
 0x610   :  { %2368 = vmax.xlane.f32.xlu0 %v2367_v54  ;;  %v2298_v61 = vsel %vm664_vm6, %v5816_v56, -inf  ;;  %v2292_v54 = vsel %vm664_vm6, %v5831_v16, -inf }
 0x611   :  { %v2191_v19 = vmul.f32 0.2, %v2159_v26 }
 0x613   :  { %v2223_v30 = vmax.f32 %v2159_v26, %v2191_v19 }
 0x615   :  { %v5845_v3 = vadd.f32 %v5751_v28, %v2223_v30 }
 0x616   :  { %2350 = vmax.xlane.f32.xlu2 %v2349_v6  ;;  %2311 = vmax.xlane.f32.xlu1 %v2310_v41  ;;  %v2340_v6 = vsel %vm664_vm6, %v5837_v31, -inf }
 0x617   :  { %v2044_v32 = vpop.permute.xlu2 %2043  ;;  %v2295_v1 = vsel %vm664_vm6, %v5845_v3, -inf }
 0x618   :  { %2323 = vmax.xlane.f32.xlu0 %v2322_v5  ;;  %v2170_v48 = vadd.f32 %v5655_v40, %v2044_v32 }
 0x61a   :  { %v2202_v7 = vmul.f32 0.2, %v2170_v48 }
 0x61c   :  { %v2234_v40 = vmax.f32 %v2170_v48, %v2202_v7 }
 0x61e   :  { %2287 = vmax.xlane.f32.xlu1 %v2286_v50  ;;  %v2130_v0 = vpop.permute.xlu1 %2129  ;;  %v5861_v29 = vadd.f32 %v4040_v43, %v2234_v40 }
 0x61f   :  { %v2184_v37 = vadd.f32 %v5631_v63, %v2130_v0 }
 0x620   :  { %2299 = vmax.xlane.f32.xlu0 %v2298_v61  ;;  %v2328_v19 = vsel %vm664_vm6, %v5861_v29, -inf }
 0x621   :  { %v2216_v20 = vmul.f32 0.2, %v2184_v37 }
 0x623   :  { %v2248_v50 = vmax.f32 %v2184_v37, %v2216_v20  ;;  %v2093_v37 = vpop.permute.xlu2 %2092 }
 0x625   :  { %v5856_v28 = vadd.f32 %v5799_v60, %v2248_v50 }
 0x626   :  { %2338 = vmax.xlane.f32.xlu1 %v2337_v38  ;;  %v2081_v13 = vpop.permute.xlu1 %2080 }
 0x627   :  { %v2176_v61 = vadd.f32 %v5671_v59, %v2081_v13  ;;  %v2370_v13 = vsel %vm664_vm6, %v5856_v28, -inf }
 0x629   :  { %v2208_v62 = vmul.f32 0.2, %v2176_v61 }
 0x62b   :  { %v2240_v26 = vmax.f32 %v2176_v61, %v2208_v62 }
 0x62d   :  { %v5869_v30 = vadd.f32 %v5799_v60, %v2240_v26 }
 0x62e   :  { %2293 = vmax.xlane.f32.xlu1 %v2292_v54 }
 0x636   :  { %v2136_v41 = vpop.permute.xlu1 %2135  ;;  %2341 = vmax.xlane.f32.xlu1 %v2340_v6  ;;  %v2178_v6 = vadd.f32 %v5671_v59, %v2093_v37 }
 0x637   :  { %v2185_v5 = vadd.f32 %v5631_v63, %v2136_v41  ;;  %v2357_v41 = vpop.xlane.xlu0 %2356 }
 0x638   :  { %v2210_v7 = vmul.f32 0.2, %v2178_v6  ;;  %v2403_v60 = vsub.f32 %v5642_v45, %v2357_v41 }
 0x639   :  { %v2217_v8 = vmul.f32 0.2, %v2185_v5 }
 0x63a   :  { %v2459_v26 = vmul.f32 1.442695, %v2403_v60 }
 0x63b   :  { %v2249_v9 = vmax.f32 %v2185_v5, %v2217_v8  ;;  %v2346_v5 = vsel %vm664_vm6, %v5869_v30, -inf }
 0x63c   :  { %3902 = vpow2.f32 %v2459_v26 }
 0x63d   :  { %v5851_v0 = vadd.f32 %v5773_v18, %v2249_v9 }
 0x63e   :  { %2296 = vmax.xlane.f32.xlu1 %v2295_v1  ;;  %v1989_v38 = vpop.permute.xlu1 %1988  ;;  %v2242_v1 = vmax.f32 %v2178_v6, %v2210_v7 }
 0x63f   :  { %v2373_v23 = vsel %vm664_vm6, %v5851_v0, -inf  ;;  %v2161_v54 = vadd.f32 %v5707_v44, %v1989_v38 }
 0x640   :  { %2374 = vmax.xlane.f32.xlu0 %v2373_v23 }
 0x641   :  { %v2193_v32 = vmul.f32 0.2, %v2161_v54 }
 0x642   :  { %v5894_v6 = vpop.eup %3902 }
 0x643   :  { %v2225_v48 = vmax.f32 %v2161_v54, %v2193_v32  ;;  %v5886_v54 = vadd.f32 %v4040_v43, %v2242_v1 }
 0x645   :  { %v5876_v50 = vadd.f32 %v5773_v18, %v2225_v48 }
 0x646   :  { %2371 = vmax.xlane.f32.xlu1 %v2370_v13  ;;  %v2352_v13 = vsel %vm664_vm6, %v5886_v54, -inf }
 0x647   :  { %v2301_v59 = vsel %vm664_vm6, %v5876_v50, -inf }
 0x648   :  { %2329 = vmax.xlane.f32.xlu0 %v2328_v19 }
 0x649   :  { %v2360_v40 = vpop.xlane.xlu0 %2359 }
 0x64e   :  { %v2142_v20 = vpop.permute.xlu1 %2141  ;;  %2347 = vmax.xlane.f32.xlu1 %v2346_v5  ;;  %v2547_v5 = vsel %vm664_vm6, %v5894_v6, 0.0 }
 0x64f   :  { %v2186_v8 = vadd.f32 %v5631_v63, %v2142_v20 }
 0x651   :  { %v2218_v9 = vmul.f32 0.2, %v2186_v8  ;;  %v2315_v32 = vpop.xlane.xlu0 %2314 }
 0x653   :  { %v2250_v61 = vmax.f32 %v2186_v8, %v2218_v9 }
 0x655   :  { %v5881_v23 = vadd.f32 %v4040_v43, %v2250_v61 }
 0x656   :  { %v1995_v62 = vpop.permute.xlu1 %1994  ;;  %2302 = vmax.xlane.f32.xlu1 %v2301_v59 }
 0x657   :  { %v2162_v38 = vadd.f32 %v5707_v44, %v1995_v62  ;;  %v2376_v63 = vsel %vm664_vm6, %v5881_v23, -inf }
 0x658   :  { %2377 = vmax.xlane.f32.xlu2 %v2376_v63 }
 0x659   :  { %v2194_v18 = vmul.f32 0.2, %v2162_v38  ;;  %v2336_v20 = vpop.xlane.xlu0 %2335 }
 0x65b   :  { %v2226_v45 = vmax.f32 %v2162_v38, %v2194_v18  ;;  %v2404_v18 = vsub.f32 %v5669_v36, %v2360_v40  ;;  %v2396_v36 = vsub.f32 %v5693_v15, %v2336_v20 }
 0x65d   :  { %v5890_v19 = vadd.f32 %v4040_v43, %v2226_v45 }
 0x65e   :  { %2353 = vmax.xlane.f32.xlu1 %v2352_v13 }
 0x65f   :  { %v2304_v44 = vsel %vm664_vm6, %v5890_v19, -inf }
 0x660   :  { %2305 = vmax.xlane.f32.xlu2 %v2304_v44  ;;  %v2389_v44 = vsub.f32 %v5683_v55, %v2315_v32 }
 0x661   :  { %v2309_v37 = vpop.xlane.xlu2 %2308  ;;  %v2363_v7 = vpop.xlane.xlu0 %2362 }
 0x662   :  { %v2387_v41 = vsub.f32 %v5701_v35, %v2309_v37  ;;  %v2431_v37 = vmul.f32 1.442695, %v2389_v44  ;;  %v2405_v55 = vsub.f32 %v5704_v39, %v2363_v7 }
 0x664   :  { %v2427_v48 = vmul.f32 1.442695, %v2387_v41  ;;  %v2463_v15 = vmul.f32 1.442695, %v2405_v55 }
 0x666   :  { %3904 = vpow2.f32 %v2427_v48  ;;  %2548 = vadd.xlane.f32.xlu1 %v2547_v5 }
 0x669   :  { %v2318_v9 = vpop.xlane.xlu0 %2317  ;;  %v2333_v60 = vpop.xlane.xlu2 %2332 }
 0x66a   :  { %v2395_v59 = vsub.f32 %v5715_v22, %v2333_v60  ;;  %v2461_v22 = vmul.f32 1.442695, %v2404_v18 }
 0x66c   :  { %v5899_v43 = vpop.eup %3904  ;;  %v2443_v38 = vmul.f32 1.442695, %v2395_v59 }
 0x66d   :  { %v2499_v8 = vsel %vm664_vm6, %v5899_v43, 0.0 }
 0x66e   :  { %2500 = vadd.xlane.f32.xlu2 %v2499_v8 }
 0x671   :  { %v2291_v5 = vpop.xlane.xlu2 %2290 }
 0x673   :  { %v2366_v62 = vpop.xlane.xlu0 %2365 }
 0x67b   :  { %v2321_v41 = vpop.xlane.xlu0 %2320 }
 0x681   :  { %v2285_v61 = vpop.xlane.xlu1 %2284 }
 0x682   :  { %v2379_v1 = vsub.f32 %v5768_v4, %v2285_v61  ;;  %v2381_v61 = vsub.f32 %v5735_v21, %v2291_v5  ;;  %v2390_v21 = vsub.f32 %v5723_v10, %v2318_v9 }
 0x683   :  { %v2369_v59 = vpop.xlane.xlu0 %2368 }
 0x684   :  { %v2411_v35 = vmul.f32 1.442695, %v2379_v1  ;;  %v2445_v1 = vmul.f32 1.442695, %v2396_v36  ;;  %v2415_v20 = vmul.f32 1.442695, %v2381_v61 }
 0x685   :  { %v2433_v10 = vmul.f32 1.442695, %v2390_v21  ;;  %v2345_v21 = vpop.xlane.xlu2 %2344 }
 0x686   :  { %3906 = vpow2.f32 %v2411_v35 }
 0x687   :  { %3908 = vpow2.f32 %v2443_v38 }
 0x689   :  { %v2312_v63 = vpop.xlane.xlu1 %2311 }
 0x68a   :  { %v2388_v26 = vsub.f32 %v5794_v49, %v2312_v63 }
 0x68c   :  { %v2429_v45 = vmul.f32 1.442695, %v2388_v26  ;;  %v5907_v13 = vpop.eup %3906  ;;  %v2406_v26 = vsub.f32 %v5743_v11, %v2366_v62  ;;  %v2391_v62 = vsub.f32 %v5757_v42, %v2321_v41 }
 0x68d   :  { %v2475_v4 = vsel %vm664_vm6, %v5907_v13, 0.0  ;;  %v5913_v8 = vpop.eup %3908 }
 0x68e   :  { %3910 = vpow2.f32 %v2429_v45  ;;  %2476 = vadd.xlane.f32.xlu0 %v2475_v4 }
 0x68f   :  { %3912 = vpow2.f32 %v2461_v22 }
 0x690   :  { %3914 = vpow2.f32 %v2431_v37 }
 0x691   :  { %v2288_v48 = vpop.xlane.xlu1 %2287 }
 0x692   :  { %v2380_v49 = vsub.f32 %v5813_v17, %v2288_v48  ;;  %v2523_v17 = vsel %vm664_vm6, %v5913_v8, 0.0  ;;  %v2324_v48 = vpop.xlane.xlu0 %2323 }
 0x694   :  { %v2413_v40 = vmul.f32 1.442695, %v2380_v49  ;;  %v5917_v32 = vpop.eup %3910 }
 0x695   :  { %v2502_v60 = vsel %vm664_vm6, %v5917_v32, 0.0  ;;  %v5924_v39 = vpop.eup %3912 }
 0x696   :  { %3916 = vpow2.f32 %v2413_v40  ;;  %2503 = vadd.xlane.f32.xlu1 %v2502_v60  ;;  %2524 = vadd.xlane.f32.xlu0 %v2523_v17  ;;  %v5926_v7 = vpop.eup %3914  ;;  %v2550_v44 = vsel %vm664_vm6, %v5924_v39, 0.0  ;;  %v2435_v40 = vmul.f32 1.442695, %v2391_v62 }
 0x697   :  { %3918 = vpow2.f32 %v2445_v1  ;;  %v2505_v45 = vsel %vm664_vm6, %v5926_v7, 0.0  ;;  %v2407_v1 = vsub.f32 %v5779_v27, %v2369_v59 }
 0x698   :  { %3920 = vpow2.f32 %v2463_v15 }
 0x699   :  { %v2339_v35 = vpop.xlane.xlu1 %2338  ;;  %3922 = vpow2.f32 %v2415_v20  ;;  %v2392_v20 = vsub.f32 %v5802_v58, %v2324_v48  ;;  %v2467_v27 = vmul.f32 1.442695, %v2407_v1 }
 0x69a   :  { %v2397_v63 = vsub.f32 %v5825_v25, %v2339_v35  ;;  %v2465_v25 = vmul.f32 1.442695, %v2406_v26  ;;  %3924 = vpow2.f32 %v2433_v10  ;;  %v2300_v26 = vpop.xlane.xlu0 %2299 }
 0x69b   :  { %v2437_v59 = vmul.f32 1.442695, %v2392_v20 }
 0x69c   :  { %v5929_v38 = vpop.eup %3916  ;;  %v2447_v9 = vmul.f32 1.442695, %v2397_v63 }
 0x69d   :  { %v2478_v18 = vsel %vm664_vm6, %v5929_v38, 0.0  ;;  %v5939_v4 = vpop.eup %3918 }
 0x69e   :  { %2479 = vadd.xlane.f32.xlu2 %v2478_v18  ;;  %2506 = vadd.xlane.f32.xlu1 %v2505_v45  ;;  %v5941_v37 = vpop.eup %3920  ;;  %3926 = vpow2.f32 %v2447_v9  ;;  %v2526_v36 = vsel %vm664_vm6, %v5939_v4, 0.0  ;;  %v2399_v9 = vsub.f32 %v5754_v34, %v2345_v21 }
 0x69f   :  { %2551 = vadd.xlane.f32.xlu0 %v2550_v44  ;;  %v5943_v11 = vpop.eup %3922  ;;  %3928 = vpow2.f32 %v2465_v25  ;;  %v2553_v49 = vsel %vm664_vm6, %v5941_v37, 0.0 }
 0x6a0   :  { %v2481_v55 = vsel %vm664_vm6, %v5943_v11, 0.0  ;;  %v5953_v61 = vpop.eup %3924  ;;  %3930 = vpow2.f32 %v2435_v40  ;;  %v2451_v34 = vmul.f32 1.442695, %v2399_v9 }
 0x6a1   :  { %v2294_v22 = vpop.xlane.xlu1 %2293  ;;  %v2508_v63 = vsel %vm664_vm6, %v5953_v61, 0.0 }
 0x6a2   :  { %v2382_v5 = vsub.f32 %v5831_v16, %v2294_v22  ;;  %v2384_v22 = vsub.f32 %v5816_v56, %v2300_v26 }
 0x6a4   :  { %v2417_v42 = vmul.f32 1.442695, %v2382_v5  ;;  %v5955_v60 = vpop.eup %3926 }
 0x6a5   :  { %v5958_v17 = vpop.eup %3928  ;;  %v2529_v35 = vsel %vm664_vm6, %v5955_v60, 0.0 }
 0x6a6   :  { %2554 = vadd.xlane.f32.xlu2 %v2553_v49  ;;  %2482 = vadd.xlane.f32.xlu1 %v2481_v55  ;;  %3932 = vpow2.f32 %v2417_v42  ;;  %v5968_v58 = vpop.eup %3930  ;;  %v2327_v49 = vpop.xlane.xlu2 %2326 }
 0x6a7   :  { %2527 = vadd.xlane.f32.xlu0 %v2526_v36  ;;  %v2511_v62 = vsel %vm664_vm6, %v5968_v58, 0.0  ;;  %v2421_v36 = vmul.f32 1.442695, %v2384_v22 }
 0x6a9   :  { %v2342_v41 = vpop.xlane.xlu1 %2341 }
 0x6aa   :  { %v2398_v16 = vsub.f32 %v5837_v31, %v2342_v41  ;;  %v2556_v31 = vsel %vm664_vm6, %v5958_v17, 0.0 }
 0x6ac   :  { %v2449_v15 = vmul.f32 1.442695, %v2398_v16  ;;  %v5971_v44 = vpop.eup %3932  ;;  %v2393_v16 = vsub.f32 %v5776_v2, %v2327_v49 }
 0x6ae   :  { %3934 = vpow2.f32 %v2449_v15  ;;  %2530 = vadd.xlane.f32.xlu2 %v2529_v35  ;;  %2557 = vadd.xlane.f32.xlu1 %v2556_v31  ;;  %v2439_v21 = vmul.f32 1.442695, %v2393_v16 }
 0x6af   :  { %2509 = vadd.xlane.f32.xlu0 %v2508_v63  ;;  %3936 = vpow2.f32 %v2467_v27 }
 0x6b0   :  { %3938 = vpow2.f32 %v2437_v59 }
 0x6b1   :  { %v2297_v18 = vpop.xlane.xlu1 %2296 }
 0x6b2   :  { %v2383_v45 = vsub.f32 %v5845_v3, %v2297_v18  ;;  %v2484_v3 = vsel %vm664_vm6, %v5971_v44, 0.0 }
 0x6b3   :  { %v2375_v5 = vpop.xlane.xlu0 %2374 }
 0x6b4   :  { %v5973_v10 = vpop.eup %3934  ;;  %v2419_v25 = vmul.f32 1.442695, %v2383_v45  ;;  %v2409_v15 = vsub.f32 %v5851_v0, %v2375_v5  ;;  %v2351_v0 = vpop.xlane.xlu2 %2350 }
 0x6b5   :  { %v2532_v48 = vsel %vm664_vm6, %v5973_v10, 0.0  ;;  %v5983_v40 = vpop.eup %3936 }
 0x6b6   :  { %3940 = vpow2.f32 %v2419_v25  ;;  %2512 = vadd.xlane.f32.xlu2 %v2511_v62  ;;  %2533 = vadd.xlane.f32.xlu1 %v2532_v48  ;;  %v5986_v42 = vpop.eup %3938  ;;  %v2559_v35 = vsel %vm664_vm6, %v5983_v40, 0.0  ;;  %v2471_v63 = vmul.f32 1.442695, %v2409_v15  ;;  %v2401_v25 = vsub.f32 %v5791_v57, %v2351_v0 }
 0x6b7   :  { %2485 = vadd.xlane.f32.xlu0 %v2484_v3  ;;  %3942 = vpow2.f32 %v2451_v34 }
 0x6b8   :  { %3944 = vpow2.f32 %v2421_v36  ;;  %v2455_v3 = vmul.f32 1.442695, %v2401_v25 }
 0x6b9   :  { %v2372_v55 = vpop.xlane.xlu1 %2371 }
 0x6ba   :  { %v2408_v56 = vsub.f32 %v5856_v28, %v2372_v55  ;;  %v2514_v28 = vsel %vm664_vm6, %v5986_v42, 0.0 }
 0x6bb   :  { %v2330_v2 = vpop.xlane.xlu0 %2329 }
 0x6bc   :  { %v5988_v41 = vpop.eup %3940  ;;  %v2469_v1 = vmul.f32 1.442695, %v2408_v56  ;;  %v2394_v45 = vsub.f32 %v5861_v29, %v2330_v2 }
 0x6bd   :  { %v2487_v20 = vsel %vm664_vm6, %v5988_v41, 0.0  ;;  %v5998_v26 = vpop.eup %3942 }
 0x6be   :  { %3946 = vpow2.f32 %v2469_v1  ;;  %2488 = vadd.xlane.f32.xlu2 %v2487_v20  ;;  %2515 = vadd.xlane.f32.xlu1 %v2514_v28  ;;  %v6001_v59 = vpop.eup %3944  ;;  %v2441_v48 = vmul.f32 1.442695, %v2394_v45 }
 0x6bf   :  { %2560 = vadd.xlane.f32.xlu0 %v2559_v35  ;;  %3948 = vpow2.f32 %v2439_v21  ;;  %v2490_v62 = vsel %vm664_vm6, %v6001_v59, 0.0 }
 0x6c0   :  { %3950 = vpow2.f32 %v2471_v63 }
 0x6c1   :  { %v2348_v31 = vpop.xlane.xlu1 %2347 }
 0x6c2   :  { %v2400_v27 = vsub.f32 %v5869_v30, %v2348_v31  ;;  %v2535_v30 = vsel %vm664_vm6, %v5998_v26, 0.0 }
 0x6c4   :  { %v6003_v18 = vpop.eup %3946  ;;  %v2453_v9 = vmul.f32 1.442695, %v2400_v27 }
 0x6c5   :  { %v2562_v22 = vsel %vm664_vm6, %v6003_v18, 0.0  ;;  %v6013_v5 = vpop.eup %3948 }
 0x6c6   :  { %3952 = vpow2.f32 %v2453_v9  ;;  %2563 = vadd.xlane.f32.xlu2 %v2562_v22  ;;  %2491 = vadd.xlane.f32.xlu1 %v2490_v62  ;;  %v6016_v34 = vpop.eup %3950 }
 0x6c7   :  { %2536 = vadd.xlane.f32.xlu0 %v2535_v30  ;;  %3954 = vpow2.f32 %v2441_v48  ;;  %v2565_v1 = vsel %vm664_vm6, %v6016_v34, 0.0 }
 0x6c8   :  { %3956 = vpow2.f32 %v2455_v3 }
 0x6c9   :  { %v2303_v29 = vpop.xlane.xlu1 %2302 }
 0x6ca   :  { %v2385_v57 = vsub.f32 %v5876_v50, %v2303_v29  ;;  %v2517_v50 = vsel %vm664_vm6, %v6013_v5, 0.0 }
 0x6cb   :  { %v2378_v49 = vpop.xlane.xlu2 %2377 }
 0x6cc   :  { %v6018_v36 = vpop.eup %3952  ;;  %v2423_v55 = vmul.f32 1.442695, %v2385_v57  ;;  %v2410_v56 = vsub.f32 %v5881_v23, %v2378_v49 }
 0x6cd   :  { %v2538_v16 = vsel %vm664_vm6, %v6018_v36, 0.0  ;;  %v6027_v35 = vpop.eup %3954 }
 0x6ce   :  { %3958 = vpow2.f32 %v2423_v55  ;;  %2539 = vadd.xlane.f32.xlu2 %v2538_v16  ;;  %2566 = vadd.xlane.f32.xlu1 %v2565_v1  ;;  %v2473_v15 = vmul.f32 1.442695, %v2410_v56  ;;  %v6030_v23 = vpop.eup %3956  ;;  %v2520_v0 = vsel %vm664_vm6, %v6027_v35, 0.0 }
 0x6cf   :  { %2518 = vadd.xlane.f32.xlu0 %v2517_v50 }
 0x6d0   :  { %3960 = vpow2.f32 %v2473_v15 }
 0x6d1   :  { %v2354_v20 = vpop.xlane.xlu1 %2353 }
 0x6d2   :  { %v2402_v28 = vsub.f32 %v5886_v54, %v2354_v20  ;;  %v2541_v54 = vsel %vm664_vm6, %v6030_v23, 0.0 }
 0x6d3   :  { %v2306_v21 = vpop.xlane.xlu2 %2305 }
 0x6d4   :  { %v6032_v63 = vpop.eup %3958  ;;  %v2457_v2 = vmul.f32 1.442695, %v2402_v28  ;;  %v2386_v31 = vsub.f32 %v5890_v19, %v2306_v21 }
 0x6d5   :  { %v2493_v27 = vsel %vm664_vm6, %v6032_v63, 0.0 }
 0x6d6   :  { %3962 = vpow2.f32 %v2457_v2  ;;  %v2425_v45 = vmul.f32 1.442695, %v2386_v31  ;;  %2521 = vadd.xlane.f32.xlu2 %v2520_v0  ;;  %2542 = vadd.xlane.f32.xlu1 %v2541_v54  ;;  %v6041_v25 = vpop.eup %3960 }
 0x6d7   :  { %2494 = vadd.xlane.f32.xlu0 %v2493_v27  ;;  %v2568_v30 = vsel %vm664_vm6, %v6041_v25, 0.0 }
 0x6d8   :  { %3964 = vpow2.f32 %v2425_v45 }
 0x6d9   :  { %v2549_v9 = vpop.xlane.xlu1 %2548 }
 0x6da   :  { %3966 = vrcp.f32 %v2549_v9  ;;  %v2942_v55 = vand.u32 2147483648, %v2549_v9  ;;  %v2940_v16 = vand.u32 2147483647, %v2549_v9  ;;  %vm2936_vm13 = vweird.f32 %v2549_v9 }
 0x6dc   :  { %v6043_v19 = vpop.eup %3962  ;;  %v2943_v15 = vor.u32 1.1754944e-38, %v2942_v55  ;;  %vm2941_vm14 = vcmp.eq.f32.partialorder %v2940_v16, 8.507059e+37 }
 0x6dd   :  { %v2544_v22 = vsel %vm664_vm6, %v6043_v19, 0.0 }
 0x6de   :  { %v6047_v62 = vpop.eup %3964  ;;  %2545 = vadd.xlane.f32.xlu1 %v2544_v22 }
 0x6df   :  { %2569 = vadd.xlane.f32.xlu0 %v2568_v30  ;;  %v2496_v48 = vsel %vm664_vm6, %v6047_v62, 0.0 }
 0x6e0   :  { %v3967_v3 = vpop.eup %3966  ;;  %2497 = vadd.xlane.f32.xlu2 %v2496_v48 }
 0x6e1   :  { %v2932_v29 = vmul.f32 %v3967_v3, %v2549_v9  ;;  %v2501_v57 = vpop.xlane.xlu2 %2500  ;;  %vm2937_vm12 = vweird.f32 %v3967_v3 }
 0x6e2   :  { %3968 = vrcp.f32 %v2501_v57  ;;  %vm2938_vm0 = vmor %vm2936_vm13, %vm2937_vm12  ;;  %v2702_v0 = vand.u32 2147483648, %v2501_v57  ;;  %v2700_v45 = vand.u32 2147483647, %v2501_v57  ;;  %vm2696_vm2 = vweird.f32 %v2501_v57 }
 0x6e3   :  { %v2933_v49 = vsub.f32 1.0, %v2932_v29 }
 0x6e4   :  { %v2703_v9 = vor.u32 1.1754944e-38, %v2702_v0  ;;  %vm2701_vm7 = vcmp.eq.f32.partialorder %v2700_v45, 8.507059e+37 }
 0x6e5   :  { %v2934_v56 = vmul.f32 %v3967_v3, %v2933_v49 }
 0x6e7   :  { %v2935_v1 = vadd.f32 %v3967_v3, %v2934_v56 }
 0x6e8   :  { %v3969_v50 = vpop.eup %3968 }
 0x6e9   :  { %v2939_v20 = vsel %vm2938_vm0, %v3967_v3, %v2935_v1  ;;  %v2692_v28 = vmul.f32 %v3969_v50, %v2501_v57  ;;  %vm2697_vm15 = vweird.f32 %v3969_v50 }
 0x6ea   :  { %v2944_v21 = vsel %vm2941_vm14, %v2943_v15, %v2939_v20  ;;  %vm2698_vm4 = vmor %vm2696_vm2, %vm2697_vm15 }
 0x6eb   :  { %v2693_v2 = vsub.f32 1.0, %v2692_v28  ;;  %v2945_v31 = vmul.f32 %v5894_v6, %v2944_v21 }
 0x6ed   :  { %v2694_v27 = vmul.f32 %v3969_v50, %v2693_v2  ;;  %3702 = vmatmul.msk.f32.vlgmr.msra.gmra.mxu3 %vm664_vm6, %v2945_v31 }
 0x6ef   :  { %v2695_v54 = vadd.f32 %v3969_v50, %v2694_v27 }
 0x6f1   :  { %v2699_v22 = vsel %vm2698_vm4, %v3969_v50, %v2695_v54 }
 0x6f2   :  { %v2704_v30 = vsel %vm2701_vm7, %v2703_v9, %v2699_v22 }
 0x6f3   :  { %v2705_v48 = vmul.f32 %v5899_v43, %v2704_v30 }
 0x6f5   :  { %3678 = vmatmul.msk.f32.vlgmr.msrb.gmra.mxu2 %vm664_vm6, %v2705_v48 }
 0x701   :  { %v2477_v3 = vpop.xlane.xlu0 %2476 }
 0x702   :  { %3970 = vrcp.f32 %v2477_v3  ;;  %v2582_v57 = vand.u32 2147483648, %v2477_v3  ;;  %v2580_v1 = vand.u32 2147483647, %v2477_v3  ;;  %vm2576_vm3 = vweird.f32 %v2477_v3 }
 0x704   :  { %v2583_v15 = vor.u32 1.1754944e-38, %v2582_v57  ;;  %vm2581_vm9 = vcmp.eq.f32.partialorder %v2580_v1, 8.507059e+37 }
 0x708   :  { %v3971_v6 = vpop.eup %3970 }
 0x709   :  { %v2572_v29 = vmul.f32 %v3971_v6, %v2477_v3  ;;  %v6057_v49 = vpop.xlane.xlu1 %2503  ;;  %v2525_v55 = vpop.xlane.xlu0 %2524  ;;  %vm2577_vm5 = vweird.f32 %v3971_v6 }
 0x70a   :  { %3972 = vrcp.f32 %v6057_v49  ;;  %vm2578_vm8 = vmor %vm2576_vm3, %vm2577_vm5  ;;  %v2820_v22 = vand.u32 2147483647, %v2525_v55  ;;  %v2822_v48 = vand.u32 2147483648, %v2525_v55  ;;  %vm2816_vm10 = vweird.f32 %v2525_v55 }
 0x70b   :  { %v2573_v56 = vsub.f32 1.0, %v2572_v29  ;;  %3974 = vrcp.f32 %v2525_v55  ;;  %vm2711_vm14 = vweird.f32 %v6057_v49 }
 0x70c   :  { %vm6081_vm12 = vcmp.eq.f32.partialorder %v2820_v22, 8.507059e+37 }
 0x70d   :  { %v2574_v16 = vmul.f32 %v3971_v6, %v2573_v56  ;;  %v2717_v56 = vand.u32 2147483648, %v6057_v49 }
 0x70f   :  { %v2575_v50 = vadd.f32 %v3971_v6, %v2574_v16  ;;  %v2718_v33 = vor.u32 1.1754944e-38, %v2717_v56 }
 0x710   :  { %v6060_v43 = vpop.eup %3972 }
 0x711   :  { %v6062_v20 = vpop.xlane.xlu2 %2479  ;;  %v3975_v28 = vpop.eup %3974  ;;  %v2579_v21 = vsel %vm2578_vm8, %v3971_v6, %v2575_v50  ;;  %v2707_v2 = vmul.f32 %v6060_v43, %v6057_v49  ;;  %vm2712_vm0 = vweird.f32 %v6060_v43 }
 0x712   :  { %v6066_v31 = vpop.xlane.xlu1 %2506  ;;  %v6068_v0 = vpop.xlane.xlu0 %2551  ;;  %3976 = vrcp.f32 %v6062_v20  ;;  %v2584_v27 = vsel %vm2581_vm9, %v2583_v15, %v2579_v21  ;;  %v2812_v45 = vmul.f32 %v3975_v28, %v2525_v55  ;;  %vm2817_vm11 = vweird.f32 %v3975_v28  ;;  %vm2713_vm15 = vmor %vm2711_vm14, %vm2712_vm0 }
 0x713   :  { %3978 = vrcp.f32 %v6066_v31  ;;  %v2708_v54 = vsub.f32 1.0, %v2707_v2  ;;  %v2585_v3 = vmul.f32 %v5907_v13, %v2584_v27  ;;  %v2715_v15 = vand.u32 2147483647, %v6057_v49  ;;  %vm2818_vm13 = vmor %vm2816_vm10, %vm2817_vm11 }
 0x714   :  { %3980 = vrcp.f32 %v6068_v0  ;;  %v2813_v9 = vsub.f32 1.0, %v2812_v45  ;;  %v2823_v55 = vor.u32 1.1754944e-38, %v2822_v48  ;;  %v2957_v1 = vand.u32 2147483648, %v6068_v0 }
 0x715   :  { %v2709_v30 = vmul.f32 %v6060_v43, %v2708_v54  ;;  %3686 = vmatmul.msk.f32.vlgmr.msrb.gmra.mxu0 %vm664_vm6, %v2585_v3  ;;  %vm2716_vm2 = vcmp.eq.f32.partialorder %v2715_v15, 8.507059e+37  ;;  %vm2726_vm4 = vweird.f32 %v6066_v31  ;;  %vm2591_vm7 = vweird.f32 %v6062_v20 }
 0x716   :  { %v2814_v6 = vmul.f32 %v3975_v28, %v2813_v9  ;;  %vm2951_vm3 = vweird.f32 %v6068_v0 }
 0x717   :  { %v2710_v54 = vadd.f32 %v6060_v43, %v2709_v30  ;;  %v2732_v30 = vand.u32 2147483648, %v6066_v31 }
 0x718   :  { %v6075_v29 = vpop.eup %3976  ;;  %v2815_v16 = vadd.f32 %v3975_v28, %v2814_v6 }
 0x719   :  { %v6079_v57 = vpop.eup %3978  ;;  %v2587_v50 = vmul.f32 %v6075_v29, %v6062_v20  ;;  %v6087_v13 = vpop.xlane.xlu2 %2554  ;;  %v2714_v49 = vsel %vm2713_vm15, %v6060_v43, %v2710_v54  ;;  %vm2592_vm5 = vweird.f32 %v6075_v29 }
 0x71a   :  { %v6090_v21 = vpop.eup %3980  ;;  %v2722_v2 = vmul.f32 %v6079_v57, %v6066_v31  ;;  %v6094_v27 = vpop.xlane.xlu0 %2527  ;;  %v2819_v9 = vsel %vm2818_vm13, %v3975_v28, %v2815_v16  ;;  %vm2727_vm8 = vweird.f32 %v6079_v57  ;;  %vm2593_vm11 = vmor %vm2591_vm7, %vm2592_vm5 }
 0x71b   :  { %v6096_v45 = vpop.xlane.xlu1 %2482  ;;  %v2947_v22 = vmul.f32 %v6090_v21, %v6068_v0  ;;  %v2588_v3 = vsub.f32 1.0, %v2587_v50  ;;  %3982 = vrcp.f32 %v6094_v27  ;;  %v2824_v48 = vsel %vm6081_vm12, %v2823_v55, %v2819_v9  ;;  %vm2728_vm10 = vmor %vm2726_vm4, %vm2727_vm8 }
 0x71c   :  { %v2723_v6 = vsub.f32 1.0, %v2722_v2  ;;  %3984 = vrcp.f32 %v6087_v13  ;;  %v2597_v50 = vand.u32 2147483648, %v6062_v20  ;;  %v2825_v56 = vmul.f32 %v5913_v8, %v2824_v48 }
 0x71d   :  { %v2948_v14 = vsub.f32 1.0, %v2947_v22  ;;  %3986 = vrcp.f32 %v6096_v45  ;;  %v2589_v16 = vmul.f32 %v6075_v29, %v2588_v3  ;;  %v2719_v55 = vsel %vm2716_vm2, %v2718_v33, %v2714_v49 }
 0x71e   :  { %v2724_v28 = vmul.f32 %v6079_v57, %v2723_v6  ;;  %v2730_v2 = vand.u32 2147483647, %v6066_v31  ;;  %v2720_v15 = vmul.f32 %v5917_v32, %v2719_v55  ;;  %3694 = vmatmul.msk.f32.vlgmr.msrb.gmra.mxu1 %vm664_vm6, %v2825_v56  ;;  %v2595_v8 = vand.u32 2147483647, %v6062_v20 }
 0x71f   :  { %v2949_v22 = vmul.f32 %v6090_v21, %v2948_v14  ;;  %v2590_v32 = vadd.f32 %v6075_v29, %v2589_v16  ;;  %v2733_v6 = vor.u32 1.1754944e-38, %v2732_v30  ;;  %v2958_v49 = vor.u32 1.1754944e-38, %v2957_v1 }
 0x720   :  { %v2725_v14 = vadd.f32 %v6079_v57, %v2724_v28  ;;  %v2598_v56 = vor.u32 1.1754944e-38, %v2597_v50  ;;  %3679 = vmatmul.msk.f32.gmra.mxu2 %vm664_vm6, %v2720_v15  ;;  %vm2731_vm9 = vcmp.eq.f32.partialorder %v2730_v2, 8.507059e+37  ;;  %v2955_v28 = vand.u32 2147483647, %v6068_v0 }
 0x721   :  { %v6120_v9 = vpop.eup %3982  ;;  %v6125_v3 = vpop.xlane.xlu2 %2530  ;;  %vm2596_vm12 = vcmp.eq.f32.partialorder %v2595_v8, 8.507059e+37  ;;  %v2950_v16 = vadd.f32 %v6090_v21, %v2949_v22  ;;  %v2594_v50 = vsel %vm2593_vm11, %v6075_v29, %v2590_v32  ;;  %vm2952_vm13 = vweird.f32 %v6090_v21 }
 0x722   :  { %v6129_v43 = vpop.eup %3984  ;;  %v6132_v33 = vpop.xlane.xlu0 %2509  ;;  %v2827_v55 = vmul.f32 %v6120_v9, %v6094_v27  ;;  %v2729_v20 = vsel %vm2728_vm10, %v6079_v57, %v2725_v14  ;;  %v2599_v12 = vsel %vm2596_vm12, %v2598_v56, %v2594_v50  ;;  %v2837_v52 = vand.u32 2147483648, %v6094_v27  ;;  %vm2953_vm0 = vmor %vm2951_vm3, %vm2952_vm13 }
 0x723   :  { %v6134_v54 = vpop.xlane.xlu1 %2557  ;;  %v6139_v48 = vpop.eup %3986  ;;  %3988 = vrcp.f32 %v6132_v33  ;;  %v2962_v30 = vmul.f32 %v6129_v43, %v6087_v13  ;;  %v2734_v15 = vsel %vm2731_vm9, %v2733_v6, %v2729_v20  ;;  %v2972_v31 = vand.u32 2147483648, %v6087_v13 }
 0x724   :  { %v2602_v47 = vmul.f32 %v6139_v48, %v6096_v45  ;;  %3990 = vrcp.f32 %v6125_v3  ;;  %v2828_v2 = vsub.f32 1.0, %v2827_v55  ;;  %v2735_v8 = vmul.f32 %v5926_v7, %v2734_v15 }
 0x725   :  { %3992 = vrcp.f32 %v6134_v54  ;;  %v2600_v22 = vmul.f32 %v5929_v38, %v2599_v12  ;;  %v2963_v57 = vsub.f32 1.0, %v2962_v30  ;;  %v2954_v29 = vsel %vm2953_vm0, %v6090_v21, %v2950_v16 }
 0x726   :  { %v2603_v1 = vsub.f32 1.0, %v2602_v47  ;;  %v2612_v47 = vand.u32 2147483648, %v6096_v45  ;;  %vm2956_vm14 = vcmp.eq.f32.partialorder %v2955_v28, 8.507059e+37  ;;  %vm2831_vm15 = vweird.f32 %v6094_v27 }
 0x727   :  { %vm2966_vm2 = vweird.f32 %v6087_v13  ;;  %3687 = vmatmul.msk.f32.gmra.mxu0 %vm664_vm6, %v2600_v22  ;;  %v2959_v12 = vsel %vm2956_vm14, %v2958_v49, %v2954_v29  ;;  %v2829_v21 = vmul.f32 %v6120_v9, %v2828_v2  ;;  %vm2606_vm4 = vweird.f32 %v6096_v45 }
 0x728   :  { %v2604_v6 = vmul.f32 %v6139_v48, %v2603_v1  ;;  %3680 = vmatmul.msk.f32.gmra.mxu2 %vm664_vm6, %v2735_v8  ;;  %v2960_v56 = vmul.f32 %v5924_v39, %v2959_v12  ;;  %v2838_v28 = vor.u32 1.1754944e-38, %v2837_v52  ;;  %v2973_v49 = vor.u32 1.1754944e-38, %v2972_v31 }
 0x729   :  { %v6172_v14 = vpop.xlane.xlu2 %2512  ;;  %v6174_v32 = vpop.eup %3988  ;;  %vm2607_vm7 = vweird.f32 %v6139_v48  ;;  %v2610_v30 = vand.u32 2147483647, %v6096_v45  ;;  %v2613_v16 = vor.u32 1.1754944e-38, %v2612_v47  ;;  %v2964_v1 = vmul.f32 %v6129_v43, %v2963_v57 }
 0x72a   :  { %v6180_v7 = vpop.xlane.xlu0 %2485  ;;  %v6184_v0 = vpop.eup %3990  ;;  %3994 = vrcp.f32 %v6172_v14  ;;  %v2737_v20 = vmul.f32 %v6174_v32, %v6132_v33  ;;  %v2852_v50 = vand.u32 2147483648, %v6125_v3  ;;  %3703 = vmatmul.msk.f32.gmra.mxu3 %vm664_vm6, %v2960_v56  ;;  %v2747_v39 = vand.u32 2147483648, %v6132_v33  ;;  %vm2608_vm5 = vmor %vm2606_vm4, %vm2607_vm7 }
 0x72b   :  { %v6182_v38 = vpop.xlane.xlu1 %2533  ;;  %v6191_v55 = vpop.eup %3992  ;;  %v2842_v52 = vmul.f32 %v6184_v0, %v6125_v3  ;;  %3996 = vrcp.f32 %v6180_v7  ;;  %v2605_v2 = vadd.f32 %v6139_v48, %v2604_v6  ;;  %v2987_v31 = vand.u32 2147483648, %v6134_v54 }
 0x72c   :  { %v2977_v15 = vmul.f32 %v6191_v55, %v6134_v54  ;;  %3998 = vrcp.f32 %v6182_v38  ;;  %v2830_v8 = vadd.f32 %v6120_v9, %v2829_v21  ;;  %vm2611_vm3 = vcmp.eq.f32.partialorder %v2610_v30, 8.507059e+37 }
 0x72d   :  { %v2609_v22 = vsel %vm2608_vm5, %v6139_v48, %v2605_v2  ;;  %vm2832_vm8 = vweird.f32 %v6120_v9  ;;  %v2835_v47 = vand.u32 2147483647, %v6094_v27  ;;  %v2738_v29 = vsub.f32 1.0, %v2737_v20 }
 0x72e   :  { %v2614_v6 = vsel %vm2611_vm3, %v2613_v16, %v2609_v22  ;;  %vm2833_vm9 = vmor %vm2831_vm15, %vm2832_vm8  ;;  %v2965_v12 = vadd.f32 %v6129_v43, %v2964_v1  ;;  %vm2967_vm11 = vweird.f32 %v6129_v43  ;;  %v2843_v45 = vsub.f32 1.0, %v2842_v52 }
 0x72f   :  { %v2615_v21 = vmul.f32 %v5943_v11, %v2614_v6  ;;  %v2834_v48 = vsel %vm2833_vm9, %v6120_v9, %v2830_v8  ;;  %vm2836_vm10 = vcmp.eq.f32.partialorder %v2835_v47, 8.507059e+37  ;;  %vm2741_vm12 = vweird.f32 %v6132_v33  ;;  %vm6229_vm0 = vmor %vm2966_vm2, %vm2967_vm11 }
 0x730   :  { %v6215_v57 = vpop.eup %3994  ;;  %v2978_v30 = vsub.f32 1.0, %v2977_v15  ;;  %vm2846_vm13 = vweird.f32 %v6125_v3  ;;  %v2839_v16 = vsel %vm2836_vm10, %v2838_v28, %v2834_v48  ;;  %v2969_v28 = vsel %vm6229_vm0, %v6129_v43, %v2965_v12 }
 0x731   :  { %v6235_v11 = vpop.eup %3996  ;;  %v2752_v9 = vmul.f32 %v6215_v57, %v6172_v14  ;;  %3688 = vmatmul.msk.f32.gmra.mxu0 %vm664_vm6, %v2615_v21  ;;  %v2840_v20 = vmul.f32 %v5939_v4, %v2839_v16  ;;  %v2970_v52 = vand.u32 2147483647, %v6087_v13  ;;  %v2739_v15 = vmul.f32 %v6174_v32, %v2738_v29  ;;  %v6252_v4 = vpop.xlane.xlu2 %2488 }
 0x732   :  { %v6223_v56 = vpop.xlane.xlu0 %2560  ;;  %v6245_v2 = vpop.eup %3998  ;;  %v2748_v8 = vor.u32 1.1754944e-38, %v2747_v39  ;;  %vm2981_vm14 = vweird.f32 %v6134_v54  ;;  %v2853_v22 = vor.u32 1.1754944e-38, %v2852_v50  ;;  %v2988_v47 = vor.u32 1.1754944e-38, %v2987_v31 }
 0x733   :  { %v6233_v1 = vpop.xlane.xlu1 %2515  ;;  %v2844_v6 = vmul.f32 %v6184_v0, %v2843_v45  ;;  %v2627_v21 = vand.u32 2147483648, %v6180_v7  ;;  %3695 = vmatmul.msk.f32.gmra.mxu1 %vm664_vm6, %v2840_v20  ;;  %vm2971_vm15 = vcmp.eq.f32.partialorder %v2970_v52, 8.507059e+37  ;;  %v2979_v13 = vmul.f32 %v6191_v55, %v2978_v30 }
 0x734   :  { %v2617_v43 = vmul.f32 %v6235_v11, %v6180_v7  ;;  %v2867_v39 = vand.u32 2147483648, %v6182_v38  ;;  %v2974_v29 = vsel %vm2971_vm15, %v2973_v49, %v2969_v28  ;;  %v2857_v50 = vmul.f32 %v6245_v2, %v6182_v38 }
 0x735   :  { %v2753_v31 = vsub.f32 1.0, %v2752_v9  ;;  %v2975_v12 = vmul.f32 %v5941_v37, %v2974_v29  ;;  %4000 = vrcp.f32 %v6233_v1  ;;  %v2740_v45 = vadd.f32 %v6174_v32, %v2739_v15 }
 0x736   :  { %4002 = vrcp.f32 %v6223_v56  ;;  %vm2742_vm2 = vweird.f32 %v6174_v32  ;;  %v2745_v48 = vand.u32 2147483647, %v6132_v33  ;;  %v2845_v49 = vadd.f32 %v6184_v0, %v2844_v6 }
 0x737   :  { %3704 = vmatmul.msk.f32.gmra.mxu3 %vm664_vm6, %v2975_v12  ;;  %4004 = vrcp.f32 %v6252_v4  ;;  %vm2743_vm4 = vmor %vm2741_vm12, %vm2742_vm2  ;;  %vm2847_vm7 = vweird.f32 %v6184_v0  ;;  %v2850_v37 = vand.u32 2147483647, %v6125_v3  ;;  %v2618_v30 = vsub.f32 1.0, %v2617_v43 }
 0x738   :  { %v2744_v16 = vsel %vm2743_vm4, %v6174_v32, %v2740_v45  ;;  %vm2746_vm5 = vcmp.eq.f32.partialorder %v2745_v48, 8.507059e+37  ;;  %vm2848_vm3 = vmor %vm2846_vm13, %vm2847_vm7  ;;  %v2980_v27 = vadd.f32 %v6191_v55, %v2979_v13  ;;  %vm2982_vm9 = vweird.f32 %v6191_v55 }
 0x739   :  { %v2749_v9 = vsel %vm2746_vm5, %v2748_v8, %v2744_v16  ;;  %v2849_v20 = vsel %vm2848_vm3, %v6184_v0, %v2845_v49  ;;  %vm2851_vm8 = vcmp.eq.f32.partialorder %v2850_v37, 8.507059e+37  ;;  %v2858_v28 = vsub.f32 1.0, %v2857_v50  ;;  %vm6285_vm11 = vmor %vm2981_vm14, %vm2982_vm9 }
 0x73a   :  { %v6279_v33 = vpop.xlane.xlu0 %2536  ;;  %v2762_v52 = vand.u32 2147483648, %v6172_v14  ;;  %v2750_v15 = vmul.f32 %v5953_v61, %v2749_v9  ;;  %v2854_v32 = vsel %vm2851_vm8, %v2853_v22, %v2849_v20  ;;  %vm2756_vm10 = vweird.f32 %v6172_v14 }
 0x73b   :  { %v6289_v8 = vpop.xlane.xlu1 %2491  ;;  %v6291_v0 = vpop.eup %4000  ;;  %v2855_v6 = vmul.f32 %v5955_v60, %v2854_v32  ;;  %v2984_v13 = vsel %vm6285_vm11, %v6191_v55, %v2980_v27  ;;  %v2985_v61 = vand.u32 2147483647, %v6134_v54  ;;  %vm2621_vm12 = vweird.f32 %v6180_v7 }
 0x73c   :  { %v6299_v22 = vpop.eup %4002  ;;  %v2628_v43 = vor.u32 1.1754944e-38, %v2627_v21  ;;  %vm2861_vm13 = vweird.f32 %v6182_v38  ;;  %v2754_v29 = vmul.f32 %v6215_v57, %v2753_v31  ;;  %3681 = vmatmul.msk.f32.gmra.mxu2 %vm664_vm6, %v2750_v15  ;;  %v2619_v60 = vmul.f32 %v6235_v11, %v2618_v30  ;;  %v6310_v54 = vpop.xlane.xlu2 %2563 }
 0x73d   :  { %v6305_v50 = vpop.eup %4004  ;;  %v2868_v12 = vor.u32 1.1754944e-38, %v2867_v39  ;;  %3696 = vmatmul.msk.f32.gmra.mxu1 %vm664_vm6, %v2855_v6  ;;  %vm2986_vm0 = vcmp.eq.f32.partialorder %v2985_v61, 8.507059e+37  ;;  %4006 = vrcp.f32 %v6289_v8  ;;  %v2859_v55 = vmul.f32 %v6245_v2, %v2858_v28 }
 0x73e   :  { %v2763_v21 = vor.u32 1.1754944e-38, %v2762_v52  ;;  %v2767_v31 = vmul.f32 %v6291_v0, %v6233_v1  ;;  %v2989_v45 = vsel %vm2986_vm0, %v2988_v47, %v2984_v13  ;;  %v3002_v48 = vand.u32 2147483648, %v6223_v56 }
 0x73f   :  { %v2777_v49 = vand.u32 2147483648, %v6233_v1  ;;  %v2642_v39 = vand.u32 2147483648, %v6252_v4  ;;  %v2990_v37 = vmul.f32 %v5958_v17, %v2989_v45  ;;  %v2992_v30 = vmul.f32 %v6299_v22, %v6223_v56 }
 0x740   :  { %v2632_v16 = vmul.f32 %v6305_v50, %v6252_v4  ;;  %4008 = vrcp.f32 %v6279_v33  ;;  %v2755_v27 = vadd.f32 %v6215_v57, %v2754_v29  ;;  %vm2757_vm14 = vweird.f32 %v6215_v57 }
 0x741   :  { %3705 = vmatmul.msk.f32.gmra.mxu3 %vm664_vm6, %v2990_v37  ;;  %v2760_v47 = vand.u32 2147483647, %v6172_v14  ;;  %v2620_v9 = vadd.f32 %v6235_v11, %v2619_v60  ;;  %vm2622_vm15 = vweird.f32 %v6235_v11  ;;  %v2768_v17 = vsub.f32 1.0, %v2767_v31  ;;  %vm2758_vm2 = vmor %vm2756_vm10, %vm2757_vm14 }
 0x742   :  { %4010 = vrcp.f32 %v6310_v54  ;;  %v2625_v20 = vand.u32 2147483647, %v6180_v7  ;;  %v2860_v28 = vadd.f32 %v6245_v2, %v2859_v55  ;;  %vm2771_vm4 = vweird.f32 %v6233_v1  ;;  %vm6341_vm5 = vmor %vm2621_vm12, %vm2622_vm15  ;;  %v6347_v3 = vpop.xlane.xlu0 %2518 }
 0x743   :  { %v6335_v52 = vpop.eup %4006  ;;  %v2759_v15 = vsel %vm2758_vm2, %v6215_v57, %v2755_v27  ;;  %vm2761_vm7 = vcmp.eq.f32.partialorder %v2760_v47, 8.507059e+37  ;;  %vm2862_vm3 = vweird.f32 %v6245_v2  ;;  %v2865_v14 = vand.u32 2147483647, %v6182_v38 }
 0x744   :  { %v2993_v6 = vsub.f32 1.0, %v2992_v30  ;;  %v2633_v13 = vsub.f32 1.0, %v2632_v16  ;;  %v2764_v61 = vsel %vm2761_vm7, %v2763_v21, %v2759_v15  ;;  %v2624_v57 = vsel %vm6341_vm5, %v6235_v11, %v2620_v9  ;;  %vm6354_vm8 = vmor %vm2861_vm13, %vm2862_vm3  ;;  %v6364_v21 = vpop.xlane.xlu1 %2566  ;;  %v6376_v30 = vpop.xlane.xlu2 %2539 }
 0x745   :  { %vm2996_vm9 = vweird.f32 %v6223_v56  ;;  %v2657_v29 = vand.u32 2147483648, %v6289_v8  ;;  %v2765_v60 = vmul.f32 %v5968_v58, %v2764_v61  ;;  %vm2626_vm11 = vcmp.eq.f32.partialorder %v2625_v20, 8.507059e+37 }
 0x746   :  { %v2864_v55 = vsel %vm6354_vm8, %v6245_v2, %v2860_v28  ;;  %v6366_v11 = vpop.eup %4008  ;;  %v6368_v38 = vor.u32 1.1754944e-38, %v3002_v48  ;;  %v2647_v31 = vmul.f32 %v6335_v52, %v6289_v8  ;;  %v2629_v45 = vsel %vm2626_vm11, %v2628_v43, %v2624_v57 }
 0x747   :  { %vm2866_vm10 = vcmp.eq.f32.partialorder %v2865_v14, 8.507059e+37  ;;  %v2769_v37 = vmul.f32 %v6291_v0, %v2768_v17  ;;  %vm2636_vm12 = vweird.f32 %v6252_v4  ;;  %3682 = vmatmul.msk.f32.gmra.mxu2 %vm664_vm6, %v2765_v60  ;;  %v2630_v58 = vmul.f32 %v5971_v44, %v2629_v45 }
 0x748   :  { %v2869_v2 = vsel %vm2866_vm10, %v2868_v12, %v2864_v55  ;;  %v6378_v16 = vpop.eup %4010  ;;  %v2778_v48 = vor.u32 1.1754944e-38, %v2777_v49  ;;  %v2634_v27 = vmul.f32 %v6305_v50, %v2633_v13  ;;  %4012 = vrcp.f32 %v6364_v21 }
 0x749   :  { %v2870_v47 = vmul.f32 %v5973_v10, %v2869_v2  ;;  %v2994_v43 = vmul.f32 %v6299_v22, %v2993_v6  ;;  %v2643_v9 = vor.u32 1.1754944e-38, %v2642_v39  ;;  %v6384_v17 = vor.u32 1.1754944e-38, %v2657_v29  ;;  %3689 = vmatmul.msk.f32.gmra.mxu0 %vm664_vm6, %v2630_v58 }
 0x74a   :  { %v2882_v20 = vand.u32 2147483648, %v6279_v33  ;;  %v2648_v44 = vsub.f32 1.0, %v2647_v31  ;;  %v2872_v12 = vmul.f32 %v6366_v11, %v6279_v33  ;;  %v3017_v49 = vand.u32 2147483648, %v6310_v54 }
 0x74b   :  { %3697 = vmatmul.msk.f32.gmra.mxu1 %vm664_vm6, %v2870_v47  ;;  %4014 = vrcp.f32 %v6347_v3  ;;  %v3007_v10 = vmul.f32 %v6378_v16, %v6310_v54  ;;  %v2770_v39 = vadd.f32 %v6291_v0, %v2769_v37  ;;  %vm2772_vm13 = vweird.f32 %v6291_v0 }
 0x74c   :  { %v2775_v28 = vand.u32 2147483647, %v6233_v1  ;;  %4016 = vrcp.f32 %v6376_v30  ;;  %vm2773_vm0 = vmor %vm2771_vm4, %vm2772_vm13  ;;  %v2635_v15 = vadd.f32 %v6305_v50, %v2634_v27  ;;  %vm2637_vm14 = vweird.f32 %v6305_v50  ;;  %v6410_v1 = vpop.xlane.xlu0 %2494  ;;  %v6427_v31 = vpop.xlane.xlu1 %2542 }
 0x74d   :  { %v2640_v32 = vand.u32 2147483647, %v6252_v4  ;;  %vm2651_vm15 = vweird.f32 %v6289_v8  ;;  %v2774_v14 = vsel %vm2773_vm0, %v6291_v0, %v2770_v39  ;;  %vm2638_vm7 = vmor %vm2636_vm12, %vm2637_vm14  ;;  %v2995_v6 = vadd.f32 %v6299_v22, %v2994_v43 }
 0x74e   :  { %vm2776_vm2 = vcmp.eq.f32.partialorder %v2775_v28, 8.507059e+37  ;;  %vm2997_vm5 = vweird.f32 %v6299_v22  ;;  %v6412_v13 = vpop.eup %4012  ;;  %v2873_v61 = vsub.f32 1.0, %v2872_v12  ;;  %vm2876_vm4 = vweird.f32 %v6279_v33 }
 0x74f   :  { %v2779_v57 = vsel %vm2776_vm2, %v2778_v48, %v2774_v14  ;;  %v2639_v7 = vsel %vm2638_vm7, %v6305_v50, %v2635_v15  ;;  %vm2641_vm3 = vcmp.eq.f32.partialorder %v2640_v32, 8.507059e+37  ;;  %vm6418_vm8 = vmor %vm2996_vm9, %vm2997_vm5  ;;  %v3000_v55 = vand.u32 2147483647, %v6223_v56  ;;  %v6441_v56 = vpop.xlane.xlu2 %2521 }
 0x750   :  { %v2780_v0 = vmul.f32 %v5986_v42, %v2779_v57  ;;  %v2644_v29 = vsel %vm2641_vm3, %v2643_v9, %v2639_v7  ;;  %v2999_v60 = vsel %vm6418_vm8, %v6299_v22, %v2995_v6  ;;  %v3008_v50 = vsub.f32 1.0, %v3007_v10 }
 0x751   :  { %v6429_v45 = vpop.eup %4014  ;;  %v3032_v37 = vand.u32 2147483648, %v6364_v21  ;;  %v2645_v58 = vmul.f32 %v5988_v41, %v2644_v29  ;;  %4018 = vrcp.f32 %v6410_v1  ;;  %v2649_v42 = vmul.f32 %v6335_v52, %v2648_v44 }
 0x752   :  { %vm3011_vm9 = vweird.f32 %v6310_v54  ;;  %v6438_v22 = vmul.f32 %v6412_v13, %v6364_v21  ;;  %3683 = vmatmul.msk.f32.gmra.mxu2 %vm664_vm6, %v2780_v0  ;;  %vm3001_vm11 = vcmp.eq.f32.partialorder %v3000_v55, 8.507059e+37  ;;  %v6443_v2 = vpop.eup %4016  ;;  %v2874_v48 = vmul.f32 %v6366_v11, %v2873_v61 }
 0x753   :  { %v2883_v41 = vor.u32 1.1754944e-38, %v2882_v20  ;;  %3690 = vmatmul.msk.f32.gmra.mxu0 %vm664_vm6, %v2645_v58  ;;  %v3004_v27 = vsel %vm3001_vm11, %v6368_v38, %v2999_v60  ;;  %4020 = vrcp.f32 %v6427_v31  ;;  %v3018_v47 = vor.u32 1.1754944e-38, %v3017_v49 }
 0x754   :  { %v2782_v43 = vmul.f32 %v6429_v45, %v6347_v3  ;;  %v2792_v9 = vand.u32 2147483648, %v6347_v3  ;;  %v3005_v44 = vmul.f32 %v5983_v40, %v3004_v27  ;;  %v3009_v12 = vmul.f32 %v6378_v16, %v3008_v50 }
 0x755   :  { %v6454_v10 = vor.u32 1.1754944e-38, %v3032_v37  ;;  %v2897_v20 = vand.u32 2147483648, %v6376_v30  ;;  %4022 = vrcp.f32 %v6441_v56  ;;  %v3023_v38 = vsub.f32 1.0, %v6438_v22 }
 0x756   :  { %v2887_v49 = vmul.f32 %v6443_v2, %v6376_v30  ;;  %3706 = vmatmul.msk.f32.gmra.mxu3 %vm664_vm6, %v3005_v44  ;;  %v2650_v39 = vadd.f32 %v6335_v52, %v2649_v42  ;;  %vm2652_vm10 = vweird.f32 %v6335_v52  ;;  %v2672_v28 = vand.u32 2147483648, %v6410_v1  ;;  %v6519_v44 = vpop.xlane.xlu0 %2569 }
 0x757   :  { %v6464_v40 = vpop.eup %4018  ;;  %vm6469_vm12 = vmor %vm2651_vm15, %vm2652_vm10  ;;  %v2655_v32 = vand.u32 2147483647, %v6289_v8  ;;  %v2875_v14 = vadd.f32 %v6366_v11, %v2874_v48  ;;  %vm2877_vm13 = vweird.f32 %v6366_v11  ;;  %v2783_v6 = vsub.f32 1.0, %v2782_v43 }
 0x758   :  { %v2662_v61 = vmul.f32 %v6464_v40, %v6410_v1  ;;  %v2654_v57 = vsel %vm6469_vm12, %v6335_v52, %v2650_v39  ;;  %vm6483_vm0 = vmor %vm2876_vm4, %vm2877_vm13  ;;  %v2880_v8 = vand.u32 2147483647, %v6279_v33  ;;  %v3010_v29 = vadd.f32 %v6378_v16, %v3009_v12  ;;  %v6526_v39 = vpop.xlane.xlu2 %2497 }
 0x759   :  { %v6488_v4 = vpop.eup %4020  ;;  %vm2656_vm14 = vcmp.eq.f32.partialorder %v2655_v32, 8.507059e+37  ;;  %v2879_v0 = vsel %vm6483_vm0, %v6366_v11, %v2875_v14  ;;  %vm3012_vm15 = vweird.f32 %v6378_v16  ;;  %vm2786_vm2 = vweird.f32 %v6347_v3  ;;  %v6505_v11 = vpop.xlane.xlu1 %2545 }
 0x75a   :  { %v2888_v52 = vsub.f32 1.0, %v2887_v49  ;;  %v2902_v60 = vmul.f32 %v6488_v4, %v6427_v31  ;;  %v2659_v55 = vsel %vm2656_vm14, %v6384_v17, %v2654_v57  ;;  %vm2881_vm7 = vcmp.eq.f32.partialorder %v2880_v8, 8.507059e+37  ;;  %vm6501_vm5 = vmor %vm3011_vm9, %vm3012_vm15 }
 0x75b   :  { %v6507_v50 = vpop.eup %4022  ;;  %v2660_v37 = vmul.f32 %v6001_v59, %v2659_v55  ;;  %v2884_v58 = vsel %vm2881_vm7, %v2883_v41, %v2879_v0  ;;  %v3014_v42 = vsel %vm6501_vm5, %v6378_v16, %v3010_v29  ;;  %v3015_v17 = vand.u32 2147483647, %v6310_v54 }
 0x75c   :  { %v2912_v22 = vand.u32 2147483648, %v6427_v31  ;;  %v2797_v48 = vmul.f32 %v6507_v50, %v6441_v56  ;;  %v2807_v27 = vand.u32 2147483648, %v6441_v56  ;;  %v2885_v43 = vmul.f32 %v5998_v26, %v2884_v58 }
 0x75d   :  { %vm2891_vm4 = vweird.f32 %v6376_v30  ;;  %v2663_v59 = vsub.f32 1.0, %v2662_v61  ;;  %v2903_v41 = vsub.f32 1.0, %v2902_v60  ;;  %3691 = vmatmul.msk.f32.gmra.mxu0 %vm664_vm6, %v2660_v37  ;;  %vm3016_vm3 = vcmp.eq.f32.partialorder %v3015_v17, 8.507059e+37 }
 0x75e   :  { %4024 = vrcp.f32 %v6505_v11  ;;  %v2784_v54 = vmul.f32 %v6429_v45, %v2783_v6  ;;  %v2793_v16 = vor.u32 1.1754944e-38, %v2792_v9  ;;  %v2798_v12 = vsub.f32 1.0, %v2797_v48  ;;  %3698 = vmatmul.msk.f32.gmra.mxu1 %vm664_vm6, %v2885_v43 }
 0x75f   :  { %v3019_v49 = vsel %vm3016_vm3, %v3018_v47, %v3014_v42  ;;  %vm3026_vm8 = vweird.f32 %v6364_v21  ;;  %v2889_v26 = vmul.f32 %v6443_v2, %v2888_v52  ;;  %v2898_v15 = vor.u32 1.1754944e-38, %v2897_v20 }
 0x760   :  { %v3020_v32 = vmul.f32 %v6003_v18, %v3019_v49  ;;  %4026 = vrcp.f32 %v6519_v44  ;;  %v3024_v14 = vmul.f32 %v6412_v13, %v3023_v38  ;;  %v6533_v61 = vor.u32 1.1754944e-38, %v2672_v28 }
 0x761   :  { %v6535_v9 = vor.u32 1.1754944e-38, %v2912_v22  ;;  %v6537_v6 = vor.u32 1.1754944e-38, %v2807_v27  ;;  %v2664_v47 = vmul.f32 %v6464_v40, %v2663_v59  ;;  %v6541_v57 = vmul.f32 %v6488_v4, %v2903_v41 }
 0x762   :  { %3707 = vmatmul.msk.f32.gmra.mxu3 %vm664_vm6, %v3020_v32  ;;  %v2925_v20 = vand.u32 2147483647, %v6505_v11  ;;  %4028 = vrcp.f32 %v6526_v39  ;;  %v2799_v18 = vmul.f32 %v6507_v50, %v2798_v12  ;;  %v2927_v38 = vand.u32 2147483648, %v6505_v11 }
 0x763   :  { %v2785_v28 = vadd.f32 %v6429_v45, %v2784_v54  ;;  %vm2787_vm9 = vweird.f32 %v6429_v45  ;;  %vm2801_vm11 = vweird.f32 %v6441_v56  ;;  %v3045_v8 = vand.u32 2147483647, %v6519_v44 }
 0x764   :  { %v6550_v7 = vpop.eup %4024  ;;  %v3047_v0 = vand.u32 2147483648, %v6519_v44  ;;  %vm6557_vm10 = vmor %vm2786_vm2, %vm2787_vm9  ;;  %v2790_v52 = vand.u32 2147483647, %v6347_v3  ;;  %v2890_v60 = vadd.f32 %v6443_v2, %v2889_v26  ;;  %vm3041_vm12 = vweird.f32 %v6519_v44 }
 0x765   :  { %v2917_v55 = vmul.f32 %v6550_v7, %v6505_v11  ;;  %v2685_v33 = vand.u32 2147483647, %v6526_v39  ;;  %v2789_v37 = vsel %vm6557_vm10, %v6429_v45, %v2785_v28  ;;  %vm2892_vm13 = vweird.f32 %v6443_v2 }
 0x766   :  { %v6571_v58 = vpop.eup %4026  ;;  %vm2666_vm0 = vweird.f32 %v6410_v1  ;;  %vm2791_vm14 = vcmp.eq.f32.partialorder %v2790_v52, 8.507059e+37  ;;  %v2895_v3 = vand.u32 2147483647, %v6376_v30  ;;  %v3025_v42 = vadd.f32 %v6412_v13, %v3024_v14  ;;  %vm6583_vm7 = vmor %vm2891_vm4, %vm2892_vm13 }
 0x767   :  { %vm3027_vm15 = vweird.f32 %v6412_v13  ;;  %vm2906_vm2 = vweird.f32 %v6427_v31  ;;  %v2918_v17 = vsub.f32 1.0, %v2917_v55  ;;  %v3037_v22 = vmul.f32 %v6571_v58, %v6519_v44 }
 0x768   :  { %v2687_v45 = vand.u32 2147483648, %v6526_v39  ;;  %v2794_v48 = vsel %vm2791_vm14, %v2793_v16, %v2789_v37  ;;  %v6587_v43 = vpop.eup %4028  ;;  %vm2922_vm5 = vweird.f32 %v6550_v7  ;;  %vm3042_vm3 = vweird.f32 %v6571_v58  ;;  %vm3028_vm10 = vmor %vm3026_vm8, %vm3027_vm15 }
 0x769   :  { %vm2681_vm9 = vweird.f32 %v6526_v39  ;;  %v2795_v59 = vmul.f32 %v6013_v5, %v2794_v48  ;;  %v2894_v41 = vsel %vm6583_vm7, %v6443_v2, %v2890_v60  ;;  %v3030_v30 = vand.u32 2147483647, %v6364_v21 }
 0x76a   :  { %v2919_v54 = vmul.f32 %v6550_v7, %v2918_v17  ;;  %v3038_v16 = vsub.f32 1.0, %v3037_v22  ;;  %v2677_v12 = vmul.f32 %v6587_v43, %v6526_v39  ;;  %vm2896_vm4 = vcmp.eq.f32.partialorder %v2895_v3, 8.507059e+37 }
 0x76b   :  { %vm2921_vm13 = vweird.f32 %v6505_v11  ;;  %vm2682_vm14 = vweird.f32 %v6587_v43  ;;  %3684 = vmatmul.msk.f32.gmra.mxu2 %vm664_vm6, %v2795_v59  ;;  %v2899_v5 = vsel %vm2896_vm4, %v2898_v15, %v2894_v41  ;;  %v3029_v2 = vsel %vm3028_vm10, %v6412_v13, %v3025_v42  ;;  %vm6626_vm4 = vmor %vm3041_vm12, %vm3042_vm3 }
 0x76c   :  { %v2800_v49 = vadd.f32 %v6507_v50, %v2799_v18  ;;  %v3039_v26 = vmul.f32 %v6571_v58, %v3038_v16  ;;  %v2678_v32 = vsub.f32 1.0, %v2677_v12  ;;  %v2900_v14 = vmul.f32 %v6018_v36, %v2899_v5 }
 0x76d   :  { %vm3031_vm7 = vcmp.eq.f32.partialorder %v3030_v30, 8.507059e+37  ;;  %vm2802_vm8 = vweird.f32 %v6507_v50  ;;  %v2805_v28 = vand.u32 2147483647, %v6441_v56  ;;  %v2665_v29 = vadd.f32 %v6464_v40, %v2664_v47 }
 0x76e   :  { %v3034_v21 = vsel %vm3031_vm7, %v6454_v10, %v3029_v2  ;;  %v2920_v15 = vadd.f32 %v6550_v7, %v2919_v54  ;;  %v3040_v13 = vadd.f32 %v6571_v58, %v3039_v26  ;;  %v2679_v18 = vmul.f32 %v6587_v43, %v2678_v32  ;;  %3699 = vmatmul.msk.f32.gmra.mxu1 %vm664_vm6, %v2900_v14  ;;  %vm2803_vm15 = vmor %vm2801_vm11, %vm2802_vm8 }
 0x76f   :  { %v3035_v52 = vmul.f32 %v6016_v34, %v3034_v21  ;;  %v2804_v10 = vsel %vm2803_vm15, %v6507_v50, %v2800_v49  ;;  %vm2806_vm10 = vcmp.eq.f32.partialorder %v2805_v28, 8.507059e+37  ;;  %vm2667_vm7 = vweird.f32 %v6464_v40 }
 0x770   :  { %v2670_v47 = vand.u32 2147483647, %v6410_v1  ;;  %v2680_v34 = vadd.f32 %v6587_v43, %v2679_v18  ;;  %v2809_v56 = vsel %vm2806_vm10, %v6537_v6, %v2804_v10  ;;  %vm2668_vm11 = vmor %vm2666_vm0, %vm2667_vm7  ;;  %v2905_v60 = vadd.f32 %v6488_v4, %v6541_v57  ;;  %v6692_v10 = vld [vmem:[%s6801_s4] sm:$0xff] }
 0x771   :  { %3708 = vmatmul.msk.f32.gmra.mxu3 %vm664_vm6, %v3035_v52  ;;  %vm2907_vm12 = vweird.f32 %v6488_v4  ;;  %v2810_v50 = vmul.f32 %v6027_v35, %v2809_v56  ;;  %v2669_v55 = vsel %vm2668_vm11, %v6464_v40, %v2665_v29  ;;  %v2910_v37 = vand.u32 2147483647, %v6427_v31  ;;  %vm6654_vm0 = vmor %vm2681_vm9, %vm2682_vm14 }
 0x772   :  { %vm2671_vm3 = vcmp.eq.f32.partialorder %v2670_v47, 8.507059e+37  ;;  %vm2908_vm8 = vmor %vm2906_vm2, %vm2907_vm12  ;;  %vm3046_vm15 = vcmp.eq.f32.partialorder %v3045_v8, 8.507059e+37  ;;  %v3048_v1 = vor.u32 1.1754944e-38, %v3047_v0  ;;  %v2684_v31 = vsel %vm6654_vm0, %v6587_v43, %v2680_v34 }
 0x773   :  { %v2674_v40 = vsel %vm2671_vm3, %v6533_v61, %v2669_v55  ;;  %v2909_v6 = vsel %vm2908_vm8, %v6488_v4, %v2905_v60  ;;  %3685 = vmatmul.msk.f32.gmra.mxu2 %vm664_vm6, %v2810_v50  ;;  %vm2911_vm2 = vcmp.eq.f32.partialorder %v2910_v37, 8.507059e+37  ;;  %v3044_v57 = vsel %vm6626_vm4, %v6571_v58, %v3040_v13  ;;  %vm2923_vm9 = vmor %vm2921_vm13, %vm2922_vm5 }
 0x774   :  { %v2675_v44 = vmul.f32 %v6032_v63, %v2674_v40  ;;  %v2688_v61 = vor.u32 1.1754944e-38, %v2687_v45  ;;  %v2914_v4 = vsel %vm2911_vm2, %v6535_v9, %v2909_v6  ;;  %v3049_v8 = vsel %vm3046_vm15, %v3048_v1, %v3044_v57 }
 0x775   :  { %v2924_v0 = vsel %vm2923_vm9, %v6550_v7, %v2920_v15  ;;  %vm2686_vm14 = vcmp.eq.f32.partialorder %v2685_v33, 8.507059e+37  ;;  %v2915_v63 = vmul.f32 %v6030_v23, %v2914_v4  ;;  %v3050_v58 = vmul.f32 %v6041_v25, %v3049_v8  ;;  %v3327_v25 = vpop.f32.mrf.mxu3 }
 0x776   :  { %3692 = vmatmul.msk.f32.gmra.mxu0 %vm664_vm6, %v2675_v44  ;;  %v2928_v3 = vor.u32 1.1754944e-38, %v2927_v38  ;;  %v2689_v42 = vsel %vm2686_vm14, %v2688_v61, %v2684_v31  ;;  %vm2926_vm5 = vcmp.eq.f32.partialorder %v2925_v20, 8.507059e+37  ;;  %v3359_v47 = vperm.slane %v6692_v10, 6 }
 0x777   :  { %3700 = vmatmul.msk.f32.gmra.mxu1 %vm664_vm6, %v2915_v63  ;;  %v2690_v39 = vmul.f32 %v6047_v62, %v2689_v42 }
 0x778   :  { %v2929_v9 = vsel %vm2926_vm5, %v2928_v3, %v2924_v0  ;;  %v3108_v23 = vpop.f32.mrf.mxu2 }
 0x779   :  { %3709 = vmatmul.msk.f32.gmra.mxu3 %vm664_vm6, %v3050_v58  ;;  %v2930_v7 = vmul.f32 %v6043_v19, %v2929_v9 }
 0x77e   :  { %3693 = vmatmul.msk.f32.gmra.mxu0 %vm664_vm6, %v2690_v39 }
 0x77f   :  { %3701 = vmatmul.msk.f32.gmra.mxu1 %vm664_vm6, %v2930_v7 }
 0x792   :  { %v3173_v38 = vpop.f32.mrf.mxu0 }
 0x793   :  { %v3174_v49 = vadd.f32 %v3173_v38, %v3108_v23 }
 0x79b   :  { %v3246_v33 = vpop.f32.mrf.mxu1 }
 0x79c   :  { %v3270_v29 = vadd.f32 %v3246_v33, %v3174_v49 }
 0x79e   :  { %v3351_v34 = vadd.f32 %v3327_v25, %v3270_v29 }
 0x7a0   :  { %v3360_v6 = vadd.f32 %v3359_v47, %v3351_v34 }
 0x7a2   :  { %v3368_v3 = vsel %vm127_vm1, %v3360_v6, 0.0 }
 0x7a3   :  { %v3111_v17 = vpop.f32.mrf.mxu2 }
 0x7a4   :  { %v3176_v11 = vpop.f32.mrf.mxu0 }
 0x7a5   :  { %v3177_v5 = vadd.f32 %v3176_v11, %v3111_v17 }
 0x7ab   :  { %v3114_v45 = vpop.f32.mrf.mxu2 }
 0x7ad   :  { %v3330_v20 = vpop.f32.mrf.mxu3 }
 0x7ae   :  { %v3179_v48 = vpop.f32.mrf.mxu0 }
 0x7af   :  { %v3180_v26 = vadd.f32 %v3179_v48, %v3114_v45 }
 0x7b0   :  { %v3249_v22 = vpop.f32.mrf.mxu1 }
 0x7b1   :  { %v3271_v32 = vadd.f32 %v3249_v22, %v3177_v5 }
 0x7b3   :  { %v3352_v18 = vadd.f32 %v3330_v20, %v3271_v32 }
 0x7b5   :  { %v3361_v37 = vadd.f32 %v3359_v47, %v3352_v18 }
 0x7b7   :  { %v3369_v8 = vsel %vm127_vm1, %v3361_v37, 0.0 }
 0x7b8   :  { %v3370_v7 = vadd.f32 %v3369_v8, %v3368_v3 }
 0x7ba   :  { %v3333_v27 = vpop.f32.mrf.mxu3  ;;  %v3252_v43 = vpop.f32.mrf.mxu1 }
 0x7bb   :  { %v3272_v15 = vadd.f32 %v3252_v43, %v3180_v26 }
 0x7bd   :  { %v3353_v56 = vadd.f32 %v3333_v27, %v3272_v15 }
 0x7bf   :  { %v3117_v59 = vpop.f32.mrf.mxu2  ;;  %v3362_v31 = vadd.f32 %v3359_v47, %v3353_v56 }
 0x7c1   :  { %v3371_v42 = vsel %vm127_vm1, %v3362_v31, 0.0 }
 0x7c2   :  { %v3372_v38 = vadd.f32 %v3371_v42, %v3370_v7 }
 0x7c4   :  { %v3336_v41 = vpop.f32.mrf.mxu3 }
 0x7c6   :  { %v3182_v62 = vpop.f32.mrf.mxu0 }
 0x7c7   :  { %v3183_v14 = vadd.f32 %v3182_v62, %v3117_v59 }
 0x7c8   :  { %v3255_v19 = vpop.f32.mrf.mxu1 }
 0x7c9   :  { %v3273_v52 = vadd.f32 %v3255_v19, %v3183_v14 }
 0x7ca   :  { %v3120_v30 = vpop.f32.mrf.mxu2 }
 0x7cb   :  { %v3354_v1 = vadd.f32 %v3336_v41, %v3273_v52 }
 0x7cd   :  { %v3363_v0 = vadd.f32 %v3359_v47, %v3354_v1 }
 0x7cf   :  { %v3373_v23 = vsel %vm127_vm1, %v3363_v0, 0.0 }
 0x7d0   :  { %v3185_v54 = vpop.f32.mrf.mxu0  ;;  %v3374_v45 = vadd.f32 %v3373_v23, %v3372_v38 }
 0x7d1   :  { %v3186_v36 = vadd.f32 %v3185_v54, %v3120_v30 }
 0x7d5   :  { %v3123_v2 = vpop.f32.mrf.mxu2 }
 0x7d9   :  { %v3339_v16 = vpop.f32.mrf.mxu3 }
 0x7da   :  { %v3188_v21 = vpop.f32.mrf.mxu0 }
 0x7db   :  { %v3258_v12 = vpop.f32.mrf.mxu1  ;;  %v3189_v60 = vadd.f32 %v3188_v21, %v3123_v2 }
 0x7dc   :  { %v3274_v50 = vadd.f32 %v3258_v12, %v3186_v36 }
 0x7de   :  { %v3355_v44 = vadd.f32 %v3339_v16, %v3274_v50 }
 0x7e0   :  { %v3364_v9 = vadd.f32 %v3359_v47, %v3355_v44 }
 0x7e2   :  { %v3375_v11 = vsel %vm127_vm1, %v3364_v9, 0.0 }
 0x7e3   :  { %v3376_v62 = vadd.f32 %v3375_v11, %v3374_v45  ;;  %v3505_v45 = vld [vmem:[%s6803_s6] sm:$0xff] }
 0x7e5   :  { %v3342_v28 = vpop.f32.mrf.mxu3 }
 0x7eb   :  { %v3261_v13 = vpop.f32.mrf.mxu1 }
 0x7ec   :  { %v3275_v35 = vadd.f32 %v3261_v13, %v3189_v60 }
 0x7ee   :  { %v3126_v55 = vpop.f32.mrf.mxu2  ;;  %v3356_v63 = vadd.f32 %v3342_v28, %v3275_v35 }
 0x7f0   :  { %v3365_v25 = vadd.f32 %v3359_v47, %v3356_v63 }
 0x7f2   :  { %v3377_v43 = vsel %vm127_vm1, %v3365_v25, 0.0 }
 0x7f3   :  { %v3191_v40 = vpop.f32.mrf.mxu0  ;;  %v3378_v30 = vadd.f32 %v3377_v43, %v3376_v62 }
 0x7f4   :  { %v3192_v57 = vadd.f32 %v3191_v40, %v3126_v55  ;;  %v3345_v61 = vpop.f32.mrf.mxu3  ;;  %v3264_v4 = vpop.f32.mrf.mxu1 }
 0x7f6   :  { %v3276_v58 = vadd.f32 %v3264_v4, %v3192_v57  ;;  %v3129_v33 = vpop.f32.mrf.mxu2 }
 0x7f8   :  { %v3357_v39 = vadd.f32 %v3345_v61, %v3276_v58 }
 0x7fa   :  { %v3366_v20 = vadd.f32 %v3359_v47, %v3357_v39 }
 0x7fb   :  { %v3194_v17 = vpop.f32.mrf.mxu0 }
 0x7fc   :  { %v3195_v22 = vadd.f32 %v3194_v17, %v3129_v33  ;;  %v3267_v48 = vpop.f32.mrf.mxu1  ;;  %v3348_v27 = vpop.f32.mrf.mxu3  ;;  %v3379_v41 = vsel %vm127_vm1, %v3366_v20, 0.0  ;;  %v3508_v33 = vld [vmem:[%s6803_s6 + $0x18] sm:$0xff]  ;;  %v3507_v17 = vld [vmem:[%s6803_s6 + $0x10] sm:$0xff] }
 0x7fd   :  { %v3380_v16 = vadd.f32 %v3379_v41, %v3378_v30  ;;  %3549 = vmatpush.msra.mxu2 %v3508_v33 }
 0x7fe   :  { %v3277_v59 = vadd.f32 %v3267_v48, %v3195_v22 }
 0x7ff   :  { %3550 = vmatpush.msra.mxu2 %v3507_v17  ;;  %v6921_v17 = vld [vmem:[#allocation22_spill] sm:$0xff] }
 0x800   :  { %v3358_v19 = vadd.f32 %v3348_v27, %v3277_v59 }
 0x802   :  { %v3367_v54 = vadd.f32 %v3359_v47, %v3358_v19 }
 0x804   :  { %v3381_v12 = vsel %vm127_vm1, %v3367_v54, 0.0 }
 0x805   :  { %v3382_v5 = vadd.f32 %v3381_v12, %v3380_v16  ;;  %v3447_v16 = vperm.slane %v6692_v10, 7 }
 0x807   :  { %v3383_v2 = vrot.slane %v3382_v5, 4 }
 0x809   :  { %v3384_v49 = vadd.f32 %v3383_v2, %v3382_v5  ;;  %v3766_v2 = vld [vmem:[%s6801_s4 + $0x8] ss:$0 sm:$0xff] }
 0x80b   :  { %v3385_v26 = vrot.slane %v3384_v49, 2 }
 0x80d   :  { %v3386_v32 = vadd.f32 %v3385_v26, %v3384_v49 }
 0x80f   :  { %v3387_v14 = vrot.slane %v3386_v32, 1 }
 0x811   :  { %v3388_v21 = vadd.f32 %v3387_v14, %v3386_v32 }
 0x813   :  { %v3389_v28 = vmul.f32 %v3388_v21, %v4166_v53 }
 0x815   :  { %v3390_v29 = vsub.f32 %v3360_v6, %v3389_v28  ;;  %v3391_v15 = vsub.f32 %v3361_v37, %v3389_v28  ;;  %v6704_v13 = vsub.f32 %v3362_v31, %v3389_v28  ;;  %v6706_v18 = vsub.f32 %v3363_v0, %v3389_v28 }
 0x816   :  { %v6708_v52 = vsub.f32 %v3364_v9, %v3389_v28  ;;  %v6712_v56 = vsub.f32 %v3365_v25, %v3389_v28  ;;  %v6718_v1 = vsub.f32 %v3366_v20, %v3389_v28  ;;  %v6723_v31 = vsub.f32 %v3367_v54, %v3389_v28  ;;  %v3506_v20 = vld [vmem:[%s6803_s6 + $0x8] sm:$0xff] }
 0x817   :  { %v3398_v36 = vmul.f32 %v3390_v29, %v3390_v29  ;;  %v3399_v47 = vmul.f32 %v3391_v15, %v3391_v15  ;;  %v3400_v34 = vmul.f32 %v6704_v13, %v6704_v13  ;;  %v3401_v60 = vmul.f32 %v6706_v18, %v6706_v18  ;;  %3551 = vmatpush.msra.mxu2 %v3506_v20 }
 0x818   :  { %v3402_v35 = vmul.f32 %v6708_v52, %v6708_v52  ;;  %v3403_v44 = vmul.f32 %v6712_v56, %v6712_v56  ;;  %v3404_v4 = vmul.f32 %v6718_v1, %v6718_v1  ;;  %v3405_v63 = vmul.f32 %v6723_v31, %v6723_v31 }
 0x819   :  { %v3406_v50 = vsel %vm127_vm1, %v3398_v36, 0.0  ;;  %v3407_v55 = vsel %vm127_vm1, %v3399_v47, 0.0  ;;  %v3409_v40 = vsel %vm127_vm1, %v3400_v34, 0.0  ;;  %v3411_v57 = vsel %vm127_vm1, %v3401_v60, 0.0  ;;  %3552 = vmatpush.msra.mxu2 %v3505_v45  ;;  %v6915_v36 = vld [vmem:[#allocation5_spill] sm:$0xff]  ;;  %v6916_v60 = vld [vmem:[#allocation8_spill] sm:$0xff] }
 0x81a   :  { %v3408_v37 = vadd.f32 %v3407_v55, %v3406_v50  ;;  %v3413_v8 = vsel %vm127_vm1, %v3402_v35, 0.0  ;;  %v3415_v58 = vsel %vm127_vm1, %v3403_v44, 0.0  ;;  %v3417_v42 = vsel %vm127_vm1, %v3404_v4, 0.0 }
 0x81b   :  { %v3419_v39 = vsel %vm127_vm1, %v3405_v63, 0.0  ;;  %v3473_v28 = vmul.f32 0.5, %v5475_v51  ;;  %v3474_v55 = vmul.f32 0.5, %v5487_v24 }
 0x81c   :  { %v3410_v6 = vadd.f32 %v3409_v40, %v3408_v37 }
 0x81e   :  { %v3412_v61 = vadd.f32 %v3411_v57, %v3410_v6  ;;  %v6917_v6 = vld [vmem:[#allocation11_spill] sm:$0xff] }
 0x820   :  { %v3414_v0 = vadd.f32 %v3413_v8, %v3412_v61  ;;  %v3475_v61 = vmul.f32 0.5, %v5499_v46 }
 0x822   :  { %v3416_v3 = vadd.f32 %v3415_v58, %v3414_v0  ;;  %v6918_v58 = vld [vmem:[#allocation12_spill] sm:$0xff] }
 0x824   :  { %v3418_v9 = vadd.f32 %v3417_v42, %v3416_v3  ;;  %v6919_v42 = vld [vmem:[#allocation23_spill] sm:$0xff] }
 0x826   :  { %v3420_v7 = vadd.f32 %v3419_v39, %v3418_v9  ;;  %v3476_v9 = vmul.f32 0.5, %v6919_v42 }
 0x828   :  { %v3421_v23 = vrot.slane %v3420_v7, 4 }
 0x82a   :  { %v3422_v25 = vadd.f32 %v3421_v23, %v3420_v7 }
 0x82c   :  { %v3423_v38 = vrot.slane %v3422_v25, 2 }
 0x82e   :  { %v3424_v11 = vadd.f32 %v3423_v38, %v3422_v25  ;;  %v6920_v38 = vld [vmem:[#allocation10_spill] sm:$0xff] }
 0x830   :  { %v3425_v22 = vrot.slane %v3424_v11, 1 }
 0x832   :  { %v3426_v48 = vadd.f32 %v3425_v22, %v3424_v11  ;;  %v3477_v11 = vmul.f32 0.5, %v6921_v17 }
 0x834   :  { %v3427_v27 = vmul.f32 %v3426_v48, %v4166_v53 }
 0x836   :  { %v3428_v43 = vadd.f32 1e-05, %v3427_v27  ;;  %v6922_v27 = vld [vmem:[#allocation9_spill] sm:$0xff] }
 0x838   :  { %4030 = vrsqrt.f32 %v3428_v43  ;;  %vm3435_vm13 = vweird.f32 %v3428_v43 }
 0x83e   :  { %v4031_v59 = vpop.eup %4030 }
 0x83f   :  { %v3430_v62 = vmul.f32 %v4031_v59, %v3428_v43  ;;  %vm3436_vm6 = vweird.f32 %v4031_v59 }
 0x840   :  { %vm3437_vm4 = vmor %vm3435_vm13, %vm3436_vm6 }
 0x841   :  { %v3431_v41 = vmul.f32 %v4031_v59, %v3430_v62 }
 0x843   :  { %v3432_v19 = vmul.f32 0.5, %v3431_v41 }
 0x845   :  { %v3433_v30 = vsub.f32 1.5, %v3432_v19 }
 0x847   :  { %v3434_v54 = vmul.f32 %v4031_v59, %v3433_v30 }
 0x849   :  { %v3438_v12 = vsel %vm3437_vm4, %v4031_v59, %v3434_v54  ;;  %v6923_v59 = vld [vmem:[#allocation21_spill] sm:$0xff] }
 0x84a   :  { %v3439_v5 = vmul.f32 %v3438_v12, %v3390_v29  ;;  %v3440_v53 = vmul.f32 %v3438_v12, %v3391_v15  ;;  %v3441_v21 = vmul.f32 %v3438_v12, %v6704_v13  ;;  %v3442_v40 = vmul.f32 %v3438_v12, %v6706_v18 }
 0x84b   :  { %v3443_v63 = vmul.f32 %v3438_v12, %v6708_v52  ;;  %v3444_v25 = vmul.f32 %v3438_v12, %v6712_v56  ;;  %v3445_v48 = vmul.f32 %v3438_v12, %v6718_v1  ;;  %v3478_v62 = vmul.f32 0.5, %v6923_v59 }
 0x84c   :  { %v3448_v49 = vmul.f32 %v3447_v16, %v3439_v5  ;;  %v3449_v26 = vmul.f32 %v3447_v16, %v3440_v53  ;;  %v3450_v50 = vmul.f32 %v3447_v16, %v3441_v21  ;;  %v3451_v57 = vmul.f32 %v3447_v16, %v3442_v40 }
 0x84d   :  { %v3452_v18 = vmul.f32 %v3447_v16, %v3443_v63  ;;  %v3453_v52 = vmul.f32 %v3447_v16, %v3444_v25  ;;  %v3454_v56 = vmul.f32 %v3447_v16, %v3445_v48  ;;  %v3446_v41 = vmul.f32 %v3438_v12, %v6723_v31  ;;  %v6926_v31 = vld [vmem:[#allocation6_spill] sm:$0xff] }
 0x84e   :  { %v3457_v32 = vadd.f32 %v3766_v2, %v3448_v49  ;;  %v3458_v14 = vadd.f32 %v3766_v2, %v3449_v26  ;;  %v3459_v35 = vadd.f32 %v3766_v2, %v3450_v50  ;;  %v3460_v0 = vadd.f32 %v3766_v2, %v3451_v57  ;;  %v6924_v49 = vld [vmem:[#allocation7_spill] sm:$0xff]  ;;  %v6925_v26 = vld [vmem:[#allocation20_spill] sm:$0xff] }
 0x84f   :  { %v3461_v23 = vadd.f32 %v3766_v2, %v3452_v18  ;;  %v3462_v45 = vadd.f32 %v3766_v2, %v3453_v52  ;;  %v3463_v54 = vadd.f32 %v3766_v2, %v3454_v56  ;;  %v3455_v5 = vmul.f32 %v3447_v16, %v3446_v41 }
 0x850   :  { %v3465_v47 = vadd.f32 %v3457_v32, %v6915_v36  ;;  %v3466_v10 = vadd.f32 %v3458_v14, %v6916_v60  ;;  %v3467_v44 = vadd.f32 %v3459_v35, %v6917_v6  ;;  %v3468_v3 = vadd.f32 %v3460_v0, %v6918_v58 }
 0x851   :  { %v3469_v33 = vadd.f32 %v3461_v23, %v6920_v38  ;;  %v3470_v43 = vadd.f32 %v3462_v45, %v6922_v27  ;;  %v3471_v1 = vadd.f32 %v3463_v54, %v6924_v49  ;;  %v3479_v32 = vmul.f32 0.5, %v6925_v26 }
 0x852   :  { %v3481_v34 = vadd.f32 %v3473_v28, %v3465_v47  ;;  %v3482_v15 = vadd.f32 %v3474_v55, %v3466_v10  ;;  %v3483_v8 = vadd.f32 %v3475_v61, %v3467_v44  ;;  %v3484_v7 = vadd.f32 %v3476_v9, %v3468_v3  ;;  %v6927_v47 = vld [vmem:[#allocation19_spill] sm:$0xff] }
 0x853   :  { %v3485_v22 = vadd.f32 %v3477_v11, %v3469_v33  ;;  %v3486_v30 = vadd.f32 %v3478_v62, %v3470_v43  ;;  %v3487_v21 = vadd.f32 %v3479_v32, %v3471_v1  ;;  %v3464_v28 = vadd.f32 %v3766_v2, %v3455_v5  ;;  %v3767_v2 = vld [vmem:[%s6804_s7] ss:$0 sm:$0xff]  ;;  %s4069_s7 = smov [#allocation2]  }
 0x854   :  { %v3489_v29 = vmax.f32 %v3481_v34, 0.0  ;;  %v3490_v13 = vmax.f32 %v3482_v15, 0.0  ;;  %v3480_v34 = vmul.f32 0.5, %v6927_v47  ;;  %s3590_s16 = sshll.u32 %s4069_s7, 4  ;;  %s3591_s16 = int_to_ptr.vmem [resolvable:$true] %s3590_s16 }
 0x855   :  { %v3494_v53 = vmax.f32 %v3486_v30, 0.0  ;;  %v3495_v36 = vmax.f32 %v3487_v21, 0.0  ;;  %v3472_v12 = vadd.f32 %v3464_v28, %v6926_v31 }
 0x856   :  { %v3497_v37 = vadd.f32 %v3489_v29, %v5475_v51  ;;  %v3498_v4 = vadd.f32 %v3490_v13, %v5487_v24  ;;  %v3491_v51 = vmax.f32 %v3483_v8, 0.0  ;;  %v3492_v24 = vmax.f32 %v3484_v7, 0.0 }
 0x857   :  { %v3502_v14 = vadd.f32 %v3494_v53, %v6923_v59  ;;  %v3503_v60 = vadd.f32 %v3495_v36, %v6925_v26  ;;  %v3488_v10 = vadd.f32 %v3480_v34, %v3472_v12 }
 0x858   :  { %3710 = vmatmul.msk.f32.vlgmr.msra.gmra.mxu2 %vm127_vm1, %v3497_v37  ;;  %v3499_v39 = vadd.f32 %v3491_v51, %v5499_v46  ;;  %v3500_v20 = vadd.f32 %v3492_v24, %v6919_v42  ;;  %v3493_v46 = vmax.f32 %v3485_v22, 0.0 }
 0x859   :  { %v3496_v16 = vmax.f32 %v3488_v10, 0.0 }
 0x85a   :  { %v3501_v19 = vadd.f32 %v3493_v46, %v6921_v17 }
 0x85b   :  { %v3504_v50 = vadd.f32 %v3496_v16, %v6927_v47 }
 0x860   :  { %3711 = vmatmul.msk.f32.gmra.mxu2 %vm127_vm1, %v3498_v4 }
 0x868   :  { %3712 = vmatmul.msk.f32.gmra.mxu2 %vm127_vm1, %v3499_v39 }
 0x870   :  { %3713 = vmatmul.msk.f32.gmra.mxu2 %vm127_vm1, %v3500_v20 }
 0x878   :  { %3714 = vmatmul.msk.f32.gmra.mxu2 %vm127_vm1, %v3501_v19 }
 0x880   :  { %3715 = vmatmul.msk.f32.gmra.mxu2 %vm127_vm1, %v3502_v14 }
 0x888   :  { %3716 = vmatmul.msk.f32.gmra.mxu2 %vm127_vm1, %v3503_v60 }
 0x890   :  { %3717 = vmatmul.msk.f32.gmra.mxu2 %vm127_vm1, %v3504_v50 }
 0x8db   :  { %v3554_v29 = vpop.f32.mrf.mxu2 }
 0x8dc   :  { %v3555_v55 = vadd.f32 %v3767_v2, %v3554_v29 }
 0x8de   :  { %3578 = vst [vmem:[#allocation2] sm:$0xff] %v3555_v55 }
 0x8e3   :  { %v3557_v37 = vpop.f32.mrf.mxu2 }
 0x8e4   :  { %v3558_v15 = vadd.f32 %v3767_v2, %v3557_v37 }
 0x8e6   :  { %3579 = vst [vmem:[#allocation2 + $0x8] sm:$0xff] %v3558_v15 }
 0x8eb   :  { %v3560_v35 = vpop.f32.mrf.mxu2 }
 0x8ec   :  { %v3561_v40 = vadd.f32 %v3767_v2, %v3560_v35 }
 0x8ee   :  { %3580 = vst [vmem:[#allocation2 + $0x10] sm:$0xff] %v3561_v40 }
 0x8f3   :  { %v3563_v13 = vpop.f32.mrf.mxu2 }
 0x8f4   :  { %v3564_v6 = vadd.f32 %v3767_v2, %v3563_v13 }
 0x8f6   :  { %3581 = vst [vmem:[#allocation2 + $0x18] sm:$0xff] %v3564_v6 }
 0x8fb   :  { %v3566_v44 = vpop.f32.mrf.mxu2 }
 0x8fc   :  { %v3567_v57 = vadd.f32 %v3767_v2, %v3566_v44 }
 0x8fe   :  { %3582 = vst [vmem:[#allocation2 + $0x20] sm:$0xff] %v3567_v57 }
 0x903   :  { %v3569_v61 = vpop.f32.mrf.mxu2 }
 0x904   :  { %v3570_v4 = vadd.f32 %v3767_v2, %v3569_v61 }
 0x906   :  { %3583 = vst [vmem:[#allocation2 + $0x28] sm:$0xff] %v3570_v4 }
 0x90b   :  { %v3572_v8 = vpop.f32.mrf.mxu2 }
 0x90c   :  { %v3573_v0 = vadd.f32 %v3767_v2, %v3572_v8 }
 0x90e   :  { %3584 = vst [vmem:[#allocation2 + $0x30] sm:$0xff] %v3573_v0 }
 0x913   :  { %v3575_v63 = vpop.f32.mrf.mxu2 }
 0x914   :  { %v3576_v51 = vadd.f32 %v3767_v2, %v3575_v63 }
 0x916   :  { %3585 = vst [vmem:[#allocation2 + $0x38] sm:$0xff] %v3576_v51 }
 0x917   :  { %3598 = dma.vmem_to_hbm [thread:$0]  %s3591_s16, 1024, %s3593_s19, [#allocation3], %s4070_s20, %s4070_s20, %s4071_s21  }
 0x918   :  { %4066 = dma.done.wait [#allocation3], 1024  }
 0x919   :  { %4067 = vsyncadd [#allocation3], 4294966272 }
 0x91a   :  { %3603 = vsyncpa [#allocation3], 1 }

</bundles_post_ra>
